<compile_context>
chip_gen: v7x
topology: tpu7x:2x2x1
jax: 0.10.0
libtpu: 0.0.40
codegen_flags: <defaults>
</compile_context>

<pallas_src>
import numpy as np
import jax
import jax.numpy as jnp
from jax.experimental import pallas as pl
from jax.experimental.pallas import tpu as pltpu

OUT_PAD = 128   # lane-dense padded output width (true out_dim is 5)


def _relu(x):
    return jnp.maximum(x, 0.0)


# --------------------------------------------------------------------------- #
# Kernel
# --------------------------------------------------------------------------- #
def afs_kernel(x_ref,
               fw1_ref, fb1_ref, fw2_ref, fb2_ref, fw3_ref, fb3_ref,
               aw1_ref, ab1_ref, aw2_ref, ab2_ref, aw3_ref, ab3_ref,
               mw1_ref, mb1_ref, mw2_ref, mb2_ref,
               seg_ref, exp_ref,
               out_ref):
    """One batch-tile of the full AFS_ZXM forward pass (eval / no dropout)."""
    x = x_ref[...]                                      # (TB, D) f32

    def mm(a, w_ref):
        # bf16 operands on the MXU, f32 accumulation.
        return jnp.dot(a.astype(w_ref.dtype), w_ref[...],
                       preferred_element_type=jnp.float32)

    # --- FinedController: 3 block-diagonal matmuls == F independent MLPs ----
    h = _relu(mm(x, fw1_ref) + fb1_ref[...])            # (TB, D)
    h = _relu(mm(h, fw2_ref) + fb2_ref[...])            # (TB, F*64)
    h = _relu(mm(h, fw3_ref) + fb3_ref[...])            # (TB, D)

    # Per-field (segment) softmax over the D lanes.  One per-row max is a valid
    # stabilizer for every segment (same constant shift inside each segment),
    # so no per-field slicing / reshaping is needed.
    seg = seg_ref[...]                                  # (D, F) 0/1 indicator
    expand = exp_ref[...]                               # (F, D) 0/1 ones-block
    m = jnp.max(h, axis=1, keepdims=True)               # (TB, 1)
    e = jnp.exp(h - m)                                  # (TB, D)
    s = jnp.dot(e, seg, preferred_element_type=jnp.float32)          # (TB, F)
    s_full = jnp.dot(s, expand, preferred_element_type=jnp.float32)  # (TB, D)
    weight = e * pl.reciprocal(s_full, approx=True)     # (TB, D)

    input_mlp = x * weight                              # field * weight

    # --- Adacontroller: Linear(D,64)+ReLU, Linear(64,32)+ReLU,
    #                    Linear(32,F)+ReLU, softmax over fields ---------------
    h = _relu(mm(input_mlp, aw1_ref) + ab1_ref[...])
    h = _relu(mm(h, aw2_ref) + ab2_ref[...])
    h = _relu(mm(h, aw3_ref) + ab3_ref[...])            # (TB, F)
    m1 = jnp.max(h, axis=1, keepdims=True)
    e1 = jnp.exp(h - m1)
    w1 = e1 * pl.reciprocal(jnp.sum(e1, axis=1, keepdims=True), approx=True)

    # --- field1: scale the ORIGINAL x per field via an expansion matmul ------
    field1 = x * jnp.dot(w1, expand, preferred_element_type=jnp.float32)

    # --- main MLP: Linear(D, D//2)+ReLU, Linear(D//2, 5 -> padded 128)+ReLU --
    h = _relu(mm(field1, mw1_ref) + mb1_ref[...])
    out = _relu(mm(h, mw2_ref) + mb2_ref[...])          # (TB, OUT_PAD)
    out_ref[...] = out.astype(out_ref.dtype)


# --------------------------------------------------------------------------- #
# Host-side packing + wrapper
# --------------------------------------------------------------------------- #
def _block_diag(ws):
    """(F, a, b) stacked blocks -> (F*a, F*b) block-diagonal matrix."""
    F, a, b = ws.shape
    out = jnp.zeros((F * a, F * b), ws.dtype)
    for i in range(F):
        out = out.at[i * a:(i + 1) * a, i * b:(i + 1) * b].set(ws[i])
    return out


def _pack_kernel_params(params, num_fields, field_dim,
                        compute_dtype=jnp.bfloat16):
    """Build the lane-dense / block-diagonal buffers the kernel consumes."""
    F, d = num_fields, field_dim
    D = F * d
    out_dim = params["mw2"].shape[-1]

    def w(a):  # matmul operands -> bf16; biases stay f32
        return a.astype(compute_dtype)

    packed = {
        # FinedController, block-diagonalized
        "fw1": w(_block_diag(params["fw1"])),                    # (D, D)
        "fb1": params["fb1"].reshape(1, D),
        "fw2": w(_block_diag(params["fw2"])),                    # (D, F*64)
        "fb2": params["fb2"].reshape(1, F * 64),
        "fw3": w(_block_diag(params["fw3"])),                    # (F*64, D)
        "fb3": params["fb3"].reshape(1, D),
        # Adacontroller
        "aw1": w(params["aw1"]), "ab1": params["ab1"],
        "aw2": w(params["aw2"]), "ab2": params["ab2"],
        "aw3": w(params["aw3"]), "ab3": params["ab3"],
        # main MLP (last layer zero-padded to OUT_PAD output lanes)
        "mw1": w(params["mw1"]), "mb1": params["mb1"],
        "mw2": w(jnp.zeros((D // 2, OUT_PAD), jnp.float32)
                 .at[:, :out_dim].set(params["mw2"])),
        "mb2": jnp.zeros((1, OUT_PAD), jnp.float32)
                 .at[:, :out_dim].set(params["mb2"]),
        # segment-softmax / field-expansion helper matrices
        "seg": jnp.kron(jnp.eye(F, dtype=jnp.float32),
                        jnp.ones((d, 1), jnp.float32)),          # (D, F)
        "exp": jnp.kron(jnp.eye(F, dtype=jnp.float32),
                        jnp.ones((1, d), jnp.float32)),          # (F, D)
    }
    return packed, out_dim


def afs_forward(x, params, *, num_fields, field_dim, batch_tile=256):
    B, D = x.shape
    assert D == num_fields * field_dim
    assert B % batch_tile == 0, "B must be a multiple of batch_tile"

    packed, out_dim = _pack_kernel_params(params, num_fields, field_dim)
    order = ["fw1", "fb1", "fw2", "fb2", "fw3", "fb3",
             "aw1", "ab1", "aw2", "ab2", "aw3", "ab3",
             "mw1", "mb1", "mw2", "mb2", "seg", "exp"]
    weight_args = [packed[k] for k in order]

    # x is the only operand tiled over the (parallel) batch grid; all weights
    # are whole-array blocks with constant index maps -> fetched once.
    in_specs = [pl.BlockSpec((batch_tile, D), lambda i: (i, 0))]
    in_specs += [pl.BlockSpec(a.shape, lambda i: (0, 0)) for a in weight_args]

    out_padded = pl.pallas_call(
        afs_kernel,
        out_shape=jax.ShapeDtypeStruct((B, OUT_PAD), jnp.float32),
        grid=(B // batch_tile,),
        in_specs=in_specs,
        out_specs=pl.BlockSpec((batch_tile, OUT_PAD), lambda i: (i, 0)),
        compiler_params=pltpu.CompilerParams(
            dimension_semantics=("parallel",)),
        # VMEM at these shapes is tiny (<1 MiB of live tiles) even on v7x, so
        # no vmem_limit_bytes override is needed; revisit only if D grows.
    )(x, *weight_args)
    return out_padded[:, :out_dim]


# --------------------------------------------------------------------------- #
# Parameter init + pure-JAX reference
# --------------------------------------------------------------------------- #
def init_params(key, num_fields, field_dim, embed_dim):
    """Deterministic (xavier-normal weights, zero biases) parameter init."""
    F, d, D = num_fields, field_dim, embed_dim

    def xavier(key, fan_in, fan_out, shape):
        std = float(np.sqrt(2.0 / (fan_in + fan_out)))
        return std * jax.random.normal(key, shape, dtype=jnp.float32)

    keys = jax.random.split(key, 8)
    params = {
        # FinedController: per-field Linear(d,d), Linear(d,64), Linear(64,d)
        "fw1": xavier(keys[0], d, d, (F, d, d)),
        "fb1": jnp.zeros((F, 1, d), jnp.float32),
        "fw2": xavier(keys[1], d, 64, (F, d, 64)),
        "fb2": jnp.zeros((F, 1, 64), jnp.float32),
        "fw3": xavier(keys[2], 64, d, (F, 64, d)),
        "fb3": jnp.zeros((F, 1, d), jnp.float32),
        # Adacontroller: Linear(D,64), Linear(64,32), Linear(32,F)
        "aw1": xavier(keys[3], D, 64, (D, 64)),
        "ab1": jnp.zeros((1, 64), jnp.float32),
        "aw2": xavier(keys[4], 64, 32, (64, 32)),
        "ab2": jnp.zeros((1, 32), jnp.float32),
        "aw3": xavier(keys[5], 32, F, (32, F)),
        "ab3": jnp.zeros((1, F), jnp.float32),
        # main MLP: Linear(D, D//2), Linear(D//2, 5)
        "mw1": xavier(keys[6], D, D // 2, (D, D // 2)),
        "mb1": jnp.zeros((1, D // 2), jnp.float32),
        "mw2": xavier(keys[7], D // 2, 5, (D // 2, 5)),
        "mb2": jnp.zeros((1, 5), jnp.float32),
    }
    return params


def afs_reference(x, p, num_fields, field_dim):
    """Pure-JAX f32 reference mirroring the PyTorch forward (eval mode)."""
    F, d = num_fields, field_dim
    parts = []
    for i in range(F):
        xs = x[:, i * d:(i + 1) * d]
        h = _relu(xs @ p["fw1"][i] + p["fb1"][i])
        h = _relu(h @ p["fw2"][i] + p["fb2"][i])
        h = _relu(h @ p["fw3"][i] + p["fb3"][i])
        parts.append(jax.nn.softmax(h, axis=1))
    weight = jnp.concatenate(parts, axis=1)
    input_mlp = x * weight
    h = _relu(input_mlp @ p["aw1"] + p["ab1"])
    h = _relu(h @ p["aw2"] + p["ab2"])
    h = _relu(h @ p["aw3"] + p["ab3"])
    w1 = jax.nn.softmax(h, axis=1)
    f1 = jnp.concatenate(
        [x[:, i * d:(i + 1) * d] * w1[:, i:i + 1] for i in range(F)], axis=1)
    h = _relu(f1 @ p["mw1"] + p["mb1"])
    return _relu(h @ p["mw2"] + p["mb2"])


if __name__ == "__main__":
    # inputs_dim -> 4 fields of width 8 each; embed_dim (input_dims) = 32
    NUM_FIELDS = 4
    FIELD_DIM = 8
    EMBED_DIM = NUM_FIELDS * FIELD_DIM          # 32
    BATCH = 512                                 # grid of 2 x 256-row tiles
    BATCH_TILE = 256

    key = jax.random.PRNGKey(0)
    k_x, k_p = jax.random.split(key)
    field = jax.random.normal(k_x, (BATCH, EMBED_DIM), dtype=jnp.float32)
    params = init_params(k_p, NUM_FIELDS, FIELD_DIM, EMBED_DIM)

    out = afs_forward(field, params, num_fields=NUM_FIELDS,
                      field_dim=FIELD_DIM, batch_tile=BATCH_TILE)
    out = jax.block_until_ready(out)

    ref = afs_reference(field, params, NUM_FIELDS, FIELD_DIM)
    # bf16 matmul operands (f32 accumulation) + approx reciprocal vs. f32
    # reference -> loosened tolerance as noted in the review.
    np.testing.assert_allclose(np.asarray(out), np.asarray(ref),
                               rtol=5e-2, atol=2e-2)
    assert out.shape == (BATCH, 5)
    print("KERNEL_OK")
</pallas_src>

<mosaic_0001>
module attributes {stable_mosaic.version = 11 : i64} {
  func.func @afs_kernel(%arg0: i32, %arg1: memref<256x32xf32, #tpu.memory_space<vmem>>, %arg2: memref<32x32xbf16, #tpu.memory_space<vmem>>, %arg3: memref<1x32xf32, #tpu.memory_space<vmem>>, %arg4: memref<32x256xbf16, #tpu.memory_space<vmem>>, %arg5: memref<1x256xf32, #tpu.memory_space<vmem>>, %arg6: memref<256x32xbf16, #tpu.memory_space<vmem>>, %arg7: memref<1x32xf32, #tpu.memory_space<vmem>>, %arg8: memref<32x64xbf16, #tpu.memory_space<vmem>>, %arg9: memref<1x64xf32, #tpu.memory_space<vmem>>, %arg10: memref<64x32xbf16, #tpu.memory_space<vmem>>, %arg11: memref<1x32xf32, #tpu.memory_space<vmem>>, %arg12: memref<32x4xbf16, #tpu.memory_space<vmem>>, %arg13: memref<1x4xf32, #tpu.memory_space<vmem>>, %arg14: memref<32x16xbf16, #tpu.memory_space<vmem>>, %arg15: memref<1x16xf32, #tpu.memory_space<vmem>>, %arg16: memref<16x128xbf16, #tpu.memory_space<vmem>>, %arg17: memref<1x128xf32, #tpu.memory_space<vmem>>, %arg18: memref<32x4xf32, #tpu.memory_space<vmem>>, %arg19: memref<4x32xf32, #tpu.memory_space<vmem>>, %arg20: memref<256x128xf32, #tpu.memory_space<vmem>>) attributes {dimension_semantics = [#tpu.dimension_semantics<parallel>], iteration_bounds = array<i64: 2>, scalar_prefetch = 0 : i64, scratch_operands = 0 : i64, tpu.core_type = #tpu.core_type<tc>, window_params = [{transform_indices = @transform_0, window_bounds = array<i64: 256, 32>}, {pipeline_mode = #tpu.pipeline_mode<synchronous>, transform_indices = @transform_1, window_bounds = array<i64: 32, 32>}, {pipeline_mode = #tpu.pipeline_mode<synchronous>, transform_indices = @transform_2, window_bounds = array<i64: 1, 32>}, {pipeline_mode = #tpu.pipeline_mode<synchronous>, transform_indices = @transform_3, window_bounds = array<i64: 32, 256>}, {pipeline_mode = #tpu.pipeline_mode<synchronous>, transform_indices = @transform_4, window_bounds = array<i64: 1, 256>}, {pipeline_mode = #tpu.pipeline_mode<synchronous>, transform_indices = @transform_5, window_bounds = array<i64: 256, 32>}, {pipeline_mode = #tpu.pipeline_mode<synchronous>, transform_indices = @transform_6, window_bounds = array<i64: 1, 32>}, {pipeline_mode = #tpu.pipeline_mode<synchronous>, transform_indices = @transform_7, window_bounds = array<i64: 32, 64>}, {pipeline_mode = #tpu.pipeline_mode<synchronous>, transform_indices = @transform_8, window_bounds = array<i64: 1, 64>}, {pipeline_mode = #tpu.pipeline_mode<synchronous>, transform_indices = @transform_9, window_bounds = array<i64: 64, 32>}, {pipeline_mode = #tpu.pipeline_mode<synchronous>, transform_indices = @transform_10, window_bounds = array<i64: 1, 32>}, {pipeline_mode = #tpu.pipeline_mode<synchronous>, transform_indices = @transform_11, window_bounds = array<i64: 32, 4>}, {pipeline_mode = #tpu.pipeline_mode<synchronous>, transform_indices = @transform_12, window_bounds = array<i64: 1, 4>}, {pipeline_mode = #tpu.pipeline_mode<synchronous>, transform_indices = @transform_13, window_bounds = array<i64: 32, 16>}, {pipeline_mode = #tpu.pipeline_mode<synchronous>, transform_indices = @transform_14, window_bounds = array<i64: 1, 16>}, {pipeline_mode = #tpu.pipeline_mode<synchronous>, transform_indices = @transform_15, window_bounds = array<i64: 16, 128>}, {pipeline_mode = #tpu.pipeline_mode<synchronous>, transform_indices = @transform_16, window_bounds = array<i64: 1, 128>}, {pipeline_mode = #tpu.pipeline_mode<synchronous>, transform_indices = @transform_17, window_bounds = array<i64: 32, 4>}, {pipeline_mode = #tpu.pipeline_mode<synchronous>, transform_indices = @transform_18, window_bounds = array<i64: 4, 32>}, {transform_indices = @transform_19, window_bounds = array<i64: 256, 128>}]} {
    %c0 = arith.constant 0 : index
    %c0_0 = arith.constant 0 : index
    %0 = vector.load %arg1[%c0, %c0_0] : memref<256x32xf32, #tpu.memory_space<vmem>>, vector<256x32xf32>
    %1 = arith.truncf %0 : vector<256x32xf32> to vector<256x32xbf16>
    %c0_1 = arith.constant 0 : index
    %c0_2 = arith.constant 0 : index
    %2 = vector.load %arg2[%c0_1, %c0_2] : memref<32x32xbf16, #tpu.memory_space<vmem>>, vector<32x32xbf16>
    %cst = arith.constant dense<0.000000e+00> : vector<256x32xf32>
    %3 = tpu.matmul %1, %2, %cst {dimension_numbers = #tpu.dot_dimension_numbers<[1], [0], [0], [1], [0, 0, 1, 1], [], []>} : vector<256x32xbf16>, vector<32x32xbf16>, vector<256x32xf32> -> vector<256x32xf32>
    %c0_3 = arith.constant 0 : index
    %c0_4 = arith.constant 0 : index
    %4 = vector.load %arg3[%c0_3, %c0_4] : memref<1x32xf32, #tpu.memory_space<vmem>>, vector<1x32xf32>
    %5 = vector.broadcast %4 : vector<1x32xf32> to vector<256x32xf32>
    %6 = arith.addf %3, %5 : vector<256x32xf32>
    %cst_5 = arith.constant 0.000000e+00 : f32
    %7 = vector.broadcast %cst_5 : f32 to vector<256x32xf32>
    %8 = arith.maximumf %6, %7 : vector<256x32xf32>
    %9 = arith.truncf %8 : vector<256x32xf32> to vector<256x32xbf16>
    %c0_6 = arith.constant 0 : index
    %c0_7 = arith.constant 0 : index
    %10 = vector.load %arg4[%c0_6, %c0_7] : memref<32x256xbf16, #tpu.memory_space<vmem>>, vector<32x256xbf16>
    %cst_8 = arith.constant dense<0.000000e+00> : vector<256x256xf32>
    %11 = tpu.matmul %9, %10, %cst_8 {dimension_numbers = #tpu.dot_dimension_numbers<[1], [0], [0], [1], [0, 0, 1, 1], [], []>} : vector<256x32xbf16>, vector<32x256xbf16>, vector<256x256xf32> -> vector<256x256xf32>
    %c0_9 = arith.constant 0 : index
    %c0_10 = arith.constant 0 : index
    %12 = vector.load %arg5[%c0_9, %c0_10] : memref<1x256xf32, #tpu.memory_space<vmem>>, vector<1x256xf32>
    %13 = vector.broadcast %12 : vector<1x256xf32> to vector<256x256xf32>
    %14 = arith.addf %11, %13 : vector<256x256xf32>
    %cst_11 = arith.constant 0.000000e+00 : f32
    %15 = vector.broadcast %cst_11 : f32 to vector<256x256xf32>
    %16 = arith.maximumf %14, %15 : vector<256x256xf32>
    %17 = arith.truncf %16 : vector<256x256xf32> to vector<256x256xbf16>
    %c0_12 = arith.constant 0 : index
    %c0_13 = arith.constant 0 : index
    %18 = vector.load %arg6[%c0_12, %c0_13] : memref<256x32xbf16, #tpu.memory_space<vmem>>, vector<256x32xbf16>
    %cst_14 = arith.constant dense<0.000000e+00> : vector<256x32xf32>
    %19 = tpu.matmul %17, %18, %cst_14 {dimension_numbers = #tpu.dot_dimension_numbers<[1], [0], [0], [1], [0, 0, 1, 1], [], []>} : vector<256x256xbf16>, vector<256x32xbf16>, vector<256x32xf32> -> vector<256x32xf32>
    %c0_15 = arith.constant 0 : index
    %c0_16 = arith.constant 0 : index
    %20 = vector.load %arg7[%c0_15, %c0_16] : memref<1x32xf32, #tpu.memory_space<vmem>>, vector<1x32xf32>
    %21 = vector.broadcast %20 : vector<1x32xf32> to vector<256x32xf32>
    %22 = arith.addf %19, %21 : vector<256x32xf32>
    %cst_17 = arith.constant 0.000000e+00 : f32
    %23 = vector.broadcast %cst_17 : f32 to vector<256x32xf32>
    %24 = arith.maximumf %22, %23 : vector<256x32xf32>
    %c0_18 = arith.constant 0 : index
    %c0_19 = arith.constant 0 : index
    %25 = vector.load %arg18[%c0_18, %c0_19] : memref<32x4xf32, #tpu.memory_space<vmem>>, vector<32x4xf32>
    %c0_20 = arith.constant 0 : index
    %c0_21 = arith.constant 0 : index
    %26 = vector.load %arg19[%c0_20, %c0_21] : memref<4x32xf32, #tpu.memory_space<vmem>>, vector<4x32xf32>
    %cst_22 = arith.constant dense<0xFF800000> : vector<256xf32>
    %27 = vector.multi_reduction <maximumf>, %24, %cst_22 [1] : vector<256x32xf32> to vector<256xf32>
    %28 = vector.shape_cast %27 : vector<256xf32> to vector<256x1xf32>
    %29 = vector.broadcast %28 : vector<256x1xf32> to vector<256x32xf32>
    %30 = arith.subf %24, %29 : vector<256x32xf32>
    %31 = math.exp %30 : vector<256x32xf32>
    %cst_23 = arith.constant dense<0.000000e+00> : vector<256x4xf32>
    %32 = tpu.matmul %31, %25, %cst_23 {dimension_numbers = #tpu.dot_dimension_numbers<[1], [0], [0], [1], [0, 0, 1, 1], [], []>} : vector<256x32xf32>, vector<32x4xf32>, vector<256x4xf32> -> vector<256x4xf32>
    %cst_24 = arith.constant dense<0.000000e+00> : vector<256x32xf32>
    %33 = tpu.matmul %32, %26, %cst_24 {dimension_numbers = #tpu.dot_dimension_numbers<[1], [0], [0], [1], [0, 0, 1, 1], [], []>} : vector<256x4xf32>, vector<4x32xf32>, vector<256x32xf32> -> vector<256x32xf32>
    %34 = tpu.reciprocal %33 {approx = true} : vector<256x32xf32> -> vector<256x32xf32>
    %35 = arith.mulf %31, %34 : vector<256x32xf32>
    %36 = arith.mulf %0, %35 : vector<256x32xf32>
    %37 = arith.truncf %36 : vector<256x32xf32> to vector<256x32xbf16>
    %c0_25 = arith.constant 0 : index
    %c0_26 = arith.constant 0 : index
    %38 = vector.load %arg8[%c0_25, %c0_26] : memref<32x64xbf16, #tpu.memory_space<vmem>>, vector<32x64xbf16>
    %cst_27 = arith.constant dense<0.000000e+00> : vector<256x64xf32>
    %39 = tpu.matmul %37, %38, %cst_27 {dimension_numbers = #tpu.dot_dimension_numbers<[1], [0], [0], [1], [0, 0, 1, 1], [], []>} : vector<256x32xbf16>, vector<32x64xbf16>, vector<256x64xf32> -> vector<256x64xf32>
    %c0_28 = arith.constant 0 : index
    %c0_29 = arith.constant 0 : index
    %40 = vector.load %arg9[%c0_28, %c0_29] : memref<1x64xf32, #tpu.memory_space<vmem>>, vector<1x64xf32>
    %41 = vector.broadcast %40 : vector<1x64xf32> to vector<256x64xf32>
    %42 = arith.addf %39, %41 : vector<256x64xf32>
    %cst_30 = arith.constant 0.000000e+00 : f32
    %43 = vector.broadcast %cst_30 : f32 to vector<256x64xf32>
    %44 = arith.maximumf %42, %43 : vector<256x64xf32>
    %45 = arith.truncf %44 : vector<256x64xf32> to vector<256x64xbf16>
    %c0_31 = arith.constant 0 : index
    %c0_32 = arith.constant 0 : index
    %46 = vector.load %arg10[%c0_31, %c0_32] : memref<64x32xbf16, #tpu.memory_space<vmem>>, vector<64x32xbf16>
    %cst_33 = arith.constant dense<0.000000e+00> : vector<256x32xf32>
    %47 = tpu.matmul %45, %46, %cst_33 {dimension_numbers = #tpu.dot_dimension_numbers<[1], [0], [0], [1], [0, 0, 1, 1], [], []>} : vector<256x64xbf16>, vector<64x32xbf16>, vector<256x32xf32> -> vector<256x32xf32>
    %c0_34 = arith.constant 0 : index
    %c0_35 = arith.constant 0 : index
    %48 = vector.load %arg11[%c0_34, %c0_35] : memref<1x32xf32, #tpu.memory_space<vmem>>, vector<1x32xf32>
    %49 = vector.broadcast %48 : vector<1x32xf32> to vector<256x32xf32>
    %50 = arith.addf %47, %49 : vector<256x32xf32>
    %cst_36 = arith.constant 0.000000e+00 : f32
    %51 = vector.broadcast %cst_36 : f32 to vector<256x32xf32>
    %52 = arith.maximumf %50, %51 : vector<256x32xf32>
    %53 = arith.truncf %52 : vector<256x32xf32> to vector<256x32xbf16>
    %c0_37 = arith.constant 0 : index
    %c0_38 = arith.constant 0 : index
    %54 = vector.load %arg12[%c0_37, %c0_38] : memref<32x4xbf16, #tpu.memory_space<vmem>>, vector<32x4xbf16>
    %cst_39 = arith.constant dense<0.000000e+00> : vector<256x4xf32>
    %55 = tpu.matmul %53, %54, %cst_39 {dimension_numbers = #tpu.dot_dimension_numbers<[1], [0], [0], [1], [0, 0, 1, 1], [], []>} : vector<256x32xbf16>, vector<32x4xbf16>, vector<256x4xf32> -> vector<256x4xf32>
    %c0_40 = arith.constant 0 : index
    %c0_41 = arith.constant 0 : index
    %56 = vector.load %arg13[%c0_40, %c0_41] : memref<1x4xf32, #tpu.memory_space<vmem>>, vector<1x4xf32>
    %57 = vector.broadcast %56 : vector<1x4xf32> to vector<256x4xf32>
    %58 = arith.addf %55, %57 : vector<256x4xf32>
    %cst_42 = arith.constant 0.000000e+00 : f32
    %59 = vector.broadcast %cst_42 : f32 to vector<256x4xf32>
    %60 = arith.maximumf %58, %59 : vector<256x4xf32>
    %cst_43 = arith.constant dense<0xFF800000> : vector<256xf32>
    %61 = vector.multi_reduction <maximumf>, %60, %cst_43 [1] : vector<256x4xf32> to vector<256xf32>
    %62 = vector.shape_cast %61 : vector<256xf32> to vector<256x1xf32>
    %63 = vector.broadcast %62 : vector<256x1xf32> to vector<256x4xf32>
    %64 = arith.subf %60, %63 : vector<256x4xf32>
    %65 = math.exp %64 : vector<256x4xf32>
    %cst_44 = arith.constant dense<0.000000e+00> : vector<256xf32>
    %66 = vector.multi_reduction <add>, %65, %cst_44 [1] : vector<256x4xf32> to vector<256xf32>
    %67 = vector.shape_cast %66 : vector<256xf32> to vector<256x1xf32>
    %68 = tpu.reciprocal %67 {approx = true} : vector<256x1xf32> -> vector<256x1xf32>
    %69 = vector.broadcast %68 : vector<256x1xf32> to vector<256x4xf32>
    %70 = arith.mulf %65, %69 : vector<256x4xf32>
    %cst_45 = arith.constant dense<0.000000e+00> : vector<256x32xf32>
    %71 = tpu.matmul %70, %26, %cst_45 {dimension_numbers = #tpu.dot_dimension_numbers<[1], [0], [0], [1], [0, 0, 1, 1], [], []>} : vector<256x4xf32>, vector<4x32xf32>, vector<256x32xf32> -> vector<256x32xf32>
    %72 = arith.mulf %0, %71 : vector<256x32xf32>
    %73 = arith.truncf %72 : vector<256x32xf32> to vector<256x32xbf16>
    %c0_46 = arith.constant 0 : index
    %c0_47 = arith.constant 0 : index
    %74 = vector.load %arg14[%c0_46, %c0_47] : memref<32x16xbf16, #tpu.memory_space<vmem>>, vector<32x16xbf16>
    %cst_48 = arith.constant dense<0.000000e+00> : vector<256x16xf32>
    %75 = tpu.matmul %73, %74, %cst_48 {dimension_numbers = #tpu.dot_dimension_numbers<[1], [0], [0], [1], [0, 0, 1, 1], [], []>} : vector<256x32xbf16>, vector<32x16xbf16>, vector<256x16xf32> -> vector<256x16xf32>
    %c0_49 = arith.constant 0 : index
    %c0_50 = arith.constant 0 : index
    %76 = vector.load %arg15[%c0_49, %c0_50] : memref<1x16xf32, #tpu.memory_space<vmem>>, vector<1x16xf32>
    %77 = vector.broadcast %76 : vector<1x16xf32> to vector<256x16xf32>
    %78 = arith.addf %75, %77 : vector<256x16xf32>
    %cst_51 = arith.constant 0.000000e+00 : f32
    %79 = vector.broadcast %cst_51 : f32 to vector<256x16xf32>
    %80 = arith.maximumf %78, %79 : vector<256x16xf32>
    %81 = arith.truncf %80 : vector<256x16xf32> to vector<256x16xbf16>
    %c0_52 = arith.constant 0 : index
    %c0_53 = arith.constant 0 : index
    %82 = vector.load %arg16[%c0_52, %c0_53] : memref<16x128xbf16, #tpu.memory_space<vmem>>, vector<16x128xbf16>
    %cst_54 = arith.constant dense<0.000000e+00> : vector<256x128xf32>
    %83 = tpu.matmul %81, %82, %cst_54 {dimension_numbers = #tpu.dot_dimension_numbers<[1], [0], [0], [1], [0, 0, 1, 1], [], []>} : vector<256x16xbf16>, vector<16x128xbf16>, vector<256x128xf32> -> vector<256x128xf32>
    %c0_55 = arith.constant 0 : index
    %c0_56 = arith.constant 0 : index
    %84 = vector.load %arg17[%c0_55, %c0_56] : memref<1x128xf32, #tpu.memory_space<vmem>>, vector<1x128xf32>
    %85 = vector.broadcast %84 : vector<1x128xf32> to vector<256x128xf32>
    %86 = arith.addf %83, %85 : vector<256x128xf32>
    %cst_57 = arith.constant 0.000000e+00 : f32
    %87 = vector.broadcast %cst_57 : f32 to vector<256x128xf32>
    %88 = arith.maximumf %86, %87 : vector<256x128xf32>
    %c0_58 = arith.constant 0 : index
    %c0_59 = arith.constant 0 : index
    %89 = vector.load %arg20[%c0_58, %c0_59] : memref<256x128xf32, #tpu.memory_space<vmem>>, vector<256x128xf32>
    tpu.vector_store %arg20[%c0_58, %c0_59], %88 {strides = array<i32>} : memref<256x128xf32, #tpu.memory_space<vmem>>, vector<256x128xf32>,
    return
  }
  func.func @transform_0(%arg0: i32) -> (i32, i32) {
    %c0_i32 = arith.constant 0 : i32
    %c0_i32_0 = arith.constant 0 : i32
    return %arg0, %c0_i32 : i32, i32
  }
  func.func @transform_1(%arg0: i32) -> (i32, i32) {
    %c0_i32 = arith.constant 0 : i32
    %c0_i32_0 = arith.constant 0 : i32
    %c0_i32_1 = arith.constant 0 : i32
    return %c0_i32, %c0_i32_0 : i32, i32
  }
  func.func @transform_2(%arg0: i32) -> (i32, i32) {
    %c0_i32 = arith.constant 0 : i32
    %c0_i32_0 = arith.constant 0 : i32
    %c0_i32_1 = arith.constant 0 : i32
    return %c0_i32, %c0_i32_0 : i32, i32
  }
  func.func @transform_3(%arg0: i32) -> (i32, i32) {
    %c0_i32 = arith.constant 0 : i32
    %c0_i32_0 = arith.constant 0 : i32
    %c0_i32_1 = arith.constant 0 : i32
    return %c0_i32, %c0_i32_0 : i32, i32
  }
  func.func @transform_4(%arg0: i32) -> (i32, i32) {
    %c0_i32 = arith.constant 0 : i32
    %c0_i32_0 = arith.constant 0 : i32
    %c0_i32_1 = arith.constant 0 : i32
    return %c0_i32, %c0_i32_0 : i32, i32
  }
  func.func @transform_5(%arg0: i32) -> (i32, i32) {
    %c0_i32 = arith.constant 0 : i32
    %c0_i32_0 = arith.constant 0 : i32
    %c0_i32_1 = arith.constant 0 : i32
    return %c0_i32, %c0_i32_0 : i32, i32
  }
  func.func @transform_6(%arg0: i32) -> (i32, i32) {
    %c0_i32 = arith.constant 0 : i32
    %c0_i32_0 = arith.constant 0 : i32
    %c0_i32_1 = arith.constant 0 : i32
    return %c0_i32, %c0_i32_0 : i32, i32
  }
  func.func @transform_7(%arg0: i32) -> (i32, i32) {
    %c0_i32 = arith.constant 0 : i32
    %c0_i32_0 = arith.constant 0 : i32
    %c0_i32_1 = arith.constant 0 : i32
    return %c0_i32, %c0_i32_0 : i32, i32
  }
  func.func @transform_8(%arg0: i32) -> (i32, i32) {
    %c0_i32 = arith.constant 0 : i32
    %c0_i32_0 = arith.constant 0 : i32
    %c0_i32_1 = arith.constant 0 : i32
    return %c0_i32, %c0_i32_0 : i32, i32
  }
  func.func @transform_9(%arg0: i32) -> (i32, i32) {
    %c0_i32 = arith.constant 0 : i32
    %c0_i32_0 = arith.constant 0 : i32
    %c0_i32_1 = arith.constant 0 : i32
    return %c0_i32, %c0_i32_0 : i32, i32
  }
  func.func @transform_10(%arg0: i32) -> (i32, i32) {
    %c0_i32 = arith.constant 0 : i32
    %c0_i32_0 = arith.constant 0 : i32
    %c0_i32_1 = arith.constant 0 : i32
    return %c0_i32, %c0_i32_0 : i32, i32
  }
  func.func @transform_11(%arg0: i32) -> (i32, i32) {
    %c0_i32 = arith.constant 0 : i32
    %c0_i32_0 = arith.constant 0 : i32
    %c0_i32_1 = arith.constant 0 : i32
    return %c0_i32, %c0_i32_0 : i32, i32
  }
  func.func @transform_12(%arg0: i32) -> (i32, i32) {
    %c0_i32 = arith.constant 0 : i32
    %c0_i32_0 = arith.constant 0 : i32
    %c0_i32_1 = arith.constant 0 : i32
    return %c0_i32, %c0_i32_0 : i32, i32
  }
  func.func @transform_13(%arg0: i32) -> (i32, i32) {
    %c0_i32 = arith.constant 0 : i32
    %c0_i32_0 = arith.constant 0 : i32
    %c0_i32_1 = arith.constant 0 : i32
    return %c0_i32, %c0_i32_0 : i32, i32
  }
  func.func @transform_14(%arg0: i32) -> (i32, i32) {
    %c0_i32 = arith.constant 0 : i32
    %c0_i32_0 = arith.constant 0 : i32
    %c0_i32_1 = arith.constant 0 : i32
    return %c0_i32, %c0_i32_0 : i32, i32
  }
  func.func @transform_15(%arg0: i32) -> (i32, i32) {
    %c0_i32 = arith.constant 0 : i32
    %c0_i32_0 = arith.constant 0 : i32
    %c0_i32_1 = arith.constant 0 : i32
    return %c0_i32, %c0_i32_0 : i32, i32
  }
  func.func @transform_16(%arg0: i32) -> (i32, i32) {
    %c0_i32 = arith.constant 0 : i32
    %c0_i32_0 = arith.constant 0 : i32
    %c0_i32_1 = arith.constant 0 : i32
    return %c0_i32, %c0_i32_0 : i32, i32
  }
  func.func @transform_17(%arg0: i32) -> (i32, i32) {
    %c0_i32 = arith.constant 0 : i32
    %c0_i32_0 = arith.constant 0 : i32
    %c0_i32_1 = arith.constant 0 : i32
    return %c0_i32, %c0_i32_0 : i32, i32
  }
  func.func @transform_18(%arg0: i32) -> (i32, i32) {
    %c0_i32 = arith.constant 0 : i32
    %c0_i32_0 = arith.constant 0 : i32
    %c0_i32_1 = arith.constant 0 : i32
    return %c0_i32, %c0_i32_0 : i32, i32
  }
  func.func @transform_19(%arg0: i32) -> (i32, i32) {
    %c0_i32 = arith.constant 0 : i32
    %c0_i32_0 = arith.constant 0 : i32
    return %arg0, %c0_i32 : i32, i32
  }
}

</mosaic_0001>

<bundles_post_ra>
// kernel: tpu_custom_call.1
= control target key start
LH: loop header
LB: loop body
LE: loop exit
PB: predicated region body
PF: predicated region fallthrough
CT: control target
= control target key end

     0   :  { %s8067_s0 = inlined_call_operand.vmem [shape: f32[512,32], index: 0, kind: input, shape index: {}]   ;;  %s8068_s1 = inlined_call_operand.vmem [shape: bf16[32,32], index: 1, kind: input, shape index: {}]   ;;  %s8069_s2 = inlined_call_operand.vmem [shape: f32[1,32], index: 2, kind: input, shape index: {}]   ;;  %s8070_s3 = inlined_call_operand.vmem [shape: bf16[32,256], index: 3, kind: input, shape index: {}]   ;;  %s8071_s4 = inlined_call_operand.vmem [shape: f32[1,256], index: 4, kind: input, shape index: {}]   ;;  %s8072_s5 = inlined_call_operand.vmem [shape: bf16[256,32], index: 5, kind: input, shape index: {}]   ;;  %s8073_s6 = inlined_call_operand.vmem [shape: f32[1,32], index: 6, kind: input, shape index: {}]   ;;  %s8074_s7 = inlined_call_operand.vmem [shape: bf16[32,64], index: 7, kind: input, shape index: {}]   ;;  %s8075_s8 = inlined_call_operand.vmem [shape: f32[1,64], index: 8, kind: input, shape index: {}]   ;;  %s8076_s9 = inlined_call_operand.vmem [shape: bf16[64,32], index: 9, kind: input, shape index: {}]   ;;  %s8077_s10 = inlined_call_operand.vmem [shape: f32[1,32], index: 10, kind: input, shape index: {}]   ;;  %s8078_s11 = inlined_call_operand.vmem [shape: bf16[32,4], index: 11, kind: input, shape index: {}]   ;;  %s8079_s12 = inlined_call_operand.vmem [shape: f32[1,4], index: 12, kind: input, shape index: {}]   ;;  %s8080_s13 = inlined_call_operand.vmem [shape: bf16[32,16], index: 13, kind: input, shape index: {}]   ;;  %s8081_s14 = inlined_call_operand.vmem [shape: f32[1,16], index: 14, kind: input, shape index: {}]   ;;  %s8082_s15 = inlined_call_operand.vmem [shape: bf16[16,128], index: 15, kind: input, shape index: {}]   ;;  %s8083_s16 = inlined_call_operand.vmem [shape: f32[1,128], index: 16, kind: input, shape index: {}]   ;;  %s8084_s17 = inlined_call_operand.vmem [shape: f32[32,4], index: 17, kind: input, shape index: {}]   ;;  %s8085_s18 = inlined_call_operand.vmem [shape: f32[4,32], index: 18, kind: input, shape index: {}]   ;;  %s8086_s19 = inlined_call_operand.hbm [shape: f32[512,128], index: 19, kind: output, shape index: {}]  }
   0x1   :  { %8116 = sst [smem:[#allocation11_spill]] %s8067_s0 }
   0x2   :  { %8117 = sst [smem:[#allocation12_spill]] %s8068_s1 }
   0x3   :  { %8118 = sst [smem:[#allocation13_spill]] %s8069_s2 }
   0x4   :  { %8119 = sst [smem:[#allocation14_spill]] %s8070_s3 }
   0x5   :  { %24 = vsyncpa [#allocation3], 0 }
   0x6   :  { %26 = vsyncpa [#allocation3 + $0x1], 0  ;;  %s6335_s0 = smov 0   ;;  %s6337_s30 = smov 0  }
   0x7   :  { %s6339_s20 = smov 0   ;;  %s6341_s21 = smov 0  }
   0x8 LB: > { %8120 = sst [smem:[#allocation5_spill]] %s6217_s0  ;;  %s6356_s1 = sadd.s32 4294967295, %s6229_s21   ;;  %s6229_s21 = sphi %s6341_s21, %s8155_s21   ;;  %s6225_s20 = sphi %s6339_s20, %s8157_s20   ;;  %s6221_s30 = sphi %s6337_s30, %s8159_s30   ;;  %s6217_s0 = sphi %s6335_s0, %s8158_s0  }
   0x9   : > { %8121 = sst [smem:[#allocation6_spill]] %s6225_s20  ;;  %s4798_s22 = sadd.s32 4294967294, %s6229_s21  }
   0xa   : > { %8122 = sst [smem:[#allocation7_spill]] %s6229_s21  ;;  %s6360_s2 = sadd.s32 1, %s6229_s21  }
   0xb   : > { %8123 = sst [smem:[#allocation8_spill]] %s6360_s2  ;;  %s443_s23 = sadd.s32 1, %s6225_s20 }
   0xc   : > { %s440_s24 = ssub.s32 %s6229_s21, %s6360_s2  ;;  %p453_p0 = scmp.ne.s32.totalorder %s6225_s20, %s6221_s30 }
   0xd   : > { %p441_p1 = scmp.eq.s32.totalorder %s440_s24, 0  ;;  %p454_p2 = scmp.eq.s32.totalorder %s6356_s1, 1 }
   0xe   : > { %p459_p3 = scmp.ne.s32.totalorder %s6221_s30, %s6217_s0  ;;  %p460_p4 = scmp.eq.s32.totalorder %s4798_s22, 1 }
   0xf   : > { %s6371_s25 = scalar_select %p441_p1, %s6225_s20, %s443_s23  }
  0x10   : > { %p6373_p5 = por %p454_p2, %p453_p0  ;;  %p6377_p6 = por %p460_p4, %p459_p3 }
  0x11   : > { %8124 = sst [smem:[#allocation9_spill]] %s6371_s25  ;;  %p4801_p7 = scmp.ge.s32.totalorder %s6229_s21, 1 }
  0x12   : > { %s8126_s26 = scalar_select %p6377_p6, 1, 0 }
  0x13   : > { %p541_p8 = scmp.lt.s32.totalorder %s6229_s21, 3 }
  0x14   : > { %8127 = sst [smem:[#allocation10_spill]] %s8126_s26 }
  0x15   : > { %p542_p9 = pnand %p4801_p7, %p541_p8 }
  0x16   : > { %s8128_s29 = sld [smem:[#allocation12_spill]] (!%p542_p9)  ;;  %s4803_s22 = sshll.u32 (!%p542_p9), %s6356_s1, 5  ;;  %vm676_vm0 = vcmask (!%p542_p9), 261120   ;;  %v6231_v54 = vmov (!%p542_p9), 0   ;;  %v5820_v61 = vld [vmem:[%s8072_s5 + $0x40] sm:$0xff] (!%p542_p9)   ;;  %v5822_v63 = vld [vmem:[%s8072_s5 + $0x48] sm:$0xff] (!%p542_p9)  }
  0x17   : > { %545 = sbr.rel (%p542_p9) target bundleno = 3077 (0xc05), region = 96  ;;  %p598_p10 = scmp.lt.s32.totalorder (!%p542_p9), %s4803_s22, 63  ;;  %v5821_v62 = vld [vmem:[%s8072_s5] sm:$0xff] (!%p542_p9)   ;;  %vm2250_vm1 = vcmask (!%p542_p9), 1043456   ;;  %vm2153_vm2 = vcmask (!%p542_p9), 31744   ;;  %vm2910_vm3 = vcmask (!%p542_p9), 523264  }
  0x18   : > { %s8129_s2 = sld [smem:[#allocation14_spill]] (!%p542_p9)  ;;  %s8130_s0 = sld [smem:[#allocation11_spill]] (!%p542_p9)  ;;  %vm4448_vm4 = vcmask (!%p542_p9), 130048  }
  0x19   : > { %s8131_s28 = sld [smem:[#allocation13_spill]] (!%p542_p9)  ;;  %s6232_s23 = smov (!%p542_p9), [#allocation2]  }
  0x1c   : > { %v5812_v0 = vld [vmem:[%s8128_s29] sm:$0xff] (!%p542_p9)   ;;  %v5813_v1 = vld [vmem:[%s8128_s29 + $0x8] sm:$0xff] (!%p542_p9)  }
  0x1d   : > { %5384 = vmatprep.subr.bf16.mxu0 (!%p542_p9), %v5812_v0  ;;  %5766 = vmatprep.subr.bf16.mxu1 (!%p542_p9), %v5812_v0 }
  0x1e   : > { %5385 = vmatpush3.bf16.msra.mxu0 %v5812_v0  ;;  %s8161_s22 = smov (!%p598_p10, %s4803_s22), 63  ;;  %5768 = vmatpush3.bf16.msra.mxu1 %v5812_v0  ;;  %v5816_v2 = vld [vmem:[%s8129_s2 + $0x4] ss:$8 sps:$4 sm:$0xff]   ;;  %v5814_v15 = vld [vmem:[%s8129_s2] ss:$8 sps:$4 sm:$0xff]  }
  0x1f   : > { %5386 = vmatprep.subr.bf16.mxu0 %v5813_v1  ;;  %5767 = vmatprep.subr.bf16.mxu1 %v5813_v1  ;;  %s4804_s27 = sshll.u32 %s8161_s22, 3  ;;  %v5819_v25 = vld [vmem:[%s8129_s2 + $0x14] ss:$8 sps:$4 sm:$0xff]   ;;  %v5817_v31 = vld [vmem:[%s8129_s2 + $0x10] ss:$8 sps:$4 sm:$0xff]  }
  0x20   : > { %s6396_s21 = scalar_lea.vmem %s8130_s0, %s4804_s27  ;;  %v6459_v55 = vld [vmem:[%s8131_s28] ss:$0 sm:$0xff]  ;;  %s5060_s28 = sshll.u32 %s6356_s1, 12 }
  0x21   : > { %v605_v3 = vld [vmem:[%s6396_s21] sm:$0xff]  ;;  %v606_v4 = vld [vmem:[%s6396_s21 + $0x8] sm:$0xff]  ;;  %v607_v5 = vld [vmem:[%s6396_s21 + $0x10] sm:$0xff]  ;;  %s8017_s26 = scalar_lea.hbm %s8086_s19, %s5060_s28 }
  0x22   : > { %5387 = vmatpush3.bf16.msra.mxu0 %v5813_v1  ;;  %5769 = vmatpush3.bf16.msra.mxu1 %v5813_v1  ;;  %v637_v6 = vpack.c.bf16 %v606_v4, %v605_v3  ;;  %v608_v7 = vld [vmem:[%s6396_s21 + $0x18] sm:$0xff]  ;;  %v609_v8 = vld [vmem:[%s6396_s21 + $0x20] sm:$0xff]  ;;  %v610_v9 = vld [vmem:[%s6396_s21 + $0x28] sm:$0xff] }
  0x23   : > { %1018 = vmatprep.subr.bf16.mxu1 %v5816_v2  ;;  %v638_v10 = vpack.c.bf16 %v608_v7, %v607_v5  ;;  %v639_v11 = vpack.c.bf16 %v610_v9, %v609_v8  ;;  %v611_v12 = vld [vmem:[%s6396_s21 + $0x30] sm:$0xff]  ;;  %v612_v13 = vld [vmem:[%s6396_s21 + $0x38] sm:$0xff]  ;;  %v613_v14 = vld [vmem:[%s6396_s21 + $0x40] sm:$0xff]  ;;  %5079 = vmatprep.subr.bf16.mxu0 %v5820_v61 }
  0x24   : > { %5388 = vmatprep.mubr.msk.bf16.mxu0 %vm676_vm0, %v637_v6  ;;  %v614_v16 = vld [vmem:[%s6396_s21 + $0x48] sm:$0xff]  ;;  %v621_v17 = vld [vmem:[%s6396_s21 + $0x80] sm:$0xff]  ;;  %v623_v20 = vld [vmem:[%s6396_s21 + $0x90] sm:$0xff]  ;;  %v640_v26 = vpack.c.bf16 %v612_v13, %v611_v12 }
  0x25   : > { %5389 = vmatmul.mubr.msk.bf16.vlgmr.msra.gmra.mrb[0].mxu0 %vm676_vm0, %v638_v10  ;;  %v622_v18 = vld [vmem:[%s6396_s21 + $0x88] sm:$0xff]  ;;  %v624_v21 = vld [vmem:[%s6396_s21 + $0x98] sm:$0xff]  ;;  %v625_v22 = vld [vmem:[%s6396_s21 + $0xa0] sm:$0xff]  ;;  %v641_v28 = vpack.c.bf16 %v614_v16, %v613_v14 }
  0x26   : > { %5392 = vmatprep.mubr.msk.bf16.mxu0 %vm676_vm0, %v639_v11  ;;  %v645_v19 = vpack.c.bf16 %v622_v18, %v621_v17  ;;  %v646_v23 = vpack.c.bf16 %v624_v21, %v623_v20  ;;  %v626_v24 = vld [vmem:[%s6396_s21 + $0xa8] sm:$0xff]  ;;  %v627_v29 = vld [vmem:[%s6396_s21 + $0xb0] sm:$0xff]  ;;  %v628_v30 = vld [vmem:[%s6396_s21 + $0xb8] sm:$0xff]  ;;  %5080 = vmatpush3.bf16.msra.mxu0 %v5821_v62 }
  0x27   : > { %v647_v27 = vpack.c.bf16 %v626_v24, %v625_v22  ;;  %v629_v32 = vld [vmem:[%s6396_s21 + $0xc0] sm:$0xff]  ;;  %v630_v33 = vld [vmem:[%s6396_s21 + $0xc8] sm:$0xff]  ;;  %v615_v34 = vld [vmem:[%s6396_s21 + $0x50] sm:$0xff]  ;;  %v648_v38 = vpack.c.bf16 %v628_v30, %v627_v29  ;;  %5081 = vmatprep.subr.bf16.mxu0 %v5822_v63 }
  0x28   : > { %5404 = vmatprep.mubr.msk.bf16.mxu1 %vm676_vm0, %v645_v19  ;;  %v616_v35 = vld [vmem:[%s6396_s21 + $0x58] sm:$0xff]  ;;  %v617_v36 = vld [vmem:[%s6396_s21 + $0x60] sm:$0xff]  ;;  %v618_v37 = vld [vmem:[%s6396_s21 + $0x68] sm:$0xff]  ;;  %v649_v39 = vpack.c.bf16 %v630_v33, %v629_v32 }
  0x29   : > { %5405 = vmatmul.mubr.msk.bf16.vlgmr.msra.gmra.mrb[0].mxu1 %vm676_vm0, %v646_v23  ;;  %v642_v40 = vpack.c.bf16 %v616_v35, %v615_v34  ;;  %v631_v41 = vld [vmem:[%s6396_s21 + $0xd0] sm:$0xff]  ;;  %v632_v42 = vld [vmem:[%s6396_s21 + $0xd8] sm:$0xff]  ;;  %v643_v43 = vpack.c.bf16 %v618_v37, %v617_v36  ;;  %v633_v44 = vld [vmem:[%s6396_s21 + $0xe0] sm:$0xff] }
  0x2a   : > { %5408 = vmatprep.mubr.msk.bf16.mxu1 %vm676_vm0, %v647_v27  ;;  %1019 = vmatpush1.bf16.msra.mxu1 %v5814_v15  ;;  %v634_v45 = vld [vmem:[%s6396_s21 + $0xe8] sm:$0xff]  ;;  %v619_v46 = vld [vmem:[%s6396_s21 + $0x70] sm:$0xff]  ;;  %v620_v47 = vld [vmem:[%s6396_s21 + $0x78] sm:$0xff]  ;;  %v650_v48 = vpack.c.bf16 %v632_v42, %v631_v41 }
  0x2b   : > { %1020 = vmatprep.subr.bf16.mxu1 %v5819_v25  ;;  %v651_v49 = vpack.c.bf16 %v634_v45, %v633_v44  ;;  %v644_v50 = vpack.c.bf16 %v620_v47, %v619_v46  ;;  %v635_v51 = vld [vmem:[%s6396_s21 + $0xf0] sm:$0xff]  ;;  %v636_v52 = vld [vmem:[%s6396_s21 + $0xf8] sm:$0xff]  ;;  %v5823_v6 = vld [vmem:[%s8072_s5 + $0x8] sm:$0xff]  }
  0x2c   : > { %v652_v53 = vpack.c.bf16 %v636_v52, %v635_v51  ;;  %v5824_v11 = vld [vmem:[%s8072_s5 + $0x50] sm:$0xff]   ;;  %5082 = vmatpush3.bf16.msra.mxu0 %v5823_v6  ;;  %v5830_v62 = vld [vmem:[%s8072_s5 + $0x68] sm:$0xff]  }
  0x2d   : > { %5393 = vmatmul.mubr.msk.bf16.gmra.mrb[4].mxu0 %vm676_vm0, %v640_v26  ;;  %v5825_v24 = vld [vmem:[%s8072_s5 + $0x10] sm:$0xff]   ;;  %5083 = vmatprep.subr.bf16.mxu0 %v5824_v11 }
  0x2e   : > { %5396 = vmatprep.mubr.msk.bf16.mxu0 %vm676_vm0, %v641_v28  ;;  %1021 = vmatpush1.bf16.msra.mxu1 %v5817_v31  ;;  %v5826_v28 = vld [vmem:[%s8072_s5 + $0x58] sm:$0xff]  }
  0x30   : > { %5084 = vmatpush3.bf16.msra.mxu0 %v5825_v24 }
  0x31   : > { %5409 = vmatmul.mubr.msk.bf16.gmra.mrb[4].mxu1 %vm676_vm0, %v648_v38  ;;  %5085 = vmatprep.subr.bf16.mxu0 %v5826_v28 }
  0x32   : > { %5412 = vmatprep.mubr.msk.bf16.mxu1 %vm676_vm0, %v649_v39  ;;  %v5827_v39 = vld [vmem:[%s8072_s5 + $0x18] sm:$0xff]  }
  0x34   : > { %5086 = vmatpush3.bf16.msra.mxu0 %v5827_v39 }
  0x35   : > { %5397 = vmatmul.mubr.msk.bf16.gmra.mrb[8].mxu0 %vm676_vm0, %v642_v40 }
  0x36   : > { %5400 = vmatprep.mubr.msk.bf16.mxu0 %vm676_vm0, %v643_v43  ;;  %v5828_v43 = vld [vmem:[%s8072_s5 + $0x60] sm:$0xff]  }
  0x37   : > { %5087 = vmatprep.subr.bf16.mxu0 %v5828_v43 }
  0x39   : > { %5413 = vmatmul.mubr.msk.bf16.gmra.mrb[8].mxu1 %vm676_vm0, %v650_v48 }
  0x3a   : > { %5416 = vmatprep.mubr.msk.bf16.mxu1 %vm676_vm0, %v651_v49 }
  0x3d   : > { %5401 = vmatmul.mubr.msk.bf16.gmra.mrb[12].mxu0 %vm676_vm0, %v644_v50 }
  0x41   : > { %5417 = vmatmul.mubr.msk.bf16.gmra.mrb[12].mxu1 %vm676_vm0, %v652_v53 }
  0x42   : > { %1050 = vmatprep.mubr.bf16.mxu1 %v6231_v54 }
  0xf8   : > { %v5390_v56 = vpop.f32.mrb[0].mxu0 }
  0xf9   : > { %v768_v57 = vadd.f32 %v5390_v56, %v6459_v55  ;;  %v759_v58 = vpop.f32.mrb[1].mxu0 }
  0xfa   : > { %v760_v59 = vadd.f32 %v6459_v55, %v759_v58  ;;  %v5391_v60 = vpop.f32.mrb[2].mxu0  ;;  %v5829_v58 = vld [vmem:[%s8072_s5 + $0x20] sm:$0xff]  }
  0xfb   : > { %v771_v0 = vadd.f32 %v5391_v60, %v6459_v55  ;;  %v762_v1 = vpop.f32.mrb[3].mxu0  ;;  %v888_v3 = vmax.f32 %v768_v57, 0.0  ;;  %5088 = vmatpush3.bf16.msra.mxu0 %v5829_v58 }
  0xfc   : > { %v763_v2 = vadd.f32 %v6459_v55, %v762_v1  ;;  %v5406_v5 = vpop.f32.mrb[0].mxu1  ;;  %v886_v7 = vmax.f32 %v760_v59, 0.0  ;;  %5089 = vmatprep.subr.bf16.mxu0 %v5830_v62  ;;  %v938_v62 = vld [vmem:[%s8071_s4] sm:$0x3] }
  0xfd   : > { %v889_v4 = vmax.f32 %v771_v0, 0.0  ;;  %v832_v9 = vadd.f32 %v5406_v5, %v6459_v55  ;;  %v823_v10 = vpop.f32.mrb[1].mxu1 }
  0xfe   : > { %v887_v8 = vmax.f32 %v763_v2, 0.0  ;;  %v824_v13 = vadd.f32 %v6459_v55, %v823_v10  ;;  %v5407_v14 = vpop.f32.mrb[2].mxu1 }
  0xff   : > { %v919_v12 = vpack.c.bf16 %v889_v4, %v888_v3  ;;  %v904_v17 = vmax.f32 %v832_v9, 0.0  ;;  %v835_v18 = vadd.f32 %v5407_v14, %v6459_v55  ;;  %v826_v19 = vpop.f32.mrb[3].mxu1  ;;  %v5831_v9 = vld [vmem:[%s8072_s5 + $0x28] sm:$0xff]  }
 0x100   : > { %v918_v15 = vpack.c.bf16 %v887_v8, %v886_v7  ;;  %v5394_v16 = vpop.f32.mrb[4].mxu0  ;;  %v902_v22 = vmax.f32 %v824_v13, 0.0  ;;  %v827_v23 = vadd.f32 %v6459_v55, %v826_v19  ;;  %5090 = vmatpush3.bf16.msra.mxu0 %v5831_v9 }
 0x101   : > { %v784_v20 = vadd.f32 %v5394_v16, %v6459_v55  ;;  %v775_v21 = vpop.f32.mrb[5].mxu0  ;;  %v905_v27 = vmax.f32 %v835_v18, 0.0 }
 0x102   : > { %4828 = vmatmul.mubr.msk.bf16.vlgmr.msra.gmra.mrb[16].mxu1 %vm676_vm0, %v918_v15  ;;  %v776_v25 = vadd.f32 %v6459_v55, %v775_v21  ;;  %v5395_v26 = vpop.f32.mrb[6].mxu0  ;;  %v903_v32 = vmax.f32 %v827_v23, 0.0 }
 0x103   : > { %v892_v29 = vmax.f32 %v784_v20, 0.0  ;;  %v787_v30 = vadd.f32 %v5395_v26, %v6459_v55  ;;  %v778_v31 = vpop.f32.mrb[7].mxu0  ;;  %1060 = vmatprep.mubr.bf16.mxu1 %v6231_v54  ;;  %v6496_v35 = vpack.c.bf16 %v905_v27, %v904_v17 }
 0x104   : > { %v890_v33 = vmax.f32 %v776_v25, 0.0  ;;  %v779_v34 = vadd.f32 %v6459_v55, %v778_v31  ;;  %v6498_v37 = vpack.c.bf16 %v903_v32, %v902_v22  ;;  %v5410_v38 = vpop.f32.mrb[4].mxu1 }
 0x105   : > { %v893_v36 = vmax.f32 %v787_v30, 0.0  ;;  %v848_v41 = vadd.f32 %v5410_v38, %v6459_v55  ;;  %v839_v42 = vpop.f32.mrb[5].mxu1 }
 0x106   : > { %v891_v40 = vmax.f32 %v779_v34, 0.0  ;;  %v840_v45 = vadd.f32 %v6459_v55, %v839_v42  ;;  %v5411_v46 = vpop.f32.mrb[6].mxu1 }
 0x107   : > { %v6507_v44 = vpack.c.bf16 %v893_v36, %v892_v29  ;;  %v908_v49 = vmax.f32 %v848_v41, 0.0  ;;  %v851_v50 = vadd.f32 %v5411_v46, %v6459_v55  ;;  %v842_v51 = vpop.f32.mrb[7].mxu1 }
 0x108   : > { %v920_v47 = vpack.c.bf16 %v891_v40, %v890_v33  ;;  %v5398_v48 = vpop.f32.mrb[8].mxu0  ;;  %v906_v56 = vmax.f32 %v840_v45, 0.0  ;;  %v843_v57 = vadd.f32 %v6459_v55, %v842_v51 }
 0x109   : > { %v800_v52 = vadd.f32 %v5398_v48, %v6459_v55  ;;  %v791_v53 = vpop.f32.mrb[9].mxu0  ;;  %v909_v61 = vmax.f32 %v851_v50, 0.0 }
 0x10a   : > { %4829 = vmatmul.mubr.msk.bf16.gmra.mrb[20].mxu1 %vm676_vm0, %v919_v12  ;;  %v792_v59 = vadd.f32 %v6459_v55, %v791_v53  ;;  %v5399_v60 = vpop.f32.mrb[10].mxu0  ;;  %v907_v2 = vmax.f32 %v843_v57, 0.0 }
 0x10b   : > { %1070 = vmatprep.mubr.bf16.mxu1 %v6231_v54  ;;  %v896_v63 = vmax.f32 %v800_v52, 0.0  ;;  %v803_v0 = vadd.f32 %v5399_v60, %v6459_v55  ;;  %v794_v1 = vpop.f32.mrb[11].mxu0  ;;  %v6524_v5 = vpack.c.bf16 %v909_v61, %v908_v49 }
 0x10c   : > { %v894_v3 = vmax.f32 %v792_v59, 0.0  ;;  %v795_v4 = vadd.f32 %v6459_v55, %v794_v1  ;;  %v6526_v7 = vpack.c.bf16 %v907_v2, %v906_v56  ;;  %v5414_v8 = vpop.f32.mrb[8].mxu1  ;;  %v940_v59 = vlaneseq }
 0x10d   : > { %v897_v6 = vmax.f32 %v803_v0, 0.0  ;;  %v864_v11 = vadd.f32 %v5414_v8, %v6459_v55  ;;  %v855_v12 = vpop.f32.mrb[9].mxu1 }
 0x10e   : > { %v895_v10 = vmax.f32 %v795_v4, 0.0  ;;  %v856_v14 = vadd.f32 %v6459_v55, %v855_v12  ;;  %v5415_v15 = vpop.f32.mrb[10].mxu1  ;;  %v941_v60 = vshrl.u32 %v940_v59, 7 }
 0x10f   : > { %v923_v13 = vpack.c.bf16 %v897_v6, %v896_v63  ;;  %v912_v18 = vmax.f32 %v864_v11, 0.0  ;;  %v867_v19 = vadd.f32 %v5415_v15, %v6459_v55  ;;  %v858_v20 = vpop.f32.mrb[11].mxu1 }
 0x110   : > { %v922_v16 = vpack.c.bf16 %v895_v10, %v894_v3  ;;  %v5402_v17 = vpop.f32.mrb[12].mxu0  ;;  %v910_v23 = vmax.f32 %v856_v14, 0.0  ;;  %v859_v24 = vadd.f32 %v6459_v55, %v858_v20  ;;  %v942_v61 = vsub.s32 0, %v941_v60 }
 0x111   : > { %v816_v21 = vadd.f32 %v5402_v17, %v6459_v55  ;;  %v807_v22 = vpop.f32.mrb[13].mxu0  ;;  %v913_v27 = vmax.f32 %v867_v19, 0.0  ;;  %v946_v63 = vsub.s32 1, %v941_v60 }
 0x112   : > { %4830 = vmatmul.mubr.msk.bf16.gmra.mrb[24].mxu1 %vm676_vm0, %v920_v47  ;;  %v808_v25 = vadd.f32 %v6459_v55, %v807_v22  ;;  %v5403_v26 = vpop.f32.mrb[14].mxu0  ;;  %v911_v31 = vmax.f32 %v859_v24, 0.0  ;;  %v6590_v0 = vrot.slane %v938_v62, %v942_v61 }
 0x113   : > { %1080 = vmatprep.mubr.bf16.mxu1 %v6231_v54  ;;  %v900_v28 = vmax.f32 %v816_v21, 0.0  ;;  %v819_v29 = vadd.f32 %v5403_v26, %v6459_v55  ;;  %v810_v30 = vpop.f32.mrb[15].mxu0  ;;  %v931_v34 = vpack.c.bf16 %v913_v27, %v912_v18  ;;  %v6592_v1 = vrot.slane %v938_v62, %v946_v63 }
 0x114   : > { %v898_v32 = vmax.f32 %v808_v25, 0.0  ;;  %v811_v33 = vadd.f32 %v6459_v55, %v810_v30  ;;  %v930_v38 = vpack.c.bf16 %v911_v31, %v910_v23  ;;  %v5418_v39 = vpop.f32.mrb[12].mxu1 }
 0x115   : > { %v901_v36 = vmax.f32 %v819_v29, 0.0  ;;  %v880_v41 = vadd.f32 %v5418_v39, %v6459_v55  ;;  %v871_v42 = vpop.f32.mrb[13].mxu1 }
 0x116   : > { %v899_v40 = vmax.f32 %v811_v33, 0.0  ;;  %v872_v45 = vadd.f32 %v6459_v55, %v871_v42  ;;  %v5419_v46 = vpop.f32.mrb[14].mxu1 }
 0x117   : > { %v925_v43 = vpack.c.bf16 %v901_v36, %v900_v28  ;;  %v916_v48 = vmax.f32 %v880_v41, 0.0  ;;  %v883_v49 = vadd.f32 %v5419_v46, %v6459_v55  ;;  %v874_v50 = vpop.f32.mrb[15].mxu1 }
 0x118   : > { %v924_v47 = vpack.c.bf16 %v899_v40, %v898_v32  ;;  %v914_v51 = vmax.f32 %v872_v45, 0.0  ;;  %v875_v52 = vadd.f32 %v6459_v55, %v874_v50  ;;  %v5832_v55 = vld [vmem:[%s8072_s5 + $0x70] sm:$0xff]  }
 0x119   : > { %v917_v53 = vmax.f32 %v883_v49, 0.0  ;;  %5091 = vmatprep.subr.bf16.mxu0 %v5832_v55 }
 0x11a   : > { %4831 = vmatmul.mubr.msk.bf16.gmra.mrb[28].mxu1 %vm676_vm0, %v6507_v44  ;;  %v915_v56 = vmax.f32 %v875_v52, 0.0  ;;  %v5835_v44 = vld [vmem:[%s8072_s5 + $0x38] sm:$0xff]  }
 0x11b   : > { %1090 = vmatprep.mubr.bf16.mxu1 %v6231_v54  ;;  %v933_v57 = vpack.c.bf16 %v917_v53, %v916_v48 }
 0x11c   : > { %v932_v58 = vpack.c.bf16 %v915_v56, %v914_v51 }
 0x122   : > { %4832 = vmatmul.mubr.msk.bf16.gmra.mrb[32].mxu1 %vm676_vm0, %v922_v16 }
 0x123   : > { %1100 = vmatprep.mubr.bf16.mxu1 %v6231_v54 }
 0x12a   : > { %4833 = vmatmul.mubr.msk.bf16.gmra.mrb[36].mxu1 %vm676_vm0, %v923_v13 }
 0x12b   : > { %1110 = vmatprep.mubr.bf16.mxu1 %v6231_v54 }
 0x132   : > { %4834 = vmatmul.mubr.msk.bf16.gmra.mrb[40].mxu1 %vm676_vm0, %v924_v47 }
 0x133   : > { %1120 = vmatprep.mubr.bf16.mxu1 %v6231_v54 }
 0x13a   : > { %4835 = vmatmul.mubr.msk.bf16.gmra.mrb[44].mxu1 %vm676_vm0, %v925_v43 }
 0x13b   : > { %1130 = vmatprep.mubr.bf16.mxu1 %v6231_v54 }
 0x142   : > { %4836 = vmatmul.mubr.msk.bf16.gmra.mrb[48].mxu1 %vm676_vm0, %v6498_v37  ;;  %v5833_v37 = vld [vmem:[%s8072_s5 + $0x30] sm:$0xff]  }
 0x143   : > { %1140 = vmatprep.mubr.bf16.mxu1 %v6231_v54  ;;  %5092 = vmatpush3.bf16.msra.mxu0 %v5833_v37 }
 0x14a   : > { %4837 = vmatmul.mubr.msk.bf16.gmra.mrb[52].mxu1 %vm676_vm0, %v6496_v35  ;;  %v5834_v35 = vld [vmem:[%s8072_s5 + $0x78] sm:$0xff]  }
 0x14b   : > { %1150 = vmatprep.mubr.bf16.mxu1 %v6231_v54  ;;  %5093 = vmatprep.subr.bf16.mxu0 %v5834_v35 }
 0x14c   : > { %5094 = vmatpush3.bf16.msra.mxu0 %v5835_v44 }
 0x152   : > { %4838 = vmatmul.mubr.msk.bf16.gmra.mrb[56].mxu1 %vm676_vm0, %v6526_v7 }
 0x153   : > { %1160 = vmatprep.mubr.bf16.mxu1 %v6231_v54 }
 0x15a   : > { %4839 = vmatmul.mubr.msk.bf16.gmra.mrb[60].mxu1 %vm676_vm0, %v6524_v5 }
 0x15b   : > { %1170 = vmatprep.mubr.bf16.mxu1 %v6231_v54 }
 0x162   : > { %4840 = vmatmul.mubr.msk.bf16.gmra.mrb[64].mxu1 %vm676_vm0, %v930_v38 }
 0x163   : > { %1180 = vmatprep.mubr.bf16.mxu1 %v6231_v54 }
 0x16a   : > { %4841 = vmatmul.mubr.msk.bf16.gmra.mrb[68].mxu1 %vm676_vm0, %v931_v34 }
 0x16b   : > { %1190 = vmatprep.mubr.bf16.mxu1 %v6231_v54 }
 0x172   : > { %4842 = vmatmul.mubr.msk.bf16.gmra.mrb[72].mxu1 %vm676_vm0, %v932_v58 }
 0x173   : > { %1200 = vmatprep.mubr.bf16.mxu1 %v6231_v54 }
 0x17a   : > { %4843 = vmatmul.mubr.msk.bf16.gmra.mrb[76].mxu1 %vm676_vm0, %v933_v57 }
 0x1d5   : > { %v1052_v2 = vpop.f32.mrb[16].mxu1 }
 0x1d6   : > { %v1053_v3 = vadd.f32 %v1052_v2, %v6590_v0  ;;  %v1054_v4 = vpop.f32.mrb[17].mxu1 }
 0x1d7   : > { %v1055_v54 = vadd.f32 %v1054_v4, %v6592_v1  ;;  %v1056_v5 = vpop.f32.mrb[18].mxu1 }
 0x1d8   : > { %v1057_v6 = vadd.f32 %v1056_v5, %v6590_v0  ;;  %v1058_v7 = vpop.f32.mrb[19].mxu1  ;;  %v1211_v9 = vmax.f32 %v1053_v3, 0.0 }
 0x1d9   : > { %v1059_v8 = vadd.f32 %v1058_v7, %v6592_v1  ;;  %v1212_v11 = vmax.f32 %v1055_v54, 0.0 }
 0x1da   : > { %v1213_v10 = vmax.f32 %v1057_v6, 0.0 }
 0x1db   : > { %v1214_v12 = vmax.f32 %v1059_v8, 0.0 }
 0x1dc   : > { %v1275_v13 = vpack.c.bf16 %v1213_v10, %v1211_v9 }
 0x1dd   : > { %v1276_v14 = vpack.c.bf16 %v1214_v12, %v1212_v11  ;;  %v1062_v15 = vpop.f32.mrb[20].mxu1 }
 0x1de   : > { %v1063_v16 = vadd.f32 %v1062_v15, %v6590_v0  ;;  %v1064_v17 = vpop.f32.mrb[21].mxu1 }
 0x1df   : > { %v1065_v18 = vadd.f32 %v1064_v17, %v6592_v1  ;;  %v1066_v19 = vpop.f32.mrb[22].mxu1  ;;  %1474 = vmatprep.mubr.bf16.mxu0 %v1276_v14 }
 0x1e0   : > { %v1067_v20 = vadd.f32 %v1066_v19, %v6590_v0  ;;  %v1068_v21 = vpop.f32.mrb[23].mxu1  ;;  %1475 = vmatmul.mubr.bf16.vlgmr.msra.gmra.mrb[16].mxu0 %v1275_v13  ;;  %v1215_v23 = vmax.f32 %v1063_v16, 0.0 }
 0x1e1   : > { %v1069_v22 = vadd.f32 %v1068_v21, %v6592_v1  ;;  %v1216_v25 = vmax.f32 %v1065_v18, 0.0 }
 0x1e2   : > { %v1217_v24 = vmax.f32 %v1067_v20, 0.0 }
 0x1e3   : > { %v1218_v26 = vmax.f32 %v1069_v22, 0.0 }
 0x1e4   : > { %v1277_v27 = vpack.c.bf16 %v1217_v24, %v1215_v23 }
 0x1e5   : > { %v1278_v28 = vpack.c.bf16 %v1218_v26, %v1216_v25  ;;  %v1072_v29 = vpop.f32.mrb[24].mxu1 }
 0x1e6   : > { %v1073_v30 = vadd.f32 %v1072_v29, %v6590_v0  ;;  %v1074_v31 = vpop.f32.mrb[25].mxu1 }
 0x1e7   : > { %v1075_v32 = vadd.f32 %v1074_v31, %v6592_v1  ;;  %v1076_v33 = vpop.f32.mrb[26].mxu1  ;;  %1482 = vmatprep.mubr.bf16.mxu0 %v1278_v28 }
 0x1e8   : > { %v1077_v34 = vadd.f32 %v1076_v33, %v6590_v0  ;;  %v1078_v36 = vpop.f32.mrb[27].mxu1  ;;  %1483 = vmatmul.mubr.bf16.gmra.mrb[20].mxu0 %v1277_v27  ;;  %v1219_v39 = vmax.f32 %v1073_v30, 0.0 }
 0x1e9   : > { %v1079_v38 = vadd.f32 %v1078_v36, %v6592_v1  ;;  %v1220_v41 = vmax.f32 %v1075_v32, 0.0 }
 0x1ea   : > { %v1221_v40 = vmax.f32 %v1077_v34, 0.0 }
 0x1eb   : > { %v1222_v42 = vmax.f32 %v1079_v38, 0.0 }
 0x1ec   : > { %v1279_v43 = vpack.c.bf16 %v1221_v40, %v1219_v39 }
 0x1ed   : > { %v1280_v45 = vpack.c.bf16 %v1222_v42, %v1220_v41  ;;  %v1082_v46 = vpop.f32.mrb[28].mxu1 }
 0x1ee   : > { %v1083_v47 = vadd.f32 %v1082_v46, %v6590_v0  ;;  %v1084_v48 = vpop.f32.mrb[29].mxu1 }
 0x1ef   : > { %v1085_v49 = vadd.f32 %v1084_v48, %v6592_v1  ;;  %v1086_v50 = vpop.f32.mrb[30].mxu1  ;;  %1490 = vmatprep.mubr.bf16.mxu0 %v1280_v45 }
 0x1f0   : > { %v1087_v51 = vadd.f32 %v1086_v50, %v6590_v0  ;;  %v1088_v52 = vpop.f32.mrb[31].mxu1  ;;  %1491 = vmatmul.mubr.bf16.gmra.mrb[24].mxu0 %v1279_v43  ;;  %v1223_v56 = vmax.f32 %v1083_v47, 0.0 }
 0x1f1   : > { %v1089_v53 = vadd.f32 %v1088_v52, %v6592_v1  ;;  %v1224_v58 = vmax.f32 %v1085_v49, 0.0 }
 0x1f2   : > { %v1225_v57 = vmax.f32 %v1087_v51, 0.0 }
 0x1f3   : > { %v1226_v55 = vmax.f32 %v1089_v53, 0.0 }
 0x1f4   : > { %v1281_v37 = vpack.c.bf16 %v1225_v57, %v1223_v56 }
 0x1f5   : > { %v1282_v35 = vpack.c.bf16 %v1226_v55, %v1224_v58  ;;  %v1092_v44 = vpop.f32.mrb[32].mxu1 }
 0x1f6   : > { %v1093_v59 = vadd.f32 %v1092_v44, %v6590_v0  ;;  %v1094_v60 = vpop.f32.mrb[33].mxu1 }
 0x1f7   : > { %v1095_v61 = vadd.f32 %v1094_v60, %v6592_v1  ;;  %v1096_v62 = vpop.f32.mrb[34].mxu1  ;;  %1498 = vmatprep.mubr.bf16.mxu0 %v1282_v35 }
 0x1f8   : > { %v1097_v63 = vadd.f32 %v1096_v62, %v6590_v0  ;;  %v1098_v2 = vpop.f32.mrb[35].mxu1  ;;  %1499 = vmatmul.mubr.bf16.gmra.mrb[28].mxu0 %v1281_v37  ;;  %v1227_v4 = vmax.f32 %v1093_v59, 0.0 }
 0x1f9   : > { %v1099_v3 = vadd.f32 %v1098_v2, %v6592_v1  ;;  %v1228_v5 = vmax.f32 %v1095_v61, 0.0 }
 0x1fa   : > { %v1229_v54 = vmax.f32 %v1097_v63, 0.0 }
 0x1fb   : > { %v1230_v6 = vmax.f32 %v1099_v3, 0.0 }
 0x1fc   : > { %v1283_v7 = vpack.c.bf16 %v1229_v54, %v1227_v4 }
 0x1fd   : > { %v1284_v8 = vpack.c.bf16 %v1230_v6, %v1228_v5  ;;  %v1102_v9 = vpop.f32.mrb[36].mxu1 }
 0x1fe   : > { %v1103_v10 = vadd.f32 %v1102_v9, %v6590_v0  ;;  %v1104_v11 = vpop.f32.mrb[37].mxu1 }
 0x1ff   : > { %v1105_v12 = vadd.f32 %v1104_v11, %v6592_v1  ;;  %v1106_v13 = vpop.f32.mrb[38].mxu1  ;;  %1506 = vmatprep.mubr.bf16.mxu0 %v1284_v8 }
 0x200   : > { %v1107_v14 = vadd.f32 %v1106_v13, %v6590_v0  ;;  %v1108_v15 = vpop.f32.mrb[39].mxu1  ;;  %1507 = vmatmul.mubr.bf16.gmra.mrb[32].mxu0 %v1283_v7  ;;  %v1231_v17 = vmax.f32 %v1103_v10, 0.0 }
 0x201   : > { %v1109_v16 = vadd.f32 %v1108_v15, %v6592_v1  ;;  %v1232_v19 = vmax.f32 %v1105_v12, 0.0 }
 0x202   : > { %v1233_v18 = vmax.f32 %v1107_v14, 0.0 }
 0x203   : > { %v1234_v20 = vmax.f32 %v1109_v16, 0.0 }
 0x204   : > { %v1285_v21 = vpack.c.bf16 %v1233_v18, %v1231_v17 }
 0x205   : > { %v1286_v22 = vpack.c.bf16 %v1234_v20, %v1232_v19  ;;  %v1112_v23 = vpop.f32.mrb[40].mxu1 }
 0x206   : > { %v1113_v24 = vadd.f32 %v1112_v23, %v6590_v0  ;;  %v1114_v25 = vpop.f32.mrb[41].mxu1 }
 0x207   : > { %v1115_v26 = vadd.f32 %v1114_v25, %v6592_v1  ;;  %v1116_v27 = vpop.f32.mrb[42].mxu1  ;;  %1514 = vmatprep.mubr.bf16.mxu0 %v1286_v22 }
 0x208   : > { %v1117_v28 = vadd.f32 %v1116_v27, %v6590_v0  ;;  %v1118_v29 = vpop.f32.mrb[43].mxu1  ;;  %1515 = vmatmul.mubr.bf16.gmra.mrb[36].mxu0 %v1285_v21  ;;  %v1235_v31 = vmax.f32 %v1113_v24, 0.0 }
 0x209   : > { %v1119_v30 = vadd.f32 %v1118_v29, %v6592_v1  ;;  %v1236_v33 = vmax.f32 %v1115_v26, 0.0 }
 0x20a   : > { %v1237_v32 = vmax.f32 %v1117_v28, 0.0 }
 0x20b   : > { %v1238_v34 = vmax.f32 %v1119_v30, 0.0 }
 0x20c   : > { %v1287_v36 = vpack.c.bf16 %v1237_v32, %v1235_v31 }
 0x20d   : > { %v1288_v38 = vpack.c.bf16 %v1238_v34, %v1236_v33  ;;  %v1122_v39 = vpop.f32.mrb[44].mxu1 }
 0x20e   : > { %v1123_v40 = vadd.f32 %v1122_v39, %v6590_v0  ;;  %v1124_v41 = vpop.f32.mrb[45].mxu1 }
 0x20f   : > { %v1125_v42 = vadd.f32 %v1124_v41, %v6592_v1  ;;  %v1126_v43 = vpop.f32.mrb[46].mxu1  ;;  %1522 = vmatprep.mubr.bf16.mxu0 %v1288_v38 }
 0x210   : > { %v1127_v45 = vadd.f32 %v1126_v43, %v6590_v0  ;;  %v1128_v46 = vpop.f32.mrb[47].mxu1  ;;  %1523 = vmatmul.mubr.bf16.gmra.mrb[40].mxu0 %v1287_v36  ;;  %v1239_v48 = vmax.f32 %v1123_v40, 0.0 }
 0x211   : > { %v1129_v47 = vadd.f32 %v1128_v46, %v6592_v1  ;;  %v1240_v50 = vmax.f32 %v1125_v42, 0.0 }
 0x212   : > { %v1241_v49 = vmax.f32 %v1127_v45, 0.0 }
 0x213   : > { %v1242_v51 = vmax.f32 %v1129_v47, 0.0 }
 0x214   : > { %v1289_v52 = vpack.c.bf16 %v1241_v49, %v1239_v48 }
 0x215   : > { %v1290_v53 = vpack.c.bf16 %v1242_v51, %v1240_v50  ;;  %v1132_v56 = vpop.f32.mrb[48].mxu1 }
 0x216   : > { %v1133_v57 = vadd.f32 %v1132_v56, %v6590_v0  ;;  %v1134_v58 = vpop.f32.mrb[49].mxu1 }
 0x217   : > { %v1135_v55 = vadd.f32 %v1134_v58, %v6592_v1  ;;  %v1136_v37 = vpop.f32.mrb[50].mxu1  ;;  %1530 = vmatprep.mubr.bf16.mxu0 %v1290_v53 }
 0x218   : > { %v1137_v35 = vadd.f32 %v1136_v37, %v6590_v0  ;;  %v1138_v44 = vpop.f32.mrb[51].mxu1  ;;  %1531 = vmatmul.mubr.bf16.gmra.mrb[44].mxu0 %v1289_v52  ;;  %v1243_v60 = vmax.f32 %v1133_v57, 0.0 }
 0x219   : > { %v1139_v59 = vadd.f32 %v1138_v44, %v6592_v1  ;;  %v1244_v62 = vmax.f32 %v1135_v55, 0.0 }
 0x21a   : > { %v1245_v61 = vmax.f32 %v1137_v35, 0.0 }
 0x21b   : > { %v1246_v63 = vmax.f32 %v1139_v59, 0.0 }
 0x21c   : > { %v1291_v2 = vpack.c.bf16 %v1245_v61, %v1243_v60 }
 0x21d   : > { %v1292_v3 = vpack.c.bf16 %v1246_v63, %v1244_v62  ;;  %v1142_v4 = vpop.f32.mrb[52].mxu1 }
 0x21e   : > { %v1143_v54 = vadd.f32 %v1142_v4, %v6590_v0  ;;  %v1144_v5 = vpop.f32.mrb[53].mxu1 }
 0x21f   : > { %v1145_v6 = vadd.f32 %v1144_v5, %v6592_v1  ;;  %v1146_v7 = vpop.f32.mrb[54].mxu1  ;;  %1538 = vmatprep.mubr.bf16.mxu0 %v1292_v3 }
 0x220   : > { %v1147_v8 = vadd.f32 %v1146_v7, %v6590_v0  ;;  %v1148_v9 = vpop.f32.mrb[55].mxu1  ;;  %1539 = vmatmul.mubr.bf16.gmra.mrb[48].mxu0 %v1291_v2  ;;  %v1247_v11 = vmax.f32 %v1143_v54, 0.0 }
 0x221   : > { %v1149_v10 = vadd.f32 %v1148_v9, %v6592_v1  ;;  %v1248_v13 = vmax.f32 %v1145_v6, 0.0 }
 0x222   : > { %v1249_v12 = vmax.f32 %v1147_v8, 0.0 }
 0x223   : > { %v1250_v14 = vmax.f32 %v1149_v10, 0.0 }
 0x224   : > { %v1293_v15 = vpack.c.bf16 %v1249_v12, %v1247_v11 }
 0x225   : > { %v1294_v16 = vpack.c.bf16 %v1250_v14, %v1248_v13  ;;  %v1152_v17 = vpop.f32.mrb[56].mxu1 }
 0x226   : > { %v1153_v18 = vadd.f32 %v1152_v17, %v6590_v0  ;;  %v1154_v19 = vpop.f32.mrb[57].mxu1 }
 0x227   : > { %v1155_v20 = vadd.f32 %v1154_v19, %v6592_v1  ;;  %v1156_v21 = vpop.f32.mrb[58].mxu1  ;;  %1546 = vmatprep.mubr.bf16.mxu0 %v1294_v16 }
 0x228   : > { %v1157_v22 = vadd.f32 %v1156_v21, %v6590_v0  ;;  %v1158_v23 = vpop.f32.mrb[59].mxu1  ;;  %1547 = vmatmul.mubr.bf16.gmra.mrb[52].mxu0 %v1293_v15  ;;  %v1251_v25 = vmax.f32 %v1153_v18, 0.0 }
 0x229   : > { %v1159_v24 = vadd.f32 %v1158_v23, %v6592_v1  ;;  %v1252_v27 = vmax.f32 %v1155_v20, 0.0 }
 0x22a   : > { %v1253_v26 = vmax.f32 %v1157_v22, 0.0 }
 0x22b   : > { %v1254_v28 = vmax.f32 %v1159_v24, 0.0 }
 0x22c   : > { %v1295_v29 = vpack.c.bf16 %v1253_v26, %v1251_v25 }
 0x22d   : > { %v1296_v30 = vpack.c.bf16 %v1254_v28, %v1252_v27  ;;  %v1162_v31 = vpop.f32.mrb[60].mxu1 }
 0x22e   : > { %v1163_v32 = vadd.f32 %v1162_v31, %v6590_v0  ;;  %v1164_v33 = vpop.f32.mrb[61].mxu1 }
 0x22f   : > { %v1165_v34 = vadd.f32 %v1164_v33, %v6592_v1  ;;  %v1166_v36 = vpop.f32.mrb[62].mxu1  ;;  %1554 = vmatprep.mubr.bf16.mxu0 %v1296_v30 }
 0x230   : > { %v1167_v38 = vadd.f32 %v1166_v36, %v6590_v0  ;;  %v1168_v39 = vpop.f32.mrb[63].mxu1  ;;  %1555 = vmatmul.mubr.bf16.gmra.mrb[56].mxu0 %v1295_v29  ;;  %v1255_v41 = vmax.f32 %v1163_v32, 0.0 }
 0x231   : > { %v1169_v40 = vadd.f32 %v1168_v39, %v6592_v1  ;;  %v1256_v43 = vmax.f32 %v1165_v34, 0.0 }
 0x232   : > { %v1257_v42 = vmax.f32 %v1167_v38, 0.0 }
 0x233   : > { %v1258_v45 = vmax.f32 %v1169_v40, 0.0 }
 0x234   : > { %v1297_v46 = vpack.c.bf16 %v1257_v42, %v1255_v41  ;;  %v1635_v41 = vld [vmem:[%s8084_s17] sm:$0xff] }
 0x235   : > { %v1298_v47 = vpack.c.bf16 %v1258_v45, %v1256_v43  ;;  %v1172_v48 = vpop.f32.mrb[64].mxu1  ;;  %v6667_v45 = vld [vmem:[%s8073_s6] ss:$0 sm:$0xff] }
 0x236   : > { %v1173_v49 = vadd.f32 %v1172_v48, %v6590_v0  ;;  %v1174_v50 = vpop.f32.mrb[65].mxu1 }
 0x237   : > { %v1175_v51 = vadd.f32 %v1174_v50, %v6592_v1  ;;  %v1176_v52 = vpop.f32.mrb[66].mxu1  ;;  %1562 = vmatprep.mubr.bf16.mxu0 %v1298_v47 }
 0x238   : > { %v1177_v53 = vadd.f32 %v1176_v52, %v6590_v0  ;;  %v1178_v56 = vpop.f32.mrb[67].mxu1  ;;  %1563 = vmatmul.mubr.bf16.gmra.mrb[60].mxu0 %v1297_v46  ;;  %v1259_v58 = vmax.f32 %v1173_v49, 0.0 }
 0x239   : > { %v1179_v57 = vadd.f32 %v1178_v56, %v6592_v1  ;;  %v1260_v37 = vmax.f32 %v1175_v51, 0.0 }
 0x23a   : > { %v1261_v55 = vmax.f32 %v1177_v53, 0.0 }
 0x23b   : > { %v1262_v35 = vmax.f32 %v1179_v57, 0.0 }
 0x23c   : > { %v1299_v44 = vpack.c.bf16 %v1261_v55, %v1259_v58 }
 0x23d   : > { %v1300_v59 = vpack.c.bf16 %v1262_v35, %v1260_v37  ;;  %v1182_v60 = vpop.f32.mrb[68].mxu1 }
 0x23e   : > { %v1183_v61 = vadd.f32 %v1182_v60, %v6590_v0  ;;  %v1184_v62 = vpop.f32.mrb[69].mxu1 }
 0x23f   : > { %v1185_v63 = vadd.f32 %v1184_v62, %v6592_v1  ;;  %v1186_v2 = vpop.f32.mrb[70].mxu1  ;;  %1570 = vmatprep.mubr.bf16.mxu0 %v1300_v59 }
 0x240   : > { %v1187_v3 = vadd.f32 %v1186_v2, %v6590_v0  ;;  %v1188_v4 = vpop.f32.mrb[71].mxu1  ;;  %1571 = vmatmul.mubr.bf16.gmra.mrb[64].mxu0 %v1299_v44  ;;  %v1263_v5 = vmax.f32 %v1183_v61, 0.0 }
 0x241   : > { %v1189_v54 = vadd.f32 %v1188_v4, %v6592_v1  ;;  %v1264_v7 = vmax.f32 %v1185_v63, 0.0 }
 0x242   : > { %v1265_v6 = vmax.f32 %v1187_v3, 0.0 }
 0x243   : > { %v1266_v8 = vmax.f32 %v1189_v54, 0.0 }
 0x244   : > { %v1301_v9 = vpack.c.bf16 %v1265_v6, %v1263_v5 }
 0x245   : > { %v1302_v10 = vpack.c.bf16 %v1266_v8, %v1264_v7  ;;  %v1192_v11 = vpop.f32.mrb[72].mxu1 }
 0x246   : > { %v1193_v12 = vadd.f32 %v1192_v11, %v6590_v0  ;;  %v1194_v13 = vpop.f32.mrb[73].mxu1 }
 0x247   : > { %v1195_v14 = vadd.f32 %v1194_v13, %v6592_v1  ;;  %v1196_v15 = vpop.f32.mrb[74].mxu1  ;;  %1578 = vmatprep.mubr.bf16.mxu0 %v1302_v10 }
 0x248   : > { %v1197_v16 = vadd.f32 %v1196_v15, %v6590_v0  ;;  %v1198_v17 = vpop.f32.mrb[75].mxu1  ;;  %1579 = vmatmul.mubr.bf16.gmra.mrb[68].mxu0 %v1301_v9  ;;  %v1267_v19 = vmax.f32 %v1193_v12, 0.0 }
 0x249   : > { %v1199_v18 = vadd.f32 %v1198_v17, %v6592_v1  ;;  %v1268_v21 = vmax.f32 %v1195_v14, 0.0 }
 0x24a   : > { %v1269_v20 = vmax.f32 %v1197_v16, 0.0 }
 0x24b   : > { %v1270_v22 = vmax.f32 %v1199_v18, 0.0 }
 0x24c   : > { %v1303_v23 = vpack.c.bf16 %v1269_v20, %v1267_v19 }
 0x24d   : > { %v1304_v24 = vpack.c.bf16 %v1270_v22, %v1268_v21  ;;  %v1202_v25 = vpop.f32.mrb[76].mxu1 }
 0x24e   : > { %v1203_v26 = vadd.f32 %v1202_v25, %v6590_v0  ;;  %v1204_v27 = vpop.f32.mrb[77].mxu1 }
 0x24f   : > { %v1205_v28 = vadd.f32 %v1204_v27, %v6592_v1  ;;  %v1206_v29 = vpop.f32.mrb[78].mxu1  ;;  %1586 = vmatprep.mubr.bf16.mxu0 %v1304_v24 }
 0x250   : > { %v1207_v30 = vadd.f32 %v1206_v29, %v6590_v0  ;;  %v1208_v31 = vpop.f32.mrb[79].mxu1  ;;  %1587 = vmatmul.mubr.bf16.gmra.mrb[72].mxu0 %v1303_v23  ;;  %v1271_v33 = vmax.f32 %v1203_v26, 0.0  ;;  %v1636_v0 = vld [vmem:[%s8084_s17 + $0x8] sm:$0xff] }
 0x251   : > { %v1209_v32 = vadd.f32 %v1208_v31, %v6592_v1  ;;  %v1272_v36 = vmax.f32 %v1205_v28, 0.0  ;;  %v5758_v42 = vpack.c.bf16 %v1636_v0, %v1635_v41 }
 0x252   : > { %v1273_v34 = vmax.f32 %v1207_v30, 0.0 }
 0x253   : > { %v1274_v38 = vmax.f32 %v1209_v32, 0.0  ;;  %5759 = vmatprep.subr.bf16.mxu1 %v5758_v42  ;;  %v1637_v32 = vld [vmem:[%s8084_s17 + $0x10] sm:$0xff] }
 0x254   : > { %v1305_v39 = vpack.c.bf16 %v1273_v34, %v1271_v33  ;;  %5761 = vmatpush3.bf16.msra.mxu1 %v5758_v42  ;;  %v1638_v33 = vld [vmem:[%s8084_s17 + $0x18] sm:$0xff] }
 0x255   : > { %v1306_v40 = vpack.c.bf16 %v1274_v38, %v1272_v36  ;;  %v5762_v38 = vpack.c.bf16 %v1638_v33, %v1637_v32 }
 0x257   : > { %1594 = vmatprep.mubr.bf16.mxu0 %v1306_v40  ;;  %5763 = vmatprep.subr.bf16.mxu1 %v5762_v38 }
 0x258   : > { %1595 = vmatmul.mubr.bf16.gmra.mrb[76].mxu0 %v1305_v39  ;;  %5765 = vmatpush3.bf16.msra.mxu1 %v5762_v38 }
 0x2b3   : > { %v5095_v1 = vpop.f32.mrb[16].mxu0 }
 0x2b4   : > { %v5096_v43 = vpop.f32.mrb[17].mxu0 }
 0x2b5   : > { %v5097_v46 = vadd.f32 %v5096_v43, %v5095_v1  ;;  %v5098_v47 = vpop.f32.mrb[18].mxu0 }
 0x2b6   : > { %v5099_v48 = vpop.f32.mrb[19].mxu0 }
 0x2b7   : > { %v5100_v49 = vadd.f32 %v5099_v48, %v5098_v47  ;;  %v6670_v50 = vadd.f32 %v5097_v46, %v6667_v45 }
 0x2b9   : > { %v6673_v51 = vadd.f32 %v5100_v49, %v6667_v45  ;;  %v1603_v52 = vmax.f32 %v6670_v50, 0.0 }
 0x2bb   : > { %v5101_v53 = vpop.f32.mrb[20].mxu0  ;;  %v1640_v56 = vsel %vm676_vm0, %v1603_v52, -inf  ;;  %v1604_v57 = vmax.f32 %v6673_v51, 0.0 }
 0x2bc   : > { %v5102_v58 = vpop.f32.mrb[21].mxu0  ;;  %1641 = vmax.xlane.f32.xlu0 %v1640_v56 }
 0x2bd   : > { %v5103_v55 = vadd.f32 %v5102_v58, %v5101_v53  ;;  %v5104_v37 = vpop.f32.mrb[22].mxu0  ;;  %v1643_v59 = vsel %vm676_vm0, %v1604_v57, -inf }
 0x2be   : > { %v5105_v35 = vpop.f32.mrb[23].mxu0 }
 0x2bf   : > { %v5106_v44 = vadd.f32 %v5105_v35, %v5104_v37  ;;  %v6684_v60 = vadd.f32 %v5103_v55, %v6667_v45 }
 0x2c0   : > { %1644 = vmax.xlane.f32.xlu0 %v1643_v59 }
 0x2c1   : > { %v6687_v61 = vadd.f32 %v5106_v44, %v6667_v45  ;;  %v1605_v62 = vmax.f32 %v6684_v60, 0.0 }
 0x2c3   : > { %v5107_v63 = vpop.f32.mrb[24].mxu0  ;;  %v1646_v2 = vsel %vm676_vm0, %v1605_v62, -inf  ;;  %v1606_v3 = vmax.f32 %v6687_v61, 0.0 }
 0x2c4   : > { %v5108_v4 = vpop.f32.mrb[25].mxu0  ;;  %1647 = vmax.xlane.f32.xlu1 %v1646_v2 }
 0x2c5   : > { %v5109_v54 = vadd.f32 %v5108_v4, %v5107_v63  ;;  %v5110_v5 = vpop.f32.mrb[26].mxu0  ;;  %v1649_v9 = vsel %vm676_vm0, %v1606_v3, -inf }
 0x2c6   : > { %v5111_v6 = vpop.f32.mrb[27].mxu0 }
 0x2c7   : > { %v6695_v7 = vadd.f32 %v5109_v54, %v6667_v45  ;;  %v5112_v8 = vadd.f32 %v5111_v6, %v5110_v5 }
 0x2c8   : > { %1650 = vmax.xlane.f32.xlu1 %v1649_v9 }
 0x2c9   : > { %v6701_v10 = vadd.f32 %v5112_v8, %v6667_v45  ;;  %v1607_v11 = vmax.f32 %v6695_v7, 0.0 }
 0x2cb   : > { %v5113_v12 = vpop.f32.mrb[28].mxu0  ;;  %v1652_v13 = vsel %vm676_vm0, %v1607_v11, -inf  ;;  %v1608_v14 = vmax.f32 %v6701_v10, 0.0 }
 0x2cc   : > { %v5114_v15 = vpop.f32.mrb[29].mxu0  ;;  %1653 = vmax.xlane.f32.xlu0 %v1652_v13 }
 0x2cd   : > { %v5115_v16 = vadd.f32 %v5114_v15, %v5113_v12  ;;  %v5116_v17 = vpop.f32.mrb[30].mxu0  ;;  %v1655_v18 = vsel %vm676_vm0, %v1608_v14, -inf }
 0x2ce   : > { %v5117_v19 = vpop.f32.mrb[31].mxu0  ;;  %1656 = vmax.xlane.f32.xlu1 %v1655_v18 }
 0x2cf   : > { %v6712_v20 = vadd.f32 %v5115_v16, %v6667_v45  ;;  %v5118_v21 = vadd.f32 %v5117_v19, %v5116_v17 }
 0x2d1   : > { %v6715_v22 = vadd.f32 %v5118_v21, %v6667_v45  ;;  %v1609_v23 = vmax.f32 %v6712_v20, 0.0 }
 0x2d3   : > { %v5119_v24 = vpop.f32.mrb[32].mxu0  ;;  %v1658_v25 = vsel %vm676_vm0, %v1609_v23, -inf  ;;  %v1610_v26 = vmax.f32 %v6715_v22, 0.0 }
 0x2d4   : > { %v5120_v27 = vpop.f32.mrb[33].mxu0  ;;  %1659 = vmax.xlane.f32.xlu0 %v1658_v25 }
 0x2d5   : > { %v5121_v28 = vadd.f32 %v5120_v27, %v5119_v24  ;;  %v5122_v29 = vpop.f32.mrb[34].mxu0  ;;  %v1661_v30 = vsel %vm676_vm0, %v1610_v26, -inf }
 0x2d6   : > { %v5123_v31 = vpop.f32.mrb[35].mxu0  ;;  %1662 = vmax.xlane.f32.xlu1 %v1661_v30 }
 0x2d7   : > { %v6732_v34 = vadd.f32 %v5121_v28, %v6667_v45  ;;  %v5124_v36 = vadd.f32 %v5123_v31, %v5122_v29 }
 0x2d9   : > { %v6735_v39 = vadd.f32 %v5124_v36, %v6667_v45  ;;  %v1611_v40 = vmax.f32 %v6732_v34, 0.0 }
 0x2db   : > { %v5125_v41 = vpop.f32.mrb[36].mxu0  ;;  %v1664_v0 = vsel %vm676_vm0, %v1611_v40, -inf  ;;  %v1612_v42 = vmax.f32 %v6735_v39, 0.0 }
 0x2dc   : > { %v5126_v1 = vpop.f32.mrb[37].mxu0  ;;  %1665 = vmax.xlane.f32.xlu0 %v1664_v0 }
 0x2dd   : > { %v5127_v43 = vadd.f32 %v5126_v1, %v5125_v41  ;;  %v5128_v46 = vpop.f32.mrb[38].mxu0  ;;  %v1667_v47 = vsel %vm676_vm0, %v1612_v42, -inf }
 0x2de   : > { %v5129_v48 = vpop.f32.mrb[39].mxu0  ;;  %1668 = vmax.xlane.f32.xlu1 %v1667_v47 }
 0x2df   : > { %v6746_v49 = vadd.f32 %v5127_v43, %v6667_v45  ;;  %v5130_v53 = vadd.f32 %v5129_v48, %v5128_v46 }
 0x2e1   : > { %v6749_v56 = vadd.f32 %v5130_v53, %v6667_v45  ;;  %v1613_v58 = vmax.f32 %v6746_v49, 0.0 }
 0x2e3   : > { %v5131_v55 = vpop.f32.mrb[40].mxu0  ;;  %v1670_v37 = vsel %vm676_vm0, %v1613_v58, -inf  ;;  %v1614_v35 = vmax.f32 %v6749_v56, 0.0 }
 0x2e4   : > { %v5132_v44 = vpop.f32.mrb[41].mxu0  ;;  %1671 = vmax.xlane.f32.xlu0 %v1670_v37 }
 0x2e5   : > { %v5133_v59 = vadd.f32 %v5132_v44, %v5131_v55  ;;  %v5134_v63 = vpop.f32.mrb[42].mxu0  ;;  %v1673_v2 = vsel %vm676_vm0, %v1614_v35, -inf }
 0x2e6   : > { %v5135_v4 = vpop.f32.mrb[43].mxu0  ;;  %1674 = vmax.xlane.f32.xlu1 %v1673_v2 }
 0x2e7   : > { %v6760_v54 = vadd.f32 %v5133_v59, %v6667_v45  ;;  %v5136_v5 = vadd.f32 %v5135_v4, %v5134_v63 }
 0x2e9   : > { %v6763_v6 = vadd.f32 %v5136_v5, %v6667_v45  ;;  %v1615_v8 = vmax.f32 %v6760_v54, 0.0 }
 0x2eb   : > { %v5137_v9 = vpop.f32.mrb[44].mxu0  ;;  %v1676_v12 = vsel %vm676_vm0, %v1615_v8, -inf  ;;  %v1616_v13 = vmax.f32 %v6763_v6, 0.0 }
 0x2ec   : > { %v5138_v15 = vpop.f32.mrb[45].mxu0  ;;  %1677 = vmax.xlane.f32.xlu0 %v1676_v12 }
 0x2ed   : > { %v5139_v16 = vadd.f32 %v5138_v15, %v5137_v9  ;;  %v5140_v17 = vpop.f32.mrb[46].mxu0  ;;  %v1679_v18 = vsel %vm676_vm0, %v1616_v13, -inf }
 0x2ee   : > { %v5141_v19 = vpop.f32.mrb[47].mxu0  ;;  %1680 = vmax.xlane.f32.xlu1 %v1679_v18 }
 0x2ef   : > { %v6774_v21 = vadd.f32 %v5139_v16, %v6667_v45  ;;  %v5142_v24 = vadd.f32 %v5141_v19, %v5140_v17 }
 0x2f1   : > { %v6777_v25 = vadd.f32 %v5142_v24, %v6667_v45  ;;  %v1617_v27 = vmax.f32 %v6774_v21, 0.0 }
 0x2f3   : > { %v5143_v28 = vpop.f32.mrb[48].mxu0  ;;  %v1682_v29 = vsel %vm676_vm0, %v1617_v27, -inf  ;;  %v1618_v30 = vmax.f32 %v6777_v25, 0.0 }
 0x2f4   : > { %v5144_v31 = vpop.f32.mrb[49].mxu0  ;;  %1683 = vmax.xlane.f32.xlu0 %v1682_v29 }
 0x2f5   : > { %v5145_v32 = vadd.f32 %v5144_v31, %v5143_v28  ;;  %v5146_v33 = vpop.f32.mrb[50].mxu0  ;;  %v1685_v36 = vsel %vm676_vm0, %v1618_v30, -inf }
 0x2f6   : > { %v5147_v38 = vpop.f32.mrb[51].mxu0  ;;  %1686 = vmax.xlane.f32.xlu1 %v1685_v36 }
 0x2f7   : > { %v6788_v41 = vadd.f32 %v5145_v32, %v6667_v45  ;;  %v5148_v0 = vadd.f32 %v5147_v38, %v5146_v33 }
 0x2f9   : > { %v6791_v1 = vadd.f32 %v5148_v0, %v6667_v45  ;;  %v1619_v43 = vmax.f32 %v6788_v41, 0.0 }
 0x2fb   : > { %v5149_v46 = vpop.f32.mrb[52].mxu0  ;;  %v1688_v47 = vsel %vm676_vm0, %v1619_v43, -inf  ;;  %v1620_v48 = vmax.f32 %v6791_v1, 0.0 }
 0x2fc   : > { %v5150_v53 = vpop.f32.mrb[53].mxu0  ;;  %1689 = vmax.xlane.f32.xlu0 %v1688_v47 }
 0x2fd   : > { %v5151_v55 = vadd.f32 %v5150_v53, %v5149_v46  ;;  %v5152_v37 = vpop.f32.mrb[54].mxu0  ;;  %v1691_v44 = vsel %vm676_vm0, %v1620_v48, -inf }
 0x2fe   : > { %v5153_v59 = vpop.f32.mrb[55].mxu0  ;;  %1692 = vmax.xlane.f32.xlu1 %v1691_v44 }
 0x2ff   : > { %v6802_v63 = vadd.f32 %v5151_v55, %v6667_v45  ;;  %v5154_v2 = vadd.f32 %v5153_v59, %v5152_v37 }
 0x301   : > { %v6805_v4 = vadd.f32 %v5154_v2, %v6667_v45  ;;  %v1621_v5 = vmax.f32 %v6802_v63, 0.0 }
 0x303   : > { %v5155_v9 = vpop.f32.mrb[56].mxu0  ;;  %v1694_v12 = vsel %vm676_vm0, %v1621_v5, -inf  ;;  %v1622_v15 = vmax.f32 %v6805_v4, 0.0 }
 0x304   : > { %v5156_v16 = vpop.f32.mrb[57].mxu0  ;;  %1695 = vmax.xlane.f32.xlu0 %v1694_v12 }
 0x305   : > { %v5157_v17 = vadd.f32 %v5156_v16, %v5155_v9  ;;  %v5158_v18 = vpop.f32.mrb[58].mxu0  ;;  %v1697_v19 = vsel %vm676_vm0, %v1622_v15, -inf }
 0x306   : > { %v5159_v24 = vpop.f32.mrb[59].mxu0  ;;  %1698 = vmax.xlane.f32.xlu1 %v1697_v19 }
 0x307   : > { %v6816_v28 = vadd.f32 %v5157_v17, %v6667_v45  ;;  %v5160_v29 = vadd.f32 %v5159_v24, %v5158_v18 }
 0x309   : > { %v6819_v31 = vadd.f32 %v5160_v29, %v6667_v45  ;;  %v1623_v32 = vmax.f32 %v6816_v28, 0.0 }
 0x30b   : > { %v5161_v33 = vpop.f32.mrb[60].mxu0  ;;  %v1700_v36 = vsel %vm676_vm0, %v1623_v32, -inf  ;;  %v8101_v38 = vmax.f32 %v6819_v31, 0.0 }
 0x30c   : > { %v5162_v0 = vpop.f32.mrb[61].mxu0  ;;  %1701 = vmax.xlane.f32.xlu0 %v1700_v36 }
 0x30d   : > { %v5163_v46 = vadd.f32 %v5162_v0, %v5161_v33  ;;  %v5164_v47 = vpop.f32.mrb[62].mxu0  ;;  %v1703_v53 = vsel %vm676_vm0, %v8101_v38, -inf }
 0x30e   : > { %v5165_v55 = vpop.f32.mrb[63].mxu0  ;;  %1704 = vmax.xlane.f32.xlu1 %v1703_v53 }
 0x30f   : > { %v6830_v37 = vadd.f32 %v5163_v46, %v6667_v45  ;;  %v5166_v44 = vadd.f32 %v5165_v55, %v5164_v47 }
 0x311   : > { %v6833_v59 = vadd.f32 %v5166_v44, %v6667_v45  ;;  %v8099_v2 = vmax.f32 %v6830_v37, 0.0  ;;  %v8133_v28 = vmax.f32 %v6830_v37, 0.0 }
 0x313   : > { %v5167_v9 = vpop.f32.mrb[64].mxu0  ;;  %v1706_v12 = vsel %vm676_vm0, %v8099_v2, -inf  ;;  %v8097_v16 = vmax.f32 %v6833_v59, 0.0 }
 0x314   : > { %v5168_v17 = vpop.f32.mrb[65].mxu0  ;;  %1707 = vmax.xlane.f32.xlu0 %v1706_v12 }
 0x315   : > { %v5169_v18 = vadd.f32 %v5168_v17, %v5167_v9  ;;  %v5170_v19 = vpop.f32.mrb[66].mxu0  ;;  %v1709_v24 = vsel %vm676_vm0, %v8097_v16, -inf }
 0x316   : > { %v5171_v29 = vpop.f32.mrb[67].mxu0  ;;  %1710 = vmax.xlane.f32.xlu1 %v1709_v24 }
 0x317   : > { %v6844_v33 = vadd.f32 %v5169_v18, %v6667_v45  ;;  %v5172_v36 = vadd.f32 %v5171_v29, %v5170_v19 }
 0x319   : > { %v6847_v0 = vadd.f32 %v5172_v36, %v6667_v45  ;;  %v8095_v46 = vmax.f32 %v6844_v33, 0.0  ;;  %v8135_v37 = vmax.f32 %v6844_v33, 0.0 }
 0x31b   : > { %v5173_v47 = vpop.f32.mrb[68].mxu0  ;;  %v1712_v53 = vsel %vm676_vm0, %v8095_v46, -inf  ;;  %v8096_v55 = vmax.f32 %v6847_v0, 0.0 }
 0x31c   : > { %v5174_v44 = vpop.f32.mrb[69].mxu0  ;;  %1713 = vmax.xlane.f32.xlu0 %v1712_v53 }
 0x31d   : > { %v5175_v9 = vadd.f32 %v5174_v44, %v5173_v47  ;;  %v5176_v12 = vpop.f32.mrb[70].mxu0  ;;  %v1715_v17 = vsel %vm676_vm0, %v8096_v55, -inf }
 0x31e   : > { %v5177_v18 = vpop.f32.mrb[71].mxu0  ;;  %1716 = vmax.xlane.f32.xlu1 %v1715_v17 }
 0x31f   : > { %v6858_v19 = vadd.f32 %v5175_v9, %v6667_v45  ;;  %v5178_v24 = vadd.f32 %v5177_v18, %v5176_v12 }
 0x321   : > { %v6861_v29 = vadd.f32 %v5178_v24, %v6667_v45  ;;  %v8098_v36 = vmax.f32 %v6858_v19, 0.0  ;;  %v8137_v33 = vmax.f32 %v6858_v19, 0.0 }
 0x323   : > { %v5179_v46 = vpop.f32.mrb[72].mxu0  ;;  %v1718_v47 = vsel %vm676_vm0, %v8098_v36, -inf  ;;  %v8100_v53 = vmax.f32 %v6861_v29, 0.0 }
 0x324   : > { %v5180_v44 = vpop.f32.mrb[73].mxu0  ;;  %1719 = vmax.xlane.f32.xlu0 %v1718_v47 }
 0x325   : > { %v5181_v55 = vadd.f32 %v5180_v44, %v5179_v46  ;;  %v5182_v17 = vpop.f32.mrb[74].mxu0  ;;  %v1721_v9 = vsel %vm676_vm0, %v8100_v53, -inf }
 0x326   : > { %v5183_v12 = vpop.f32.mrb[75].mxu0  ;;  %1722 = vmax.xlane.f32.xlu1 %v1721_v9 }
 0x327   : > { %v6872_v18 = vadd.f32 %v5181_v55, %v6667_v45  ;;  %v5184_v24 = vadd.f32 %v5183_v12, %v5182_v17 }
 0x329   : > { %v6875_v16 = vadd.f32 %v5184_v24, %v6667_v45  ;;  %v8102_v36 = vmax.f32 %v6872_v18, 0.0  ;;  %v8139_v19 = vmax.f32 %v6872_v18, 0.0 }
 0x32b   : > { %v5185_v2 = vpop.f32.mrb[76].mxu0  ;;  %v1724_v46 = vsel %vm676_vm0, %v8102_v36, -inf  ;;  %v1632_v47 = vmax.f32 %v6875_v16, 0.0 }
 0x32c   : > { %v5186_v44 = vpop.f32.mrb[77].mxu0  ;;  %1725 = vmax.xlane.f32.xlu0 %v1724_v46 }
 0x32d   : > { %v5187_v53 = vadd.f32 %v5186_v44, %v5185_v2  ;;  %v5188_v9 = vpop.f32.mrb[78].mxu0  ;;  %v1727_v55 = vsel %vm676_vm0, %v1632_v47, -inf }
 0x32e   : > { %v5189_v17 = vpop.f32.mrb[79].mxu0  ;;  %1728 = vmax.xlane.f32.xlu1 %v1727_v55 }
 0x32f   : > { %v6886_v12 = vadd.f32 %v5187_v53, %v6667_v45  ;;  %v5190_v24 = vadd.f32 %v5189_v17, %v5188_v9 }
 0x331   : > { %v6889_v38 = vadd.f32 %v5190_v24, %v6667_v45  ;;  %v8103_v36 = vmax.f32 %v6886_v12, 0.0  ;;  %v8140_v18 = vmax.f32 %v6886_v12, 0.0 }
 0x333   : > { %v1730_v2 = vsel %vm676_vm0, %v8103_v36, -inf  ;;  %v1634_v46 = vmax.f32 %v6889_v38, 0.0 }
 0x334   : > { %1731 = vmax.xlane.f32.xlu0 %v1730_v2 }
 0x335   : > { %v1733_v44 = vsel %vm676_vm0, %v1634_v46, -inf }
 0x336   : > { %1734 = vmax.xlane.f32.xlu1 %v1733_v44  ;;  %v6908_v44 = vld [vmem:[%s8085_s18] sm:$0xf] }
 0x337   : > { %5476 = vmatprep.subr.msk.mxu0 %vm2250_vm1, %v6908_v44 }
 0x338   : > { %5477 = vmatpush3.msk.msra.mxu0 %vm2250_vm1, %v6908_v44 }
 0x349   : > { %v1642_v53 = vpop.xlane.xlu0 %1641 }
 0x34a   : > { %v1736_v9 = vsub.f32 %v1603_v52, %v1642_v53 }
 0x34c   : > { %v1768_v45 = vmul.f32 1.442695, %v1736_v9 }
 0x34d   : > { %v1645_v55 = vpop.xlane.xlu0 %1644 }
 0x34e   : > { %5847 = vpow2.f32 %v1768_v45  ;;  %v1737_v17 = vsub.f32 %v1604_v57, %v1645_v55 }
 0x350   : > { %v1770_v24 = vmul.f32 1.442695, %v1737_v17 }
 0x351   : > { %v1648_v36 = vpop.xlane.xlu1 %1647 }
 0x352   : > { %5849 = vpow2.f32 %v1770_v24  ;;  %v1738_v2 = vsub.f32 %v1605_v62, %v1648_v36 }
 0x354   : > { %v1772_v50 = vmul.f32 1.442695, %v1738_v2 }
 0x355   : > { %v1651_v52 = vpop.xlane.xlu1 %1650 }
 0x356   : > { %5851 = vpow2.f32 %v1772_v50  ;;  %v1739_v51 = vsub.f32 %v1606_v3, %v1651_v52 }
 0x358   : > { %v6916_v57 = vpop.eup %5847  ;;  %v1774_v60 = vmul.f32 1.442695, %v1739_v51 }
 0x359   : > { %5428 = vmatprep.mubr.msk.f32.mxu1 %vm676_vm0, %v6916_v57  ;;  %v1654_v62 = vpop.xlane.xlu0 %1653 }
 0x35a   : > { %5853 = vpow2.f32 %v1774_v60  ;;  %v1740_v36 = vsub.f32 %v1607_v11, %v1654_v62 }
 0x35b   : > { %v1657_v53 = vpop.xlane.xlu1 %1656 }
 0x35c   : > { %v6922_v9 = vpop.eup %5849  ;;  %v1776_v45 = vmul.f32 1.442695, %v1740_v36  ;;  %v1741_v55 = vsub.f32 %v1608_v14, %v1657_v53 }
 0x35d   : > { %5429 = vmatmul.mubr.msk.f32.vlgmr.msra.gmra.mrb[80].mxu1 %vm676_vm0, %v6922_v9 }
 0x35e   : > { %5855 = vpow2.f32 %v1776_v45  ;;  %v1778_v61 = vmul.f32 1.442695, %v1741_v55 }
 0x360   : > { %v6928_v3 = vpop.eup %5851  ;;  %5857 = vpow2.f32 %v1778_v61 }
 0x361   : > { %5431 = vmatprep.mubr.msk.f32.mxu1 %vm676_vm0, %v6928_v3  ;;  %v1660_v7 = vpop.xlane.xlu0 %1659 }
 0x362   : > { %v1742_v11 = vsub.f32 %v1609_v23, %v1660_v7 }
 0x363   : > { %v1663_v17 = vpop.xlane.xlu1 %1662 }
 0x364   : > { %v6934_v24 = vpop.eup %5853  ;;  %v1780_v10 = vmul.f32 1.442695, %v1742_v11  ;;  %v1743_v14 = vsub.f32 %v1610_v26, %v1663_v17 }
 0x365   : > { %5432 = vmatmul.mubr.msk.f32.gmra.mrb[82].mxu1 %vm676_vm0, %v6934_v24 }
 0x366   : > { %5859 = vpow2.f32 %v1780_v10  ;;  %v1782_v2 = vmul.f32 1.442695, %v1743_v14 }
 0x368   : > { %v6940_v50 = vpop.eup %5855  ;;  %5861 = vpow2.f32 %v1782_v2 }
 0x369   : > { %5434 = vmatprep.mubr.msk.f32.mxu1 %vm676_vm0, %v6940_v50  ;;  %v1666_v20 = vpop.xlane.xlu0 %1665 }
 0x36a   : > { %v6944_v23 = vpop.eup %5857  ;;  %v1744_v52 = vsub.f32 %v1611_v40, %v1666_v20 }
 0x36b   : > { %v1669_v51 = vpop.xlane.xlu1 %1668  ;;  %5435 = vmatmul.mubr.msk.f32.gmra.mrb[84].mxu1 %vm676_vm0, %v6944_v23 }
 0x36c   : > { %v1784_v22 = vmul.f32 1.442695, %v1744_v52  ;;  %v1745_v26 = vsub.f32 %v1612_v42, %v1669_v51 }
 0x36e   : > { %5863 = vpow2.f32 %v1784_v22  ;;  %v1786_v60 = vmul.f32 1.442695, %v1745_v26 }
 0x370   : > { %v6952_v62 = vpop.eup %5859  ;;  %5865 = vpow2.f32 %v1786_v60 }
 0x371   : > { %5437 = vmatprep.mubr.msk.f32.mxu1 %vm676_vm0, %v6952_v62  ;;  %v1672_v36 = vpop.xlane.xlu0 %1671 }
 0x372   : > { %v6956_v53 = vpop.eup %5861  ;;  %v1746_v34 = vsub.f32 %v1613_v58, %v1672_v36 }
 0x373   : > { %v1675_v40 = vpop.xlane.xlu1 %1674  ;;  %5438 = vmatmul.mubr.msk.f32.gmra.mrb[86].mxu1 %vm676_vm0, %v6956_v53 }
 0x374   : > { %v1788_v39 = vmul.f32 1.442695, %v1746_v34  ;;  %v1747_v42 = vsub.f32 %v1614_v35, %v1675_v40 }
 0x376   : > { %5867 = vpow2.f32 %v1788_v39  ;;  %v1790_v45 = vmul.f32 1.442695, %v1747_v42 }
 0x378   : > { %v6964_v55 = vpop.eup %5863  ;;  %5869 = vpow2.f32 %v1790_v45 }
 0x379   : > { %5440 = vmatprep.mubr.msk.f32.mxu1 %vm676_vm0, %v6964_v55  ;;  %v1678_v61 = vpop.xlane.xlu0 %1677 }
 0x37a   : > { %v6968_v7 = vpop.eup %5865  ;;  %v1748_v49 = vsub.f32 %v1615_v8, %v1678_v61 }
 0x37b   : > { %v1681_v58 = vpop.xlane.xlu1 %1680  ;;  %5441 = vmatmul.mubr.msk.f32.gmra.mrb[88].mxu1 %vm676_vm0, %v6968_v7 }
 0x37c   : > { %v1792_v56 = vmul.f32 1.442695, %v1748_v49  ;;  %v1749_v35 = vsub.f32 %v1616_v13, %v1681_v58 }
 0x37e   : > { %5871 = vpow2.f32 %v1792_v56  ;;  %v1794_v11 = vmul.f32 1.442695, %v1749_v35 }
 0x380   : > { %v6976_v17 = vpop.eup %5867  ;;  %5873 = vpow2.f32 %v1794_v11  ;;  %v8134_v11 = vmax.f32 %v6833_v59, 0.0 }
 0x381   : > { %5443 = vmatprep.mubr.msk.f32.mxu1 %vm676_vm0, %v6976_v17  ;;  %v1684_v10 = vpop.xlane.xlu0 %1683 }
 0x382   : > { %v6980_v14 = vpop.eup %5869  ;;  %v1750_v54 = vsub.f32 %v1617_v27, %v1684_v10 }
 0x383   : > { %v1687_v8 = vpop.xlane.xlu1 %1686  ;;  %5444 = vmatmul.mubr.msk.f32.gmra.mrb[90].mxu1 %vm676_vm0, %v6980_v14 }
 0x384   : > { %v1796_v6 = vmul.f32 1.442695, %v1750_v54  ;;  %v1751_v13 = vsub.f32 %v1618_v30, %v1687_v8 }
 0x386   : > { %5875 = vpow2.f32 %v1796_v6  ;;  %v1798_v2 = vmul.f32 1.442695, %v1751_v13 }
 0x388   : > { %v6988_v20 = vpop.eup %5871  ;;  %5877 = vpow2.f32 %v1798_v2 }
 0x389   : > { %5446 = vmatprep.mubr.msk.f32.mxu1 %vm676_vm0, %v6988_v20  ;;  %v1690_v52 = vpop.xlane.xlu0 %1689 }
 0x38a   : > { %v6992_v51 = vpop.eup %5873  ;;  %v1752_v21 = vsub.f32 %v1619_v43, %v1690_v52 }
 0x38b   : > { %v1693_v27 = vpop.xlane.xlu1 %1692  ;;  %5447 = vmatmul.mubr.msk.f32.gmra.mrb[92].mxu1 %vm676_vm0, %v6992_v51 }
 0x38c   : > { %v1800_v25 = vmul.f32 1.442695, %v1752_v21  ;;  %v1753_v30 = vsub.f32 %v1620_v48, %v1693_v27  ;;  %v8136_v21 = vmax.f32 %v6847_v0, 0.0 }
 0x38e   : > { %5879 = vpow2.f32 %v1800_v25  ;;  %v1802_v22 = vmul.f32 1.442695, %v1753_v30 }
 0x390   : > { %v7000_v26 = vpop.eup %5875  ;;  %5881 = vpow2.f32 %v1802_v22 }
 0x391   : > { %5449 = vmatprep.mubr.msk.f32.mxu1 %vm676_vm0, %v7000_v26  ;;  %v1696_v60 = vpop.xlane.xlu0 %1695 }
 0x392   : > { %v7004_v36 = vpop.eup %5877  ;;  %v1754_v41 = vsub.f32 %v1621_v5, %v1696_v60 }
 0x393   : > { %v1699_v43 = vpop.xlane.xlu1 %1698  ;;  %5450 = vmatmul.mubr.msk.f32.gmra.mrb[94].mxu1 %vm676_vm0, %v7004_v36 }
 0x394   : > { %v1804_v1 = vmul.f32 1.442695, %v1754_v41  ;;  %v1755_v48 = vsub.f32 %v1622_v15, %v1699_v43  ;;  %v8132_v15 = vmax.f32 %v6819_v31, 0.0 }
 0x396   : > { %5883 = vpow2.f32 %v1804_v1  ;;  %v1806_v34 = vmul.f32 1.442695, %v1755_v48  ;;  %v8138_v1 = vmax.f32 %v6861_v29, 0.0 }
 0x398   : > { %v7012_v40 = vpop.eup %5879  ;;  %5885 = vpow2.f32 %v1806_v34 }
 0x399   : > { %5452 = vmatprep.mubr.msk.f32.mxu1 %vm676_vm0, %v7012_v40  ;;  %v1702_v39 = vpop.xlane.xlu0 %1701 }
 0x39a   : > { %v7016_v42 = vpop.eup %5881  ;;  %v1756_v63 = vsub.f32 %v1623_v32, %v1702_v39 }
 0x39b   : > { %v1705_v5 = vpop.xlane.xlu1 %1704  ;;  %5453 = vmatmul.mubr.msk.f32.gmra.mrb[96].mxu1 %vm676_vm0, %v7016_v42 }
 0x39c   : > { %v1808_v4 = vmul.f32 1.442695, %v1756_v63  ;;  %v1757_v45 = vsub.f32 %v8132_v15, %v1705_v5 }
 0x39e   : > { %5887 = vpow2.f32 %v1808_v4  ;;  %v1810_v61 = vmul.f32 1.442695, %v1757_v45 }
 0x3a0   : > { %v7024_v49 = vpop.eup %5883  ;;  %5889 = vpow2.f32 %v1810_v61 }
 0x3a1   : > { %5455 = vmatprep.mubr.msk.f32.mxu1 %vm676_vm0, %v7024_v49  ;;  %v1708_v58 = vpop.xlane.xlu0 %1707 }
 0x3a2   : > { %v7028_v56 = vpop.eup %5885  ;;  %v1758_v32 = vsub.f32 %v8133_v28, %v1708_v58 }
 0x3a3   : > { %v1711_v35 = vpop.xlane.xlu1 %1710  ;;  %5456 = vmatmul.mubr.msk.f32.gmra.mrb[98].mxu1 %vm676_vm0, %v7028_v56 }
 0x3a4   : > { %v1812_v31 = vmul.f32 1.442695, %v1758_v32  ;;  %v1759_v10 = vsub.f32 %v8134_v11, %v1711_v35 }
 0x3a6   : > { %5891 = vpow2.f32 %v1812_v31  ;;  %v1814_v54 = vmul.f32 1.442695, %v1759_v10 }
 0x3a8   : > { %v7036_v8 = vpop.eup %5887  ;;  %5893 = vpow2.f32 %v1814_v54 }
 0x3a9   : > { %5458 = vmatprep.mubr.msk.f32.mxu1 %vm676_vm0, %v7036_v8  ;;  %v1714_v6 = vpop.xlane.xlu0 %1713 }
 0x3aa   : > { %v7040_v13 = vpop.eup %5889  ;;  %v1760_v2 = vsub.f32 %v8135_v37, %v1714_v6 }
 0x3ab   : > { %v1717_v52 = vpop.xlane.xlu1 %1716  ;;  %5459 = vmatmul.mubr.msk.f32.gmra.mrb[100].mxu1 %vm676_vm0, %v7040_v13 }
 0x3ac   : > { %v1816_v59 = vmul.f32 1.442695, %v1760_v2  ;;  %v1761_v27 = vsub.f32 %v8136_v21, %v1717_v52 }
 0x3ae   : > { %5895 = vpow2.f32 %v1816_v59  ;;  %v1818_v25 = vmul.f32 1.442695, %v1761_v27 }
 0x3b0   : > { %v7048_v30 = vpop.eup %5891  ;;  %5897 = vpow2.f32 %v1818_v25 }
 0x3b1   : > { %5461 = vmatprep.mubr.msk.f32.mxu1 %vm676_vm0, %v7048_v30  ;;  %v1720_v22 = vpop.xlane.xlu0 %1719 }
 0x3b2   : > { %v7052_v60 = vpop.eup %5893  ;;  %v1762_v41 = vsub.f32 %v8137_v33, %v1720_v22 }
 0x3b3   : > { %v1723_v43 = vpop.xlane.xlu1 %1722  ;;  %5462 = vmatmul.mubr.msk.f32.gmra.mrb[102].mxu1 %vm676_vm0, %v7052_v60 }
 0x3b4   : > { %v1820_v0 = vmul.f32 1.442695, %v1762_v41  ;;  %v1763_v48 = vsub.f32 %v8138_v1, %v1723_v43 }
 0x3b6   : > { %5899 = vpow2.f32 %v1820_v0  ;;  %v1822_v34 = vmul.f32 1.442695, %v1763_v48 }
 0x3b8   : > { %v7060_v39 = vpop.eup %5895  ;;  %5901 = vpow2.f32 %v1822_v34 }
 0x3b9   : > { %5464 = vmatprep.mubr.msk.f32.mxu1 %vm676_vm0, %v7060_v39  ;;  %v1726_v63 = vpop.xlane.xlu0 %1725 }
 0x3ba   : > { %v7064_v5 = vpop.eup %5897  ;;  %v1764_v4 = vsub.f32 %v8139_v19, %v1726_v63 }
 0x3bb   : > { %v1729_v15 = vpop.xlane.xlu1 %1728  ;;  %5465 = vmatmul.mubr.msk.f32.gmra.mrb[104].mxu1 %vm676_vm0, %v7064_v5 }
 0x3bc   : > { %v1824_v29 = vmul.f32 1.442695, %v1764_v4  ;;  %v1765_v45 = vsub.f32 %v1632_v47, %v1729_v15 }
 0x3be   : > { %5903 = vpow2.f32 %v1824_v29  ;;  %v1826_v61 = vmul.f32 1.442695, %v1765_v45 }
 0x3c0   : > { %v7072_v58 = vpop.eup %5899  ;;  %5905 = vpow2.f32 %v1826_v61 }
 0x3c1   : > { %5467 = vmatprep.mubr.msk.f32.mxu1 %vm676_vm0, %v7072_v58  ;;  %v1732_v28 = vpop.xlane.xlu0 %1731 }
 0x3c2   : > { %v7076_v32 = vpop.eup %5901  ;;  %v1766_v35 = vsub.f32 %v8140_v18, %v1732_v28 }
 0x3c3   : > { %v1735_v31 = vpop.xlane.xlu1 %1734  ;;  %5468 = vmatmul.mubr.msk.f32.gmra.mrb[106].mxu1 %vm676_vm0, %v7076_v32 }
 0x3c4   : > { %v1828_v16 = vmul.f32 1.442695, %v1766_v35  ;;  %v1767_v47 = vsub.f32 %v1634_v46, %v1735_v31 }
 0x3c6   : > { %5907 = vpow2.f32 %v1828_v16  ;;  %v1830_v11 = vmul.f32 1.442695, %v1767_v47  ;;  %v5836_v16 = vld [vmem:[%s8074_s7] sm:$0xff]   ;;  %v5837_v47 = vld [vmem:[%s8074_s7 + $0x8] sm:$0xff]  }
 0x3c7   : > { %5526 = vmatprep.subr.bf16.mxu1 %v5836_v16 }
 0x3c8   : > { %v7084_v10 = vpop.eup %5903  ;;  %5909 = vpow2.f32 %v1830_v11  ;;  %5527 = vmatpush3.bf16.msra.mxu1 %v5836_v16 }
 0x3c9   : > { %5470 = vmatprep.mubr.msk.f32.mxu1 %vm676_vm0, %v7084_v10  ;;  %5528 = vmatprep.subr.bf16.mxu1 %v5837_v47 }
 0x3ca   : > { %v7088_v54 = vpop.eup %5905 }
 0x3cb   : > { %5471 = vmatmul.mubr.msk.f32.gmra.mrb[108].mxu1 %vm676_vm0, %v7088_v54 }
 0x3cc   : > { %5529 = vmatpush3.bf16.msra.mxu1 %v5837_v47 }
 0x3d0   : > { %v7092_v12 = vpop.eup %5907 }
 0x3d1   : > { %5473 = vmatprep.mubr.msk.f32.mxu1 %vm676_vm0, %v7092_v12 }
 0x3d2   : > { %v7096_v38 = vpop.eup %5909 }
 0x3d3   : > { %5474 = vmatmul.mubr.msk.f32.gmra.mrb[110].mxu1 %vm676_vm0, %v7096_v38 }
 0x430   : > { %v5430_v46 = vpop.f32.mrb[80].mxu1 }
 0x431   : > { %v1994_v6 = vpop.f32.mrb[81].mxu1 }
 0x432   : > { %5478 = vmatprep.mubr.msk.f32.mxu0 %vm2153_vm2, %v1994_v6 }
 0x433   : > { %5479 = vmatmul.mubr.msk.f32.vlgmr.msra.gmra.mrb[80].mxu0 %vm2153_vm2, %v5430_v46 }
 0x438   : > { %v5433_v37 = vpop.f32.mrb[82].mxu1 }
 0x439   : > { %v2004_v2 = vpop.f32.mrb[83].mxu1 }
 0x43a   : > { %5481 = vmatprep.mubr.msk.f32.mxu0 %vm2153_vm2, %v2004_v2 }
 0x43b   : > { %5482 = vmatmul.mubr.msk.f32.gmra.mrb[82].mxu0 %vm2153_vm2, %v5433_v37 }
 0x43e   : > { %v5436_v52 = vpop.f32.mrb[84].mxu1 }
 0x43f   : > { %v2014_v59 = vpop.f32.mrb[85].mxu1 }
 0x440   : > { %5484 = vmatprep.mubr.msk.f32.mxu0 %vm2153_vm2, %v2014_v59 }
 0x441   : > { %5485 = vmatmul.mubr.msk.f32.gmra.mrb[84].mxu0 %vm2153_vm2, %v5436_v52 }
 0x446   : > { %v5439_v21 = vpop.f32.mrb[86].mxu1 }
 0x447   : > { %v2024_v27 = vpop.f32.mrb[87].mxu1 }
 0x448   : > { %5487 = vmatprep.mubr.msk.f32.mxu0 %vm2153_vm2, %v2024_v27  ;;  %v5838_v27 = vld [vmem:[%s8076_s9] sm:$0xff]  }
 0x449   : > { %5488 = vmatmul.mubr.msk.f32.gmra.mrb[86].mxu0 %vm2153_vm2, %v5439_v21  ;;  %5562 = vmatprep.subr.bf16.mxu0 %v5838_v27 }
 0x44a   : > { %5563 = vmatpush3.bf16.msra.mxu0 %v5838_v27 }
 0x44e   : > { %v5442_v25 = vpop.f32.mrb[88].mxu1 }
 0x44f   : > { %v2034_v22 = vpop.f32.mrb[89].mxu1 }
 0x450   : > { %5490 = vmatprep.mubr.msk.f32.mxu0 %vm2153_vm2, %v2034_v22 }
 0x451   : > { %5491 = vmatmul.mubr.msk.f32.gmra.mrb[88].mxu0 %vm2153_vm2, %v5442_v25  ;;  %v5839_v25 = vld [vmem:[%s8076_s9 + $0x8] sm:$0xff]  }
 0x452   : > { %5564 = vmatprep.subr.bf16.mxu0 %v5839_v25 }
 0x453   : > { %5565 = vmatpush3.bf16.msra.mxu0 %v5839_v25 }
 0x456   : > { %v5445_v33 = vpop.f32.mrb[90].mxu1 }
 0x457   : > { %v2044_v41 = vpop.f32.mrb[91].mxu1 }
 0x458   : > { %5493 = vmatprep.mubr.msk.f32.mxu0 %vm2153_vm2, %v2044_v41 }
 0x459   : > { %5494 = vmatmul.mubr.msk.f32.gmra.mrb[90].mxu0 %vm2153_vm2, %v5445_v33 }
 0x45e   : > { %v5448_v43 = vpop.f32.mrb[92].mxu1 }
 0x45f   : > { %v2054_v0 = vpop.f32.mrb[93].mxu1 }
 0x460   : > { %5496 = vmatprep.mubr.msk.f32.mxu0 %vm2153_vm2, %v2054_v0 }
 0x461   : > { %5497 = vmatmul.mubr.msk.f32.gmra.mrb[92].mxu0 %vm2153_vm2, %v5448_v43 }
 0x466   : > { %v5451_v1 = vpop.f32.mrb[94].mxu1 }
 0x467   : > { %v2064_v48 = vpop.f32.mrb[95].mxu1 }
 0x468   : > { %5499 = vmatprep.mubr.msk.f32.mxu0 %vm2153_vm2, %v2064_v48 }
 0x469   : > { %5500 = vmatmul.mubr.msk.f32.gmra.mrb[94].mxu0 %vm2153_vm2, %v5451_v1  ;;  %v6103_v1 = vld [vmem:[%s6396_s21 + $0x8] sm:$0xff] }
 0x46e   : > { %v5454_v34 = vpop.f32.mrb[96].mxu1 }
 0x46f   : > { %v2074_v63 = vpop.f32.mrb[97].mxu1 }
 0x470   : > { %5502 = vmatprep.mubr.msk.f32.mxu0 %vm2153_vm2, %v2074_v63  ;;  %v6104_v63 = vld [vmem:[%s6396_s21] sm:$0xff] }
 0x471   : > { %5503 = vmatmul.mubr.msk.f32.gmra.mrb[96].mxu0 %vm2153_vm2, %v5454_v34 }
 0x476   : > { %v5457_v19 = vpop.f32.mrb[98].mxu1 }
 0x477   : > { %v2084_v4 = vpop.f32.mrb[99].mxu1 }
 0x478   : > { %5505 = vmatprep.mubr.msk.f32.mxu0 %vm2153_vm2, %v2084_v4 }
 0x479   : > { %5506 = vmatmul.mubr.msk.f32.gmra.mrb[98].mxu0 %vm2153_vm2, %v5457_v19 }
 0x47e   : > { %v5460_v15 = vpop.f32.mrb[100].mxu1 }
 0x47f   : > { %v2094_v29 = vpop.f32.mrb[101].mxu1 }
 0x480   : > { %5508 = vmatprep.mubr.msk.f32.mxu0 %vm2153_vm2, %v2094_v29 }
 0x481   : > { %5509 = vmatmul.mubr.msk.f32.gmra.mrb[100].mxu0 %vm2153_vm2, %v5460_v15 }
 0x486   : > { %v5463_v45 = vpop.f32.mrb[102].mxu1 }
 0x487   : > { %v2104_v61 = vpop.f32.mrb[103].mxu1 }
 0x488   : > { %5511 = vmatprep.mubr.msk.f32.mxu0 %vm2153_vm2, %v2104_v61 }
 0x489   : > { %5512 = vmatmul.mubr.msk.f32.gmra.mrb[102].mxu0 %vm2153_vm2, %v5463_v45  ;;  %v6105_v45 = vld [vmem:[%s6396_s21 + $0x18] sm:$0xff] }
 0x48e   : > { %v5466_v28 = vpop.f32.mrb[104].mxu1 }
 0x48f   : > { %v2114_v18 = vpop.f32.mrb[105].mxu1 }
 0x490   : > { %5514 = vmatprep.mubr.msk.f32.mxu0 %vm2153_vm2, %v2114_v18  ;;  %v6106_v18 = vld [vmem:[%s6396_s21 + $0x10] sm:$0xff] }
 0x491   : > { %5515 = vmatmul.mubr.msk.f32.gmra.mrb[104].mxu0 %vm2153_vm2, %v5466_v28 }
 0x496   : > { %v5469_v35 = vpop.f32.mrb[106].mxu1 }
 0x497   : > { %v2124_v31 = vpop.f32.mrb[107].mxu1 }
 0x498   : > { %5517 = vmatprep.mubr.msk.f32.mxu0 %vm2153_vm2, %v2124_v31 }
 0x499   : > { %5518 = vmatmul.mubr.msk.f32.gmra.mrb[106].mxu0 %vm2153_vm2, %v5469_v35 }
 0x49e   : > { %v5472_v11 = vpop.f32.mrb[108].mxu1 }
 0x49f   : > { %v2134_v46 = vpop.f32.mrb[109].mxu1 }
 0x4a0   : > { %5520 = vmatprep.mubr.msk.f32.mxu0 %vm2153_vm2, %v2134_v46 }
 0x4a1   : > { %5521 = vmatmul.mubr.msk.f32.gmra.mrb[108].mxu0 %vm2153_vm2, %v5472_v11 }
 0x4a6   : > { %v5475_v6 = vpop.f32.mrb[110].mxu1 }
 0x4a7   : > { %v2144_v37 = vpop.f32.mrb[111].mxu1 }
 0x4a8   : > { %5523 = vmatprep.mubr.msk.f32.mxu0 %vm2153_vm2, %v2144_v37  ;;  %v6108_v37 = vld [vmem:[%s6396_s21 + $0x20] sm:$0xff] }
 0x4a9   : > { %5524 = vmatmul.mubr.msk.f32.gmra.mrb[110].mxu0 %vm2153_vm2, %v5475_v6 }
 0x506   : > { %v5480_v2 = vpop.f32.mrb[80].mxu0 }
 0x507   : > { %5911 = vrcp.f32 %v5480_v2  ;;  %v2320_v52 = vpop.f32.mrb[81].mxu0 }
 0x508   : > { %5913 = vrcp.f32 %v2320_v52 }
 0x50e   : > { %v5483_v59 = vpop.f32.mrb[82].mxu0 }
 0x50f   : > { %5915 = vrcp.f32 %v5483_v59  ;;  %v2330_v21 = vpop.f32.mrb[83].mxu0 }
 0x510   : > { %5917 = vrcp.f32 %v2330_v21 }
 0x511   : > { %v5912_v22 = vpop.eup %5911 }
 0x512   : > { %v5914_v33 = vpop.eup %5913  ;;  %v2512_v41 = vmul.f32 %v5912_v22, %v6922_v9 }
 0x513   : > { %v2511_v43 = vmul.f32 %v5914_v33, %v6916_v57 }
 0x514   : > { %v5486_v0 = vpop.f32.mrb[84].mxu0  ;;  %v2544_v48 = vmul.f32 %v6103_v1, %v2512_v41  ;;  %v6110_v41 = vld [vmem:[%s6396_s21 + $0x30] sm:$0xff] }
 0x515   : > { %5919 = vrcp.f32 %v5486_v0  ;;  %v2340_v34 = vpop.f32.mrb[85].mxu0  ;;  %v2543_v19 = vmul.f32 %v6104_v63, %v2511_v43 }
 0x516   : > { %5921 = vrcp.f32 %v2340_v34 }
 0x517   : > { %v2575_v4 = vpack.c.bf16 %v2544_v48, %v2543_v19 }
 0x519   : > { %v5916_v15 = vpop.eup %5915  ;;  %5530 = vmatprep.mubr.msk.bf16.mxu1 %vm676_vm0, %v2575_v4 }
 0x51a   : > { %v5918_v9 = vpop.eup %5917  ;;  %v2514_v29 = vmul.f32 %v5916_v15, %v6934_v24  ;;  %v6112_v15 = vld [vmem:[%s6396_s21 + $0x40] sm:$0xff] }
 0x51b   : > { %v2513_v57 = vmul.f32 %v5918_v9, %v6928_v3  ;;  %v6107_v3 = vld [vmem:[%s6396_s21 + $0x28] sm:$0xff] }
 0x51c   : > { %v2546_v61 = vmul.f32 %v6105_v45, %v2514_v29  ;;  %v5489_v28 = vpop.f32.mrb[86].mxu0 }
 0x51d   : > { %v2545_v35 = vmul.f32 %v6106_v18, %v2513_v57  ;;  %5923 = vrcp.f32 %v5489_v28  ;;  %v2350_v31 = vpop.f32.mrb[87].mxu0 }
 0x51e   : > { %5925 = vrcp.f32 %v2350_v31  ;;  %v6114_v31 = vld [vmem:[%s6396_s21 + $0x50] sm:$0xff] }
 0x51f   : > { %v5920_v16 = vpop.eup %5919  ;;  %v2576_v47 = vpack.c.bf16 %v2546_v61, %v2545_v35 }
 0x520   : > { %v5922_v11 = vpop.eup %5921  ;;  %v2516_v46 = vmul.f32 %v5920_v16, %v6944_v23 }
 0x521   : > { %5531 = vmatmul.mubr.msk.bf16.vlgmr.msra.gmra.mrb[112].mxu1 %vm676_vm0, %v2576_v47  ;;  %v2515_v24 = vmul.f32 %v5922_v11, %v6940_v50  ;;  %v6109_v50 = vld [vmem:[%s6396_s21 + $0x38] sm:$0xff] }
 0x522   : > { %v2548_v6 = vmul.f32 %v6107_v3, %v2516_v46 }
 0x523   : > { %v2547_v2 = vmul.f32 %v6108_v37, %v2515_v24 }
 0x524   : > { %v5492_v52 = vpop.f32.mrb[88].mxu0 }
 0x525   : > { %5927 = vrcp.f32 %v5492_v52  ;;  %v2360_v59 = vpop.f32.mrb[89].mxu0  ;;  %v2577_v21 = vpack.c.bf16 %v2548_v6, %v2547_v2  ;;  %v6116_v2 = vld [vmem:[%s6396_s21 + $0x60] sm:$0xff] }
 0x526   : > { %5929 = vrcp.f32 %v2360_v59 }
 0x527   : > { %v5924_v27 = vpop.eup %5923  ;;  %5534 = vmatprep.mubr.msk.bf16.mxu1 %vm676_vm0, %v2577_v21 }
 0x528   : > { %v5926_v25 = vpop.eup %5925  ;;  %v2518_v23 = vmul.f32 %v5924_v27, %v6956_v53 }
 0x529   : > { %v2517_v22 = vmul.f32 %v5926_v25, %v6952_v62  ;;  %v6111_v62 = vld [vmem:[%s6396_s21 + $0x48] sm:$0xff] }
 0x52a   : > { %v2550_v33 = vmul.f32 %v6109_v50, %v2518_v23 }
 0x52b   : > { %v2549_v43 = vmul.f32 %v6110_v41, %v2517_v22 }
 0x52c   : > { %v5495_v0 = vpop.f32.mrb[90].mxu0 }
 0x52d   : > { %5931 = vrcp.f32 %v5495_v0  ;;  %v2370_v1 = vpop.f32.mrb[91].mxu0  ;;  %v2578_v48 = vpack.c.bf16 %v2550_v33, %v2549_v43  ;;  %v6118_v33 = vld [vmem:[%s6396_s21 + $0x70] sm:$0xff] }
 0x52e   : > { %5933 = vrcp.f32 %v2370_v1 }
 0x52f   : > { %v5928_v34 = vpop.eup %5927  ;;  %5535 = vmatmul.mubr.msk.bf16.gmra.mrb[116].mxu1 %vm676_vm0, %v2578_v48 }
 0x530   : > { %v5930_v63 = vpop.eup %5929  ;;  %v2520_v19 = vmul.f32 %v5928_v34, %v6968_v7 }
 0x531   : > { %v2519_v53 = vmul.f32 %v5930_v63, %v6964_v55  ;;  %v6113_v55 = vld [vmem:[%s6396_s21 + $0x58] sm:$0xff] }
 0x532   : > { %v2552_v4 = vmul.f32 %v6111_v62, %v2520_v19 }
 0x533   : > { %v2551_v9 = vmul.f32 %v6112_v15, %v2519_v53  ;;  %v6120_v53 = vld [vmem:[%s6396_s21 + $0x80] sm:$0xff] }
 0x534   : > { %v5498_v29 = vpop.f32.mrb[92].mxu0 }
 0x535   : > { %5935 = vrcp.f32 %v5498_v29  ;;  %v2380_v57 = vpop.f32.mrb[93].mxu0  ;;  %v2579_v45 = vpack.c.bf16 %v2552_v4, %v2551_v9 }
 0x536   : > { %5937 = vrcp.f32 %v2380_v57 }
 0x537   : > { %v5932_v61 = vpop.eup %5931  ;;  %5538 = vmatprep.mubr.msk.bf16.mxu1 %vm676_vm0, %v2579_v45 }
 0x538   : > { %v5934_v28 = vpop.eup %5933  ;;  %v2522_v18 = vmul.f32 %v5932_v61, %v6980_v14 }
 0x539   : > { %v2521_v7 = vmul.f32 %v5934_v28, %v6976_v17  ;;  %v6115_v17 = vld [vmem:[%s6396_s21 + $0x68] sm:$0xff]  ;;  %v6122_v28 = vld [vmem:[%s6396_s21 + $0x90] sm:$0xff] }
 0x53a   : > { %v2554_v35 = vmul.f32 %v6113_v55, %v2522_v18 }
 0x53b   : > { %v2553_v16 = vmul.f32 %v6114_v31, %v2521_v7 }
 0x53c   : > { %v5501_v47 = vpop.f32.mrb[94].mxu0 }
 0x53d   : > { %5939 = vrcp.f32 %v5501_v47  ;;  %v2390_v11 = vpop.f32.mrb[95].mxu0  ;;  %v2580_v46 = vpack.c.bf16 %v2554_v35, %v2553_v16 }
 0x53e   : > { %5941 = vrcp.f32 %v2390_v11 }
 0x53f   : > { %v5936_v24 = vpop.eup %5935  ;;  %5539 = vmatmul.mubr.msk.bf16.gmra.mrb[120].mxu1 %vm676_vm0, %v2580_v46  ;;  %v6124_v46 = vld [vmem:[%s6396_s21 + $0xa0] sm:$0xff] }
 0x540   : > { %v5938_v3 = vpop.eup %5937  ;;  %v2524_v6 = vmul.f32 %v5936_v24, %v6992_v51 }
 0x541   : > { %v2523_v14 = vmul.f32 %v5938_v3, %v6988_v20  ;;  %v6117_v20 = vld [vmem:[%s6396_s21 + $0x78] sm:$0xff] }
 0x542   : > { %v2556_v37 = vmul.f32 %v6115_v17, %v2524_v6 }
 0x543   : > { %v2555_v52 = vmul.f32 %v6116_v2, %v2523_v14 }
 0x544   : > { %v5504_v59 = vpop.f32.mrb[96].mxu0 }
 0x545   : > { %5943 = vrcp.f32 %v5504_v59  ;;  %v2400_v21 = vpop.f32.mrb[97].mxu0  ;;  %v2581_v27 = vpack.c.bf16 %v2556_v37, %v2555_v52  ;;  %v6126_v59 = vld [vmem:[%s6396_s21 + $0xb0] sm:$0xff] }
 0x546   : > { %5945 = vrcp.f32 %v2400_v21 }
 0x547   : > { %v5940_v25 = vpop.eup %5939  ;;  %5542 = vmatprep.mubr.msk.bf16.mxu1 %vm676_vm0, %v2581_v27 }
 0x548   : > { %v5942_v23 = vpop.eup %5941  ;;  %v2526_v22 = vmul.f32 %v5940_v25, %v7004_v36 }
 0x549   : > { %v2525_v51 = vmul.f32 %v5942_v23, %v7000_v26  ;;  %v6119_v26 = vld [vmem:[%s6396_s21 + $0x88] sm:$0xff] }
 0x54a   : > { %v2558_v50 = vmul.f32 %v6117_v20, %v2526_v22 }
 0x54b   : > { %v2557_v41 = vmul.f32 %v6118_v33, %v2525_v51  ;;  %v6128_v33 = vld [vmem:[%s6396_s21 + $0xc0] sm:$0xff] }
 0x54c   : > { %v5507_v43 = vpop.f32.mrb[98].mxu0 }
 0x54d   : > { %5947 = vrcp.f32 %v5507_v43  ;;  %v2410_v0 = vpop.f32.mrb[99].mxu0  ;;  %v2582_v1 = vpack.c.bf16 %v2558_v50, %v2557_v41  ;;  %v6127_v50 = vld [vmem:[%s6396_s21 + $0xc8] sm:$0xff] }
 0x54e   : > { %5949 = vrcp.f32 %v2410_v0 }
 0x54f   : > { %v5944_v48 = vpop.eup %5943  ;;  %5543 = vmatmul.mubr.msk.bf16.gmra.mrb[124].mxu1 %vm676_vm0, %v2582_v1 }
 0x550   : > { %v5946_v34 = vpop.eup %5945  ;;  %v2528_v63 = vmul.f32 %v5944_v48, %v7016_v42  ;;  %v5840_v48 = vld [vmem:[%s8076_s9 + $0x10] sm:$0xff]  }
 0x551   : > { %v2527_v36 = vmul.f32 %v5946_v34, %v7012_v40  ;;  %v6121_v40 = vld [vmem:[%s6396_s21 + $0x98] sm:$0xff]  ;;  %5566 = vmatprep.subr.bf16.mxu0 %v5840_v48 }
 0x552   : > { %v2560_v19 = vmul.f32 %v6119_v26, %v2528_v63  ;;  %5567 = vmatpush3.bf16.msra.mxu0 %v5840_v48  ;;  %v6129_v26 = vld [vmem:[%s6396_s21 + $0xd8] sm:$0xff] }
 0x553   : > { %v2559_v62 = vmul.f32 %v6120_v53, %v2527_v36  ;;  %v5841_v36 = vld [vmem:[%s8076_s9 + $0x18] sm:$0xff]   ;;  %v6130_v53 = vld [vmem:[%s6396_s21 + $0xd0] sm:$0xff] }
 0x554   : > { %v5510_v4 = vpop.f32.mrb[100].mxu0  ;;  %5568 = vmatprep.subr.bf16.mxu0 %v5841_v36 }
 0x555   : > { %5951 = vrcp.f32 %v5510_v4  ;;  %v2420_v15 = vpop.f32.mrb[101].mxu0  ;;  %v2583_v9 = vpack.c.bf16 %v2560_v19, %v2559_v62 }
 0x556   : > { %5953 = vrcp.f32 %v2420_v15  ;;  %5569 = vmatpush3.bf16.msra.mxu0 %v5841_v36 }
 0x557   : > { %v5948_v29 = vpop.eup %5947  ;;  %5546 = vmatprep.mubr.msk.bf16.mxu1 %vm676_vm0, %v2583_v9  ;;  %5638 = vmatprep.subr.msk.mxu0 %vm2250_vm1, %v6908_v44 }
 0x558   : > { %v5950_v57 = vpop.eup %5949  ;;  %v2530_v45 = vmul.f32 %v5948_v29, %v7028_v56 }
 0x559   : > { %v2529_v42 = vmul.f32 %v5950_v57, %v7024_v49  ;;  %v6123_v49 = vld [vmem:[%s6396_s21 + $0xa8] sm:$0xff] }
 0x55a   : > { %v2562_v61 = vmul.f32 %v6121_v40, %v2530_v45  ;;  %v6131_v45 = vld [vmem:[%s6396_s21 + $0xe8] sm:$0xff]  ;;  %v6132_v40 = vld [vmem:[%s6396_s21 + $0xe0] sm:$0xff] }
 0x55b   : > { %v2561_v18 = vmul.f32 %v6122_v28, %v2529_v42 }
 0x55c   : > { %v5513_v7 = vpop.f32.mrb[102].mxu0 }
 0x55d   : > { %5955 = vrcp.f32 %v5513_v7  ;;  %v2430_v55 = vpop.f32.mrb[103].mxu0  ;;  %v2584_v35 = vpack.c.bf16 %v2562_v61, %v2561_v18 }
 0x55e   : > { %5957 = vrcp.f32 %v2430_v55 }
 0x55f   : > { %v5952_v31 = vpop.eup %5951  ;;  %5547 = vmatmul.mubr.msk.bf16.gmra.mrb[128].mxu1 %vm676_vm0, %v2584_v35 }
 0x560   : > { %v5954_v16 = vpop.eup %5953  ;;  %v2532_v47 = vmul.f32 %v5952_v31, %v7040_v13  ;;  %v6133_v31 = vld [vmem:[%s6396_s21 + $0xf8] sm:$0xff] }
 0x561   : > { %v2531_v56 = vmul.f32 %v5954_v16, %v7036_v8  ;;  %v6125_v8 = vld [vmem:[%s6396_s21 + $0xb8] sm:$0xff] }
 0x562   : > { %v2564_v11 = vmul.f32 %v6123_v49, %v2532_v47  ;;  %v6134_v47 = vld [vmem:[%s6396_s21 + $0xf0] sm:$0xff] }
 0x563   : > { %v2563_v24 = vmul.f32 %v6124_v46, %v2531_v56 }
 0x564   : > { %v5516_v3 = vpop.f32.mrb[104].mxu0 }
 0x565   : > { %5959 = vrcp.f32 %v5516_v3  ;;  %v2440_v6 = vpop.f32.mrb[105].mxu0  ;;  %v2585_v14 = vpack.c.bf16 %v2564_v11, %v2563_v24 }
 0x566   : > { %5961 = vrcp.f32 %v2440_v6 }
 0x567   : > { %v5956_v17 = vpop.eup %5955  ;;  %5550 = vmatprep.mubr.msk.bf16.mxu1 %vm676_vm0, %v2585_v14 }
 0x568   : > { %v5958_v37 = vpop.eup %5957  ;;  %v2534_v2 = vmul.f32 %v5956_v17, %v7052_v60 }
 0x569   : > { %v2533_v13 = vmul.f32 %v5958_v37, %v7048_v30 }
 0x56a   : > { %v2566_v52 = vmul.f32 %v6125_v8, %v2534_v2 }
 0x56b   : > { %v2565_v21 = vmul.f32 %v6126_v59, %v2533_v13 }
 0x56c   : > { %v5519_v27 = vpop.f32.mrb[106].mxu0 }
 0x56d   : > { %5963 = vrcp.f32 %v5519_v27  ;;  %v2450_v25 = vpop.f32.mrb[107].mxu0  ;;  %v2586_v23 = vpack.c.bf16 %v2566_v52, %v2565_v21 }
 0x56e   : > { %5965 = vrcp.f32 %v2450_v25 }
 0x56f   : > { %v5960_v22 = vpop.eup %5959  ;;  %5551 = vmatmul.mubr.msk.bf16.gmra.mrb[132].mxu1 %vm676_vm0, %v2586_v23 }
 0x570   : > { %v5962_v51 = vpop.eup %5961  ;;  %v2536_v20 = vmul.f32 %v5960_v22, %v7064_v5 }
 0x571   : > { %v2535_v60 = vmul.f32 %v5962_v51, %v7060_v39 }
 0x572   : > { %v2568_v30 = vmul.f32 %v6127_v50, %v2536_v20 }
 0x573   : > { %v2567_v41 = vmul.f32 %v6128_v33, %v2535_v60 }
 0x574   : > { %v5522_v43 = vpop.f32.mrb[108].mxu0 }
 0x575   : > { %5967 = vrcp.f32 %v5522_v43  ;;  %v2460_v0 = vpop.f32.mrb[109].mxu0  ;;  %v2587_v1 = vpack.c.bf16 %v2568_v30, %v2567_v41 }
 0x576   : > { %5969 = vrcp.f32 %v2460_v0 }
 0x577   : > { %v5964_v34 = vpop.eup %5963  ;;  %5554 = vmatprep.mubr.msk.bf16.mxu1 %vm676_vm0, %v2587_v1 }
 0x578   : > { %v5966_v39 = vpop.eup %5965  ;;  %v2538_v5 = vmul.f32 %v5964_v34, %v7076_v32 }
 0x579   : > { %v2537_v63 = vmul.f32 %v5966_v39, %v7072_v58 }
 0x57a   : > { %v2570_v19 = vmul.f32 %v6129_v26, %v2538_v5 }
 0x57b   : > { %v2569_v62 = vmul.f32 %v6130_v53, %v2537_v63 }
 0x57c   : > { %v5525_v4 = vpop.f32.mrb[110].mxu0 }
 0x57d   : > { %5971 = vrcp.f32 %v5525_v4  ;;  %v2470_v15 = vpop.f32.mrb[111].mxu0  ;;  %v2588_v9 = vpack.c.bf16 %v2570_v19, %v2569_v62 }
 0x57e   : > { %5973 = vrcp.f32 %v2470_v15 }
 0x57f   : > { %v5968_v58 = vpop.eup %5967  ;;  %5555 = vmatmul.mubr.msk.bf16.gmra.mrb[136].mxu1 %vm676_vm0, %v2588_v9 }
 0x580   : > { %v5970_v32 = vpop.eup %5969  ;;  %v2540_v29 = vmul.f32 %v5968_v58, %v7088_v54 }
 0x581   : > { %v2539_v57 = vmul.f32 %v5970_v32, %v7084_v10  ;;  %v7235_v10 = vld [vmem:[%s8075_s8] ss:$0 sm:$0xff] }
 0x582   : > { %v2572_v42 = vmul.f32 %v6131_v45, %v2540_v29 }
 0x583   : > { %v2571_v61 = vmul.f32 %v6132_v40, %v2539_v57 }
 0x585   : > { %v2589_v28 = vpack.c.bf16 %v2572_v42, %v2571_v61 }
 0x587   : > { %v5972_v18 = vpop.eup %5971  ;;  %5558 = vmatprep.mubr.msk.bf16.mxu1 %vm676_vm0, %v2589_v28 }
 0x588   : > { %v5974_v7 = vpop.eup %5973  ;;  %v2542_v55 = vmul.f32 %v5972_v18, %v7096_v38 }
 0x589   : > { %v2541_v35 = vmul.f32 %v5974_v7, %v7092_v12 }
 0x58a   : > { %v2574_v16 = vmul.f32 %v6133_v31, %v2542_v55 }
 0x58b   : > { %v2573_v56 = vmul.f32 %v6134_v47, %v2541_v35 }
 0x58d   : > { %v2590_v54 = vpack.c.bf16 %v2574_v16, %v2573_v56 }
 0x58f   : > { %5559 = vmatmul.mubr.msk.bf16.gmra.mrb[140].mxu1 %vm676_vm0, %v2590_v54 }
 0x5f4   : > { %v5532_v49 = vpop.f32.mrb[112].mxu1 }
 0x5f5   : > { %v2705_v11 = vadd.f32 %v5532_v49, %v7235_v10  ;;  %v2696_v46 = vpop.f32.mrb[113].mxu1 }
 0x5f6   : > { %v2697_v38 = vadd.f32 %v7235_v10, %v2696_v46  ;;  %v5533_v24 = vpop.f32.mrb[114].mxu1 }
 0x5f7   : > { %v2708_v12 = vadd.f32 %v5533_v24, %v7235_v10  ;;  %v2699_v3 = vpop.f32.mrb[115].mxu1  ;;  %v2825_v14 = vmax.f32 %v2705_v11, 0.0 }
 0x5f8   : > { %v2700_v6 = vadd.f32 %v7235_v10, %v2699_v3  ;;  %v2823_v37 = vmax.f32 %v2697_v38, 0.0 }
 0x5f9   : > { %v2826_v17 = vmax.f32 %v2708_v12, 0.0 }
 0x5fa   : > { %v2824_v2 = vmax.f32 %v2700_v6, 0.0 }
 0x5fb   : > { %v2856_v13 = vpack.c.bf16 %v2826_v17, %v2825_v14 }
 0x5fc   : > { %v2855_v8 = vpack.c.bf16 %v2824_v2, %v2823_v37 }
 0x5fe   : > { %5570 = vmatprep.mubr.msk.bf16.mxu0 %vm2910_vm3, %v2855_v8 }
 0x5ff   : > { %5571 = vmatmul.mubr.msk.bf16.vlgmr.msra.gmra.mrb[112].mxu0 %vm2910_vm3, %v2856_v13 }
 0x600   : > { %5639 = vmatpush3.msk.msra.mxu0 %vm2250_vm1, %v6908_v44 }
 0x602   : > { %v5536_v52 = vpop.f32.mrb[116].mxu1 }
 0x603   : > { %v2721_v59 = vadd.f32 %v5536_v52, %v7235_v10  ;;  %v2712_v21 = vpop.f32.mrb[117].mxu1 }
 0x604   : > { %v2713_v27 = vadd.f32 %v7235_v10, %v2712_v21  ;;  %v5537_v25 = vpop.f32.mrb[118].mxu1 }
 0x605   : > { %v2724_v23 = vadd.f32 %v5537_v25, %v7235_v10  ;;  %v2715_v22 = vpop.f32.mrb[119].mxu1  ;;  %v2829_v20 = vmax.f32 %v2721_v59, 0.0 }
 0x606   : > { %v2716_v51 = vadd.f32 %v7235_v10, %v2715_v22  ;;  %v2827_v50 = vmax.f32 %v2713_v27, 0.0 }
 0x607   : > { %v2830_v60 = vmax.f32 %v2724_v23, 0.0 }
 0x608   : > { %v2828_v30 = vmax.f32 %v2716_v51, 0.0 }
 0x609   : > { %v2858_v33 = vpack.c.bf16 %v2830_v60, %v2829_v20 }
 0x60a   : > { %v2857_v41 = vpack.c.bf16 %v2828_v30, %v2827_v50  ;;  %v5842_v50 = vld [vmem:[%s8078_s11] sm:$0xff]  }
 0x60b   : > { %5602 = vmatprep.subr.bf16.mxu1 %v5842_v50 }
 0x60c   : > { %5574 = vmatprep.mubr.msk.bf16.mxu0 %vm2910_vm3, %v2857_v41  ;;  %5603 = vmatpush3.bf16.msra.mxu1 %v5842_v50 }
 0x60d   : > { %5575 = vmatmul.mubr.msk.bf16.gmra.mrb[116].mxu0 %vm2910_vm3, %v2858_v33 }
 0x612   : > { %v5540_v44 = vpop.f32.mrb[120].mxu1 }
 0x613   : > { %v2737_v43 = vadd.f32 %v5540_v44, %v7235_v10  ;;  %v2728_v0 = vpop.f32.mrb[121].mxu1 }
 0x614   : > { %v2729_v1 = vadd.f32 %v7235_v10, %v2728_v0  ;;  %v5541_v48 = vpop.f32.mrb[122].mxu1 }
 0x615   : > { %v2740_v34 = vadd.f32 %v5541_v48, %v7235_v10  ;;  %v2731_v39 = vpop.f32.mrb[123].mxu1  ;;  %v2833_v63 = vmax.f32 %v2737_v43, 0.0  ;;  %v5843_v48 = vld [vmem:[%s8078_s11 + $0x8] sm:$0xff]  }
 0x616   : > { %v2732_v5 = vadd.f32 %v7235_v10, %v2731_v39  ;;  %v2831_v26 = vmax.f32 %v2729_v1, 0.0  ;;  %5604 = vmatprep.subr.bf16.mxu1 %v5843_v48 }
 0x617   : > { %v2834_v36 = vmax.f32 %v2740_v34, 0.0  ;;  %5605 = vmatpush3.bf16.msra.mxu1 %v5843_v48 }
 0x618   : > { %v2832_v19 = vmax.f32 %v2732_v5, 0.0 }
 0x619   : > { %v2860_v53 = vpack.c.bf16 %v2834_v36, %v2833_v63 }
 0x61a   : > { %v2859_v62 = vpack.c.bf16 %v2832_v19, %v2831_v26 }
 0x61c   : > { %5578 = vmatprep.mubr.msk.bf16.mxu0 %vm2910_vm3, %v2859_v62 }
 0x61d   : > { %5579 = vmatmul.mubr.msk.bf16.gmra.mrb[120].mxu0 %vm2910_vm3, %v2860_v53 }
 0x622   : > { %v5544_v4 = vpop.f32.mrb[124].mxu1 }
 0x623   : > { %v2753_v15 = vadd.f32 %v5544_v4, %v7235_v10  ;;  %v2744_v9 = vpop.f32.mrb[125].mxu1 }
 0x624   : > { %v2745_v58 = vadd.f32 %v7235_v10, %v2744_v9  ;;  %v5545_v32 = vpop.f32.mrb[126].mxu1 }
 0x625   : > { %v2756_v29 = vadd.f32 %v5545_v32, %v7235_v10  ;;  %v2747_v57 = vpop.f32.mrb[127].mxu1  ;;  %v2837_v42 = vmax.f32 %v2753_v15, 0.0 }
 0x626   : > { %v2748_v45 = vadd.f32 %v7235_v10, %v2747_v57  ;;  %v2835_v61 = vmax.f32 %v2745_v58, 0.0 }
 0x627   : > { %v2838_v40 = vmax.f32 %v2756_v29, 0.0 }
 0x628   : > { %v2836_v28 = vmax.f32 %v2748_v45, 0.0 }
 0x629   : > { %v2862_v18 = vpack.c.bf16 %v2838_v40, %v2837_v42  ;;  %v7296_v40 = vld [vmem:[%s8077_s10] ss:$0 sm:$0xff] }
 0x62a   : > { %v2861_v7 = vpack.c.bf16 %v2836_v28, %v2835_v61 }
 0x62c   : > { %5582 = vmatprep.mubr.msk.bf16.mxu0 %vm2910_vm3, %v2861_v7 }
 0x62d   : > { %5583 = vmatmul.mubr.msk.bf16.gmra.mrb[124].mxu0 %vm2910_vm3, %v2862_v18 }
 0x632   : > { %v5548_v55 = vpop.f32.mrb[128].mxu1 }
 0x633   : > { %v2769_v35 = vadd.f32 %v5548_v55, %v7235_v10  ;;  %v2760_v31 = vpop.f32.mrb[129].mxu1 }
 0x634   : > { %v2761_v16 = vadd.f32 %v7235_v10, %v2760_v31  ;;  %v5549_v47 = vpop.f32.mrb[130].mxu1 }
 0x635   : > { %v2772_v56 = vadd.f32 %v5549_v47, %v7235_v10  ;;  %v2763_v54 = vpop.f32.mrb[131].mxu1  ;;  %v2841_v11 = vmax.f32 %v2769_v35, 0.0 }
 0x636   : > { %v2764_v49 = vadd.f32 %v7235_v10, %v2763_v54  ;;  %v2839_v38 = vmax.f32 %v2761_v16, 0.0 }
 0x637   : > { %v2842_v46 = vmax.f32 %v2772_v56, 0.0 }
 0x638   : > { %v2840_v24 = vmax.f32 %v2764_v49, 0.0 }
 0x639   : > { %v2864_v12 = vpack.c.bf16 %v2842_v46, %v2841_v11 }
 0x63a   : > { %v2863_v3 = vpack.c.bf16 %v2840_v24, %v2839_v38 }
 0x63c   : > { %5586 = vmatprep.mubr.msk.bf16.mxu0 %vm2910_vm3, %v2863_v3 }
 0x63d   : > { %5587 = vmatmul.mubr.msk.bf16.gmra.mrb[128].mxu0 %vm2910_vm3, %v2864_v12 }
 0x642   : > { %v5552_v6 = vpop.f32.mrb[132].mxu1 }
 0x643   : > { %v2785_v14 = vadd.f32 %v5552_v6, %v7235_v10  ;;  %v2776_v17 = vpop.f32.mrb[133].mxu1 }
 0x644   : > { %v2777_v37 = vadd.f32 %v7235_v10, %v2776_v17  ;;  %v5553_v2 = vpop.f32.mrb[134].mxu1 }
 0x645   : > { %v2788_v13 = vadd.f32 %v5553_v2, %v7235_v10  ;;  %v2779_v8 = vpop.f32.mrb[135].mxu1  ;;  %v2845_v59 = vmax.f32 %v2785_v14, 0.0 }
 0x646   : > { %v2780_v52 = vadd.f32 %v7235_v10, %v2779_v8  ;;  %v2843_v27 = vmax.f32 %v2777_v37, 0.0 }
 0x647   : > { %v2846_v21 = vmax.f32 %v2788_v13, 0.0 }
 0x648   : > { %v2844_v25 = vmax.f32 %v2780_v52, 0.0 }
 0x649   : > { %v2866_v23 = vpack.c.bf16 %v2846_v21, %v2845_v59 }
 0x64a   : > { %v2865_v22 = vpack.c.bf16 %v2844_v25, %v2843_v27 }
 0x64c   : > { %5590 = vmatprep.mubr.msk.bf16.mxu0 %vm2910_vm3, %v2865_v22 }
 0x64d   : > { %5591 = vmatmul.mubr.msk.bf16.gmra.mrb[132].mxu0 %vm2910_vm3, %v2866_v23 }
 0x652   : > { %v5556_v51 = vpop.f32.mrb[136].mxu1 }
 0x653   : > { %v2801_v20 = vadd.f32 %v5556_v51, %v7235_v10  ;;  %v2792_v60 = vpop.f32.mrb[137].mxu1 }
 0x654   : > { %v2793_v30 = vadd.f32 %v7235_v10, %v2792_v60  ;;  %v5557_v33 = vpop.f32.mrb[138].mxu1 }
 0x655   : > { %v2804_v41 = vadd.f32 %v5557_v33, %v7235_v10  ;;  %v2795_v44 = vpop.f32.mrb[139].mxu1  ;;  %v2849_v0 = vmax.f32 %v2801_v20, 0.0 }
 0x656   : > { %v2796_v43 = vadd.f32 %v7235_v10, %v2795_v44  ;;  %v2847_v34 = vmax.f32 %v2793_v30, 0.0 }
 0x657   : > { %v2850_v1 = vmax.f32 %v2804_v41, 0.0 }
 0x658   : > { %v2848_v39 = vmax.f32 %v2796_v43, 0.0 }
 0x659   : > { %v2868_v5 = vpack.c.bf16 %v2850_v1, %v2849_v0 }
 0x65a   : > { %v2867_v63 = vpack.c.bf16 %v2848_v39, %v2847_v34 }
 0x65c   : > { %5594 = vmatprep.mubr.msk.bf16.mxu0 %vm2910_vm3, %v2867_v63 }
 0x65d   : > { %5595 = vmatmul.mubr.msk.bf16.gmra.mrb[136].mxu0 %vm2910_vm3, %v2868_v5 }
 0x662   : > { %v5560_v36 = vpop.f32.mrb[140].mxu1 }
 0x663   : > { %v2817_v26 = vadd.f32 %v5560_v36, %v7235_v10  ;;  %v2808_v19 = vpop.f32.mrb[141].mxu1 }
 0x664   : > { %v2809_v53 = vadd.f32 %v7235_v10, %v2808_v19  ;;  %v5561_v62 = vpop.f32.mrb[142].mxu1 }
 0x665   : > { %v2820_v4 = vadd.f32 %v5561_v62, %v7235_v10  ;;  %v2811_v15 = vpop.f32.mrb[143].mxu1  ;;  %v2853_v58 = vmax.f32 %v2817_v26, 0.0 }
 0x666   : > { %v2812_v9 = vadd.f32 %v7235_v10, %v2811_v15  ;;  %v2851_v29 = vmax.f32 %v2809_v53, 0.0 }
 0x667   : > { %v2854_v32 = vmax.f32 %v2820_v4, 0.0 }
 0x668   : > { %v2852_v57 = vmax.f32 %v2812_v9, 0.0 }
 0x669   : > { %v2870_v45 = vpack.c.bf16 %v2854_v32, %v2853_v58 }
 0x66a   : > { %v2869_v42 = vpack.c.bf16 %v2852_v57, %v2851_v29 }
 0x66c   : > { %5598 = vmatprep.mubr.msk.bf16.mxu0 %vm2910_vm3, %v2869_v42 }
 0x66d   : > { %5599 = vmatmul.mubr.msk.bf16.gmra.mrb[140].mxu0 %vm2910_vm3, %v2870_v45 }
 0x6d2   : > { %v5572_v61 = vpop.f32.mrb[112].mxu0 }
 0x6d3   : > { %v3002_v28 = vadd.f32 %v5572_v61, %v7296_v40  ;;  %v2993_v18 = vpop.f32.mrb[113].mxu0 }
 0x6d4   : > { %v2994_v10 = vadd.f32 %v7296_v40, %v2993_v18  ;;  %v5573_v7 = vpop.f32.mrb[114].mxu0 }
 0x6d5   : > { %v3005_v55 = vadd.f32 %v5573_v7, %v7296_v40  ;;  %v2996_v35 = vpop.f32.mrb[115].mxu0  ;;  %v3122_v16 = vmax.f32 %v3002_v28, 0.0 }
 0x6d6   : > { %v2997_v31 = vadd.f32 %v7296_v40, %v2996_v35  ;;  %v3120_v56 = vmax.f32 %v2994_v10, 0.0 }
 0x6d7   : > { %v3123_v47 = vmax.f32 %v3005_v55, 0.0 }
 0x6d8   : > { %v3121_v54 = vmax.f32 %v2997_v31, 0.0 }
 0x6d9   : > { %v3153_v49 = vpack.c.bf16 %v3123_v47, %v3122_v16 }
 0x6da   : > { %v3152_v11 = vpack.c.bf16 %v3121_v54, %v3120_v56 }
 0x6dc   : > { %5606 = vmatprep.mubr.msk.bf16.mxu1 %vm676_vm0, %v3152_v11 }
 0x6dd   : > { %5607 = vmatmul.mubr.msk.bf16.vlgmr.msra.gmra.mrb[144].mxu1 %vm676_vm0, %v3153_v49 }
 0x6e0   : > { %v5576_v46 = vpop.f32.mrb[116].mxu0 }
 0x6e1   : > { %v3018_v38 = vadd.f32 %v5576_v46, %v7296_v40  ;;  %v3009_v24 = vpop.f32.mrb[117].mxu0 }
 0x6e2   : > { %v3010_v12 = vadd.f32 %v7296_v40, %v3009_v24  ;;  %v5577_v3 = vpop.f32.mrb[118].mxu0 }
 0x6e3   : > { %v3021_v6 = vadd.f32 %v5577_v3, %v7296_v40  ;;  %v3012_v14 = vpop.f32.mrb[119].mxu0  ;;  %v3126_v37 = vmax.f32 %v3018_v38, 0.0 }
 0x6e4   : > { %v3013_v17 = vadd.f32 %v7296_v40, %v3012_v14  ;;  %v3124_v13 = vmax.f32 %v3010_v12, 0.0 }
 0x6e5   : > { %v3127_v2 = vmax.f32 %v3021_v6, 0.0 }
 0x6e6   : > { %v3125_v8 = vmax.f32 %v3013_v17, 0.0 }
 0x6e7   : > { %v3155_v52 = vpack.c.bf16 %v3127_v2, %v3126_v37 }
 0x6e8   : > { %v3154_v59 = vpack.c.bf16 %v3125_v8, %v3124_v13 }
 0x6ea   : > { %5610 = vmatprep.mubr.msk.bf16.mxu1 %vm676_vm0, %v3154_v59 }
 0x6eb   : > { %5611 = vmatmul.mubr.msk.bf16.gmra.mrb[148].mxu1 %vm676_vm0, %v3155_v52 }
 0x6f0   : > { %v5580_v21 = vpop.f32.mrb[120].mxu0 }
 0x6f1   : > { %v3034_v27 = vadd.f32 %v5580_v21, %v7296_v40  ;;  %v3025_v25 = vpop.f32.mrb[121].mxu0 }
 0x6f2   : > { %v3026_v23 = vadd.f32 %v7296_v40, %v3025_v25  ;;  %v5581_v22 = vpop.f32.mrb[122].mxu0 }
 0x6f3   : > { %v3037_v51 = vadd.f32 %v5581_v22, %v7296_v40  ;;  %v3028_v20 = vpop.f32.mrb[123].mxu0  ;;  %v3130_v50 = vmax.f32 %v3034_v27, 0.0 }
 0x6f4   : > { %v3029_v60 = vadd.f32 %v7296_v40, %v3028_v20  ;;  %v3128_v33 = vmax.f32 %v3026_v23, 0.0 }
 0x6f5   : > { %v3131_v30 = vmax.f32 %v3037_v51, 0.0 }
 0x6f6   : > { %v3129_v41 = vmax.f32 %v3029_v60, 0.0 }
 0x6f7   : > { %v3157_v44 = vpack.c.bf16 %v3131_v30, %v3130_v50 }
 0x6f8   : > { %v3156_v43 = vpack.c.bf16 %v3129_v41, %v3128_v33 }
 0x6fa   : > { %5614 = vmatprep.mubr.msk.bf16.mxu1 %vm676_vm0, %v3156_v43 }
 0x6fb   : > { %5615 = vmatmul.mubr.msk.bf16.gmra.mrb[152].mxu1 %vm676_vm0, %v3157_v44 }
 0x700   : > { %v5584_v0 = vpop.f32.mrb[124].mxu0 }
 0x701   : > { %v3050_v1 = vadd.f32 %v5584_v0, %v7296_v40  ;;  %v3041_v48 = vpop.f32.mrb[125].mxu0 }
 0x702   : > { %v3042_v34 = vadd.f32 %v7296_v40, %v3041_v48  ;;  %v5585_v39 = vpop.f32.mrb[126].mxu0 }
 0x703   : > { %v3053_v5 = vadd.f32 %v5585_v39, %v7296_v40  ;;  %v3044_v63 = vpop.f32.mrb[127].mxu0  ;;  %v3134_v26 = vmax.f32 %v3050_v1, 0.0 }
 0x704   : > { %v3045_v36 = vadd.f32 %v7296_v40, %v3044_v63  ;;  %v3132_v53 = vmax.f32 %v3042_v34, 0.0 }
 0x705   : > { %v3135_v19 = vmax.f32 %v3053_v5, 0.0 }
 0x706   : > { %v3133_v62 = vmax.f32 %v3045_v36, 0.0  ;;  %v7349_v36 = vld [vmem:[%s8079_s12] ss:$0 sm:$0xff] }
 0x707   : > { %v3159_v4 = vpack.c.bf16 %v3135_v19, %v3134_v26 }
 0x708   : > { %v3158_v15 = vpack.c.bf16 %v3133_v62, %v3132_v53 }
 0x70a   : > { %5618 = vmatprep.mubr.msk.bf16.mxu1 %vm676_vm0, %v3158_v15 }
 0x70b   : > { %5619 = vmatmul.mubr.msk.bf16.gmra.mrb[156].mxu1 %vm676_vm0, %v3159_v4 }
 0x710   : > { %v5588_v9 = vpop.f32.mrb[128].mxu0 }
 0x711   : > { %v3066_v58 = vadd.f32 %v5588_v9, %v7296_v40  ;;  %v3057_v32 = vpop.f32.mrb[129].mxu0 }
 0x712   : > { %v3058_v29 = vadd.f32 %v7296_v40, %v3057_v32  ;;  %v5589_v57 = vpop.f32.mrb[130].mxu0 }
 0x713   : > { %v3069_v45 = vadd.f32 %v5589_v57, %v7296_v40  ;;  %v3060_v42 = vpop.f32.mrb[131].mxu0  ;;  %v3138_v28 = vmax.f32 %v3066_v58, 0.0 }
 0x714   : > { %v3061_v61 = vadd.f32 %v7296_v40, %v3060_v42  ;;  %v3136_v10 = vmax.f32 %v3058_v29, 0.0 }
 0x715   : > { %v3139_v18 = vmax.f32 %v3069_v45, 0.0 }
 0x716   : > { %v3137_v7 = vmax.f32 %v3061_v61, 0.0 }
 0x717   : > { %v3161_v55 = vpack.c.bf16 %v3139_v18, %v3138_v28 }
 0x718   : > { %v3160_v35 = vpack.c.bf16 %v3137_v7, %v3136_v10 }
 0x71a   : > { %5622 = vmatprep.mubr.msk.bf16.mxu1 %vm676_vm0, %v3160_v35 }
 0x71b   : > { %5623 = vmatmul.mubr.msk.bf16.gmra.mrb[160].mxu1 %vm676_vm0, %v3161_v55 }
 0x720   : > { %v5592_v31 = vpop.f32.mrb[132].mxu0 }
 0x721   : > { %v3082_v16 = vadd.f32 %v5592_v31, %v7296_v40  ;;  %v3073_v47 = vpop.f32.mrb[133].mxu0 }
 0x722   : > { %v3074_v56 = vadd.f32 %v7296_v40, %v3073_v47  ;;  %v5593_v54 = vpop.f32.mrb[134].mxu0 }
 0x723   : > { %v3085_v49 = vadd.f32 %v5593_v54, %v7296_v40  ;;  %v3076_v11 = vpop.f32.mrb[135].mxu0  ;;  %v3142_v38 = vmax.f32 %v3082_v16, 0.0 }
 0x724   : > { %v3077_v46 = vadd.f32 %v7296_v40, %v3076_v11  ;;  %v3140_v12 = vmax.f32 %v3074_v56, 0.0 }
 0x725   : > { %v3143_v24 = vmax.f32 %v3085_v49, 0.0 }
 0x726   : > { %v3141_v3 = vmax.f32 %v3077_v46, 0.0 }
 0x727   : > { %v3163_v6 = vpack.c.bf16 %v3143_v24, %v3142_v38 }
 0x728   : > { %v3162_v14 = vpack.c.bf16 %v3141_v3, %v3140_v12 }
 0x72a   : > { %5626 = vmatprep.mubr.msk.bf16.mxu1 %vm676_vm0, %v3162_v14 }
 0x72b   : > { %5627 = vmatmul.mubr.msk.bf16.gmra.mrb[164].mxu1 %vm676_vm0, %v3163_v6 }
 0x730   : > { %v5596_v17 = vpop.f32.mrb[136].mxu0 }
 0x731   : > { %v3098_v37 = vadd.f32 %v5596_v17, %v7296_v40  ;;  %v3089_v2 = vpop.f32.mrb[137].mxu0 }
 0x732   : > { %v3090_v13 = vadd.f32 %v7296_v40, %v3089_v2  ;;  %v5597_v8 = vpop.f32.mrb[138].mxu0 }
 0x733   : > { %v3101_v52 = vadd.f32 %v5597_v8, %v7296_v40  ;;  %v3092_v59 = vpop.f32.mrb[139].mxu0  ;;  %v3146_v27 = vmax.f32 %v3098_v37, 0.0 }
 0x734   : > { %v3093_v21 = vadd.f32 %v7296_v40, %v3092_v59  ;;  %v3144_v23 = vmax.f32 %v3090_v13, 0.0 }
 0x735   : > { %v3147_v25 = vmax.f32 %v3101_v52, 0.0 }
 0x736   : > { %v3145_v22 = vmax.f32 %v3093_v21, 0.0 }
 0x737   : > { %v3165_v51 = vpack.c.bf16 %v3147_v25, %v3146_v27 }
 0x738   : > { %v3164_v20 = vpack.c.bf16 %v3145_v22, %v3144_v23 }
 0x73a   : > { %5630 = vmatprep.mubr.msk.bf16.mxu1 %vm676_vm0, %v3164_v20 }
 0x73b   : > { %5631 = vmatmul.mubr.msk.bf16.gmra.mrb[168].mxu1 %vm676_vm0, %v3165_v51 }
 0x740   : > { %v5600_v60 = vpop.f32.mrb[140].mxu0 }
 0x741   : > { %v3114_v50 = vadd.f32 %v5600_v60, %v7296_v40  ;;  %v3105_v30 = vpop.f32.mrb[141].mxu0 }
 0x742   : > { %v3106_v33 = vadd.f32 %v7296_v40, %v3105_v30  ;;  %v5601_v41 = vpop.f32.mrb[142].mxu0 }
 0x743   : > { %v3117_v44 = vadd.f32 %v5601_v41, %v7296_v40  ;;  %v3108_v43 = vpop.f32.mrb[143].mxu0  ;;  %v3150_v1 = vmax.f32 %v3114_v50, 0.0 }
 0x744   : > { %v3109_v0 = vadd.f32 %v7296_v40, %v3108_v43  ;;  %v3148_v34 = vmax.f32 %v3106_v33, 0.0 }
 0x745   : > { %v3151_v48 = vmax.f32 %v3117_v44, 0.0 }
 0x746   : > { %v3149_v39 = vmax.f32 %v3109_v0, 0.0 }
 0x747   : > { %v3167_v5 = vpack.c.bf16 %v3151_v48, %v3150_v1 }
 0x748   : > { %v3166_v63 = vpack.c.bf16 %v3149_v39, %v3148_v34 }
 0x74a   : > { %5634 = vmatprep.mubr.msk.bf16.mxu1 %vm676_vm0, %v3166_v63 }
 0x74b   : > { %5635 = vmatmul.mubr.msk.bf16.gmra.mrb[172].mxu1 %vm676_vm0, %v3167_v5 }
 0x7b0   : > { %v5608_v26 = vpop.f32.mrb[144].mxu1 }
 0x7b1   : > { %v3273_v19 = vpop.f32.mrb[145].mxu1  ;;  %v7352_v53 = vadd.f32 %v5608_v26, %v7349_v36 }
 0x7b2   : > { %v7355_v40 = vadd.f32 %v7349_v36, %v3273_v19  ;;  %v5609_v62 = vpop.f32.mrb[146].mxu1 }
 0x7b3   : > { %v3276_v4 = vpop.f32.mrb[147].mxu1  ;;  %v7359_v9 = vadd.f32 %v5609_v62, %v7349_v36  ;;  %v3402_v32 = vmax.f32 %v7352_v53, 0.0 }
 0x7b4   : > { %v3400_v15 = vmax.f32 %v7355_v40, 0.0  ;;  %v7362_v58 = vadd.f32 %v7349_v36, %v3276_v4 }
 0x7b5   : > { %v3403_v45 = vmax.f32 %v7359_v9, 0.0  ;;  %v3438_v61 = vsel %vm2153_vm2, %v3402_v32, -inf }
 0x7b6   : > { %v3401_v29 = vmax.f32 %v7362_v58, 0.0  ;;  %v3432_v57 = vsel %vm2153_vm2, %v3400_v15, -inf }
 0x7b7   : > { %3433 = vmax.xlane.f32.xlu0 %v3432_v57  ;;  %v3441_v28 = vsel %vm2153_vm2, %v3403_v45, -inf }
 0x7b8   : > { %v3435_v42 = vsel %vm2153_vm2, %v3401_v29, -inf }
 0x7b9   : > { %3436 = vmax.xlane.f32.xlu1 %v3435_v42 }
 0x7bb   : > { %3439 = vmax.xlane.f32.xlu0 %v3438_v61 }
 0x7bd   : > { %3442 = vmax.xlane.f32.xlu1 %v3441_v28 }
 0x7be   : > { %v5612_v18 = vpop.f32.mrb[148].mxu1 }
 0x7bf   : > { %v3289_v10 = vpop.f32.mrb[149].mxu1  ;;  %v7380_v7 = vadd.f32 %v5612_v18, %v7349_v36 }
 0x7c0   : > { %v7383_v55 = vadd.f32 %v7349_v36, %v3289_v10  ;;  %v5613_v35 = vpop.f32.mrb[150].mxu1 }
 0x7c1   : > { %v3292_v31 = vpop.f32.mrb[151].mxu1  ;;  %v7387_v47 = vadd.f32 %v5613_v35, %v7349_v36  ;;  %v3406_v54 = vmax.f32 %v7380_v7, 0.0 }
 0x7c2   : > { %v3404_v16 = vmax.f32 %v7383_v55, 0.0  ;;  %v7390_v56 = vadd.f32 %v7349_v36, %v3292_v31 }
 0x7c3   : > { %v3407_v46 = vmax.f32 %v7387_v47, 0.0  ;;  %v3450_v24 = vsel %vm2153_vm2, %v3406_v54, -inf }
 0x7c4   : > { %v3405_v49 = vmax.f32 %v7390_v56, 0.0  ;;  %v3444_v11 = vsel %vm2153_vm2, %v3404_v16, -inf }
 0x7c5   : > { %3445 = vmax.xlane.f32.xlu0 %v3444_v11  ;;  %v3453_v12 = vsel %vm2153_vm2, %v3407_v46, -inf }
 0x7c6   : > { %v3447_v38 = vsel %vm2153_vm2, %v3405_v49, -inf }
 0x7c7   : > { %3448 = vmax.xlane.f32.xlu1 %v3447_v38 }
 0x7c9   : > { %3451 = vmax.xlane.f32.xlu0 %v3450_v24 }
 0x7cb   : > { %3454 = vmax.xlane.f32.xlu1 %v3453_v12 }
 0x7ce   : > { %v5616_v3 = vpop.f32.mrb[152].mxu1 }
 0x7cf   : > { %v3305_v6 = vpop.f32.mrb[153].mxu1  ;;  %v7408_v14 = vadd.f32 %v5616_v3, %v7349_v36 }
 0x7d0   : > { %v7411_v17 = vadd.f32 %v7349_v36, %v3305_v6  ;;  %v5617_v37 = vpop.f32.mrb[154].mxu1 }
 0x7d1   : > { %v3308_v2 = vpop.f32.mrb[155].mxu1  ;;  %v7415_v8 = vadd.f32 %v5617_v37, %v7349_v36  ;;  %v3410_v59 = vmax.f32 %v7408_v14, 0.0 }
 0x7d2   : > { %v3408_v13 = vmax.f32 %v7411_v17, 0.0  ;;  %v7418_v52 = vadd.f32 %v7349_v36, %v3308_v2 }
 0x7d3   : > { %v3411_v25 = vmax.f32 %v7415_v8, 0.0  ;;  %v3462_v22 = vsel %vm2153_vm2, %v3410_v59, -inf }
 0x7d4   : > { %v3409_v21 = vmax.f32 %v7418_v52, 0.0  ;;  %v3456_v27 = vsel %vm2153_vm2, %v3408_v13, -inf }
 0x7d5   : > { %3457 = vmax.xlane.f32.xlu0 %v3456_v27  ;;  %v3465_v51 = vsel %vm2153_vm2, %v3411_v25, -inf }
 0x7d6   : > { %v3459_v23 = vsel %vm2153_vm2, %v3409_v21, -inf }
 0x7d7   : > { %3460 = vmax.xlane.f32.xlu1 %v3459_v23 }
 0x7d9   : > { %3463 = vmax.xlane.f32.xlu0 %v3462_v22 }
 0x7db   : > { %3466 = vmax.xlane.f32.xlu1 %v3465_v51 }
 0x7de   : > { %v5620_v20 = vpop.f32.mrb[156].mxu1 }
 0x7df   : > { %v3321_v60 = vpop.f32.mrb[157].mxu1  ;;  %v7436_v50 = vadd.f32 %v5620_v20, %v7349_v36 }
 0x7e0   : > { %v7439_v30 = vadd.f32 %v7349_v36, %v3321_v60  ;;  %v5621_v33 = vpop.f32.mrb[158].mxu1 }
 0x7e1   : > { %v3324_v41 = vpop.f32.mrb[159].mxu1  ;;  %v7443_v43 = vadd.f32 %v5621_v33, %v7349_v36  ;;  %v3414_v1 = vmax.f32 %v7436_v50, 0.0 }
 0x7e2   : > { %v3412_v44 = vmax.f32 %v7439_v30, 0.0  ;;  %v7446_v0 = vadd.f32 %v7349_v36, %v3324_v41 }
 0x7e3   : > { %v3415_v39 = vmax.f32 %v7443_v43, 0.0  ;;  %v3474_v63 = vsel %vm2153_vm2, %v3414_v1, -inf }
 0x7e4   : > { %v3413_v48 = vmax.f32 %v7446_v0, 0.0  ;;  %v3468_v34 = vsel %vm2153_vm2, %v3412_v44, -inf }
 0x7e5   : > { %3469 = vmax.xlane.f32.xlu0 %v3468_v34  ;;  %v3477_v26 = vsel %vm2153_vm2, %v3415_v39, -inf }
 0x7e6   : > { %v3471_v5 = vsel %vm2153_vm2, %v3413_v48, -inf }
 0x7e7   : > { %3472 = vmax.xlane.f32.xlu1 %v3471_v5 }
 0x7e9   : > { %3475 = vmax.xlane.f32.xlu0 %v3474_v63 }
 0x7eb   : > { %3478 = vmax.xlane.f32.xlu1 %v3477_v26 }
 0x7ee   : > { %v5624_v19 = vpop.f32.mrb[160].mxu1 }
 0x7ef   : > { %v3337_v62 = vpop.f32.mrb[161].mxu1  ;;  %v7464_v4 = vadd.f32 %v5624_v19, %v7349_v36 }
 0x7f0   : > { %v7467_v57 = vadd.f32 %v7349_v36, %v3337_v62  ;;  %v5625_v42 = vpop.f32.mrb[162].mxu1 }
 0x7f1   : > { %v3340_v61 = vpop.f32.mrb[163].mxu1  ;;  %v7471_v18 = vadd.f32 %v5625_v42, %v7349_v36  ;;  %v3418_v35 = vmax.f32 %v7464_v4, 0.0 }
 0x7f2   : > { %v3416_v28 = vmax.f32 %v7467_v57, 0.0  ;;  %v7474_v10 = vadd.f32 %v7349_v36, %v3340_v61 }
 0x7f3   : > { %v3419_v38 = vmax.f32 %v7471_v18, 0.0  ;;  %v3486_v12 = vsel %vm2153_vm2, %v3418_v35, -inf }
 0x7f4   : > { %v3417_v31 = vmax.f32 %v7474_v10, 0.0  ;;  %v3480_v11 = vsel %vm2153_vm2, %v3416_v28, -inf }
 0x7f5   : > { %3481 = vmax.xlane.f32.xlu0 %v3480_v11  ;;  %v3489_v3 = vsel %vm2153_vm2, %v3419_v38, -inf }
 0x7f6   : > { %v3483_v24 = vsel %vm2153_vm2, %v3417_v31, -inf }
 0x7f7   : > { %3484 = vmax.xlane.f32.xlu1 %v3483_v24 }
 0x7f9   : > { %3487 = vmax.xlane.f32.xlu0 %v3486_v12 }
 0x7fb   : > { %3490 = vmax.xlane.f32.xlu1 %v3489_v3 }
 0x7fe   : > { %v5628_v6 = vpop.f32.mrb[164].mxu1 }
 0x7ff   : > { %v3353_v37 = vpop.f32.mrb[165].mxu1  ;;  %v7492_v2 = vadd.f32 %v5628_v6, %v7349_v36 }
 0x800   : > { %v7495_v27 = vadd.f32 %v7349_v36, %v3353_v37  ;;  %v5629_v23 = vpop.f32.mrb[166].mxu1 }
 0x801   : > { %v3356_v22 = vpop.f32.mrb[167].mxu1  ;;  %v7499_v20 = vadd.f32 %v5629_v23, %v7349_v36  ;;  %v8110_v33 = vmax.f32 %v7492_v2, 0.0 }
 0x802   : > { %v8114_v51 = vmax.f32 %v7495_v27, 0.0  ;;  %v7502_v60 = vadd.f32 %v7349_v36, %v3356_v22 }
 0x803   : > { %v8108_v5 = vmax.f32 %v7499_v20, 0.0  ;;  %v3498_v26 = vsel %vm2153_vm2, %v8110_v33, -inf }
 0x804   : > { %v8112_v41 = vmax.f32 %v7502_v60, 0.0  ;;  %v3492_v34 = vsel %vm2153_vm2, %v8114_v51, -inf }
 0x805   : > { %3493 = vmax.xlane.f32.xlu0 %v3492_v34  ;;  %v3501_v19 = vsel %vm2153_vm2, %v8108_v5, -inf }
 0x806   : > { %v3495_v63 = vsel %vm2153_vm2, %v8112_v41, -inf }
 0x807   : > { %3496 = vmax.xlane.f32.xlu1 %v3495_v63 }
 0x809   : > { %3499 = vmax.xlane.f32.xlu0 %v3498_v26 }
 0x80b   : > { %3502 = vmax.xlane.f32.xlu1 %v3501_v19 }
 0x80e   : > { %v5632_v62 = vpop.f32.mrb[168].mxu1 }
 0x80f   : > { %v3369_v42 = vpop.f32.mrb[169].mxu1  ;;  %v7520_v61 = vadd.f32 %v5632_v62, %v7349_v36 }
 0x810   : > { %v7523_v11 = vadd.f32 %v7349_v36, %v3369_v42  ;;  %v5633_v24 = vpop.f32.mrb[170].mxu1 }
 0x811   : > { %v3372_v12 = vpop.f32.mrb[171].mxu1  ;;  %v7527_v6 = vadd.f32 %v5633_v24, %v7349_v36  ;;  %v8106_v23 = vmax.f32 %v7520_v61, 0.0 }
 0x812   : > { %v8105_v3 = vmax.f32 %v7523_v11, 0.0  ;;  %v7530_v37 = vadd.f32 %v7349_v36, %v3372_v12 }
 0x813   : > { %v8107_v63 = vmax.f32 %v7527_v6, 0.0  ;;  %v3510_v19 = vsel %vm2153_vm2, %v8106_v23, -inf }
 0x814   : > { %v8104_v22 = vmax.f32 %v7530_v37, 0.0  ;;  %v3504_v34 = vsel %vm2153_vm2, %v8105_v3, -inf }
 0x815   : > { %3505 = vmax.xlane.f32.xlu0 %v3504_v34  ;;  %v3513_v62 = vsel %vm2153_vm2, %v8107_v63, -inf }
 0x816   : > { %v3507_v26 = vsel %vm2153_vm2, %v8104_v22, -inf }
 0x817   : > { %3508 = vmax.xlane.f32.xlu1 %v3507_v26 }
 0x819   : > { %3511 = vmax.xlane.f32.xlu0 %v3510_v19 }
 0x81b   : > { %3514 = vmax.xlane.f32.xlu1 %v3513_v62 }
 0x81e   : > { %v5636_v42 = vpop.f32.mrb[172].mxu1 }
 0x81f   : > { %v3385_v24 = vpop.f32.mrb[173].mxu1  ;;  %v7548_v12 = vadd.f32 %v5636_v42, %v7349_v36 }
 0x820   : > { %v7551_v34 = vadd.f32 %v7349_v36, %v3385_v24  ;;  %v5637_v22 = vpop.f32.mrb[174].mxu1 }
 0x821   : > { %v3388_v26 = vpop.f32.mrb[175].mxu1  ;;  %v7555_v23 = vadd.f32 %v5637_v22, %v7349_v36  ;;  %v8113_v62 = vmax.f32 %v7548_v12, 0.0 }
 0x822   : > { %v8109_v3 = vmax.f32 %v7551_v34, 0.0  ;;  %v7558_v19 = vadd.f32 %v7349_v36, %v3388_v26 }
 0x823   : > { %v3431_v24 = vmax.f32 %v7555_v23, 0.0  ;;  %v3522_v36 = vsel %vm2153_vm2, %v8113_v62, -inf }
 0x824   : > { %v8111_v63 = vmax.f32 %v7558_v19, 0.0  ;;  %v3516_v42 = vsel %vm2153_vm2, %v8109_v3, -inf }
 0x825   : > { %3517 = vmax.xlane.f32.xlu0 %v3516_v42  ;;  %v3525_v22 = vsel %vm2153_vm2, %v3431_v24, -inf }
 0x826   : > { %v3519_v5 = vsel %vm2153_vm2, %v8111_v63, -inf }
 0x827   : > { %3520 = vmax.xlane.f32.xlu1 %v3519_v5 }
 0x829   : > { %3523 = vmax.xlane.f32.xlu0 %v3522_v36 }
 0x82b   : > { %3526 = vmax.xlane.f32.xlu1 %v3525_v22 }
 0x844   : > { %v3434_v26 = vpop.xlane.xlu0 %3433 }
 0x845   : > { %v3528_v42 = vsub.f32 %v3400_v15, %v3434_v26 }
 0x846   : > { %v3437_v3 = vpop.xlane.xlu1 %3436 }
 0x847   : > { %v3560_v33 = vmul.f32 1.442695, %v3528_v42  ;;  %v3529_v63 = vsub.f32 %v3401_v29, %v3437_v3 }
 0x848   : > { %v3440_v5 = vpop.xlane.xlu0 %3439 }
 0x849   : > { %5975 = vpow2.f32 %v3560_v33  ;;  %v3562_v41 = vmul.f32 1.442695, %v3529_v63  ;;  %v3530_v36 = vsub.f32 %v3402_v32, %v3440_v5 }
 0x84a   : > { %v3443_v62 = vpop.xlane.xlu1 %3442 }
 0x84b   : > { %5977 = vpow2.f32 %v3562_v41  ;;  %v3564_v51 = vmul.f32 1.442695, %v3530_v36  ;;  %v3531_v22 = vsub.f32 %v3403_v45, %v3443_v62 }
 0x84d   : > { %5979 = vpow2.f32 %v3564_v51  ;;  %v3566_v40 = vmul.f32 1.442695, %v3531_v22 }
 0x84f   : > { %5981 = vpow2.f32 %v3566_v40 }
 0x852   : > { %v3446_v15 = vpop.xlane.xlu0 %3445 }
 0x853   : > { %v7583_v26 = vpop.eup %5975  ;;  %v3532_v58 = vsub.f32 %v3404_v16, %v3446_v15 }
 0x854   : > { %v3449_v29 = vpop.xlane.xlu1 %3448  ;;  %v3624_v53 = vsel %vm2153_vm2, %v7583_v26, 0.0 }
 0x855   : > { %v7589_v32 = vpop.eup %5977  ;;  %v3568_v33 = vmul.f32 1.442695, %v3532_v58  ;;  %v3533_v9 = vsub.f32 %v3405_v49, %v3449_v29  ;;  %3625 = vadd.xlane.f32.xlu0 %v3624_v53 }
 0x856   : > { %v3452_v45 = vpop.xlane.xlu0 %3451  ;;  %v3627_v51 = vsel %vm2153_vm2, %v7589_v32, 0.0 }
 0x857   : > { %v7595_v41 = vpop.eup %5979  ;;  %5983 = vpow2.f32 %v3568_v33  ;;  %v3570_v55 = vmul.f32 1.442695, %v3533_v9  ;;  %v3534_v16 = vsub.f32 %v3406_v54, %v3452_v45  ;;  %3628 = vadd.xlane.f32.xlu1 %v3627_v51 }
 0x858   : > { %v3455_v3 = vpop.xlane.xlu1 %3454  ;;  %v3630_v63 = vsel %vm2153_vm2, %v7595_v41, 0.0 }
 0x859   : > { %v7601_v62 = vpop.eup %5981  ;;  %5985 = vpow2.f32 %v3570_v55  ;;  %v3572_v56 = vmul.f32 1.442695, %v3534_v16  ;;  %v3535_v49 = vsub.f32 %v3407_v46, %v3455_v3  ;;  %3631 = vadd.xlane.f32.xlu0 %v3630_v63 }
 0x85a   : > { %v3633_v42 = vsel %vm2153_vm2, %v7601_v62, 0.0 }
 0x85b   : > { %5987 = vpow2.f32 %v3572_v56  ;;  %v3574_v5 = vmul.f32 1.442695, %v3535_v49  ;;  %3634 = vadd.xlane.f32.xlu1 %v3633_v42 }
 0x85d   : > { %5989 = vpow2.f32 %v3574_v5 }
 0x861   : > { %v7607_v7 = vpop.eup %5983 }
 0x862   : > { %v3458_v54 = vpop.xlane.xlu0 %3457  ;;  %v3636_v36 = vsel %vm2153_vm2, %v7607_v7, 0.0 }
 0x863   : > { %v7611_v22 = vpop.eup %5985  ;;  %v3536_v47 = vsub.f32 %v3408_v13, %v3458_v54  ;;  %3637 = vadd.xlane.f32.xlu0 %v3636_v36 }
 0x864   : > { %v3461_v46 = vpop.xlane.xlu1 %3460  ;;  %v3639_v40 = vsel %vm2153_vm2, %v7611_v22, 0.0 }
 0x865   : > { %v7617_v15 = vpop.eup %5987  ;;  %v3576_v58 = vmul.f32 1.442695, %v3536_v47  ;;  %v3537_v29 = vsub.f32 %v3409_v21, %v3461_v46  ;;  %3640 = vadd.xlane.f32.xlu1 %v3639_v40 }
 0x866   : > { %v3464_v53 = vpop.xlane.xlu0 %3463  ;;  %v3642_v33 = vsel %vm2153_vm2, %v7617_v15, 0.0 }
 0x867   : > { %v7623_v9 = vpop.eup %5989  ;;  %5991 = vpow2.f32 %v3576_v58  ;;  %v3578_v17 = vmul.f32 1.442695, %v3537_v29  ;;  %v3538_v13 = vsub.f32 %v3410_v59, %v3464_v53  ;;  %3643 = vadd.xlane.f32.xlu0 %v3642_v33 }
 0x868   : > { %v3467_v45 = vpop.xlane.xlu1 %3466  ;;  %v3645_v51 = vsel %vm2153_vm2, %v7623_v9, 0.0 }
 0x869   : > { %5993 = vpow2.f32 %v3578_v17  ;;  %v3580_v52 = vmul.f32 1.442695, %v3538_v13  ;;  %v3539_v21 = vsub.f32 %v3411_v25, %v3467_v45  ;;  %3646 = vadd.xlane.f32.xlu1 %v3645_v51 }
 0x86b   : > { %5995 = vpow2.f32 %v3580_v52  ;;  %v3582_v55 = vmul.f32 1.442695, %v3539_v21 }
 0x86d   : > { %5997 = vpow2.f32 %v3582_v55 }
 0x871   : > { %v7631_v16 = vpop.eup %5991 }
 0x872   : > { %v3470_v3 = vpop.xlane.xlu0 %3469  ;;  %v3648_v14 = vsel %vm2153_vm2, %v7631_v16, 0.0 }
 0x873   : > { %v7635_v59 = vpop.eup %5993  ;;  %v3540_v63 = vsub.f32 %v3412_v44, %v3470_v3  ;;  %3649 = vadd.xlane.f32.xlu0 %v3648_v14 }
 0x874   : > { %v3473_v56 = vpop.xlane.xlu1 %3472  ;;  %v3651_v8 = vsel %vm2153_vm2, %v7635_v59, 0.0 }
 0x875   : > { %v7641_v25 = vpop.eup %5995  ;;  %v3584_v49 = vmul.f32 1.442695, %v3540_v63  ;;  %v3541_v42 = vsub.f32 %v3413_v48, %v3473_v56  ;;  %3652 = vadd.xlane.f32.xlu1 %v3651_v8  ;;  %v8141_v56 = vmax.f32 %v7495_v27, 0.0 }
 0x876   : > { %v3476_v5 = vpop.xlane.xlu0 %3475  ;;  %v3654_v54 = vsel %vm2153_vm2, %v7641_v25, 0.0 }
 0x877   : > { %v7647_v36 = vpop.eup %5997  ;;  %5999 = vpow2.f32 %v3584_v49  ;;  %v3586_v30 = vmul.f32 1.442695, %v3541_v42  ;;  %v3542_v44 = vsub.f32 %v3414_v1, %v3476_v5  ;;  %3655 = vadd.xlane.f32.xlu0 %v3654_v54  ;;  %v8142_v5 = vmax.f32 %v7502_v60, 0.0 }
 0x878   : > { %v3479_v47 = vpop.xlane.xlu1 %3478  ;;  %v3657_v46 = vsel %vm2153_vm2, %v7647_v36, 0.0 }
 0x879   : > { %6001 = vpow2.f32 %v3586_v30  ;;  %v3588_v0 = vmul.f32 1.442695, %v3542_v44  ;;  %v3543_v48 = vsub.f32 %v3415_v39, %v3479_v47  ;;  %3658 = vadd.xlane.f32.xlu1 %v3657_v46  ;;  %v8143_v46 = vmax.f32 %v7492_v2, 0.0 }
 0x87b   : > { %6003 = vpow2.f32 %v3588_v0  ;;  %v3590_v40 = vmul.f32 1.442695, %v3543_v48 }
 0x87d   : > { %6005 = vpow2.f32 %v3590_v40 }
 0x881   : > { %v7655_v58 = vpop.eup %5999 }
 0x882   : > { %v3482_v29 = vpop.xlane.xlu0 %3481  ;;  %v3660_v50 = vsel %vm2153_vm2, %v7655_v58, 0.0 }
 0x883   : > { %v7659_v1 = vpop.eup %6001  ;;  %v3544_v53 = vsub.f32 %v3416_v28, %v3482_v29  ;;  %3661 = vadd.xlane.f32.xlu0 %v3660_v50  ;;  %v8144_v29 = vmax.f32 %v7499_v20, 0.0 }
 0x884   : > { %v3485_v33 = vpop.xlane.xlu1 %3484  ;;  %v3663_v43 = vsel %vm2153_vm2, %v7659_v1, 0.0 }
 0x885   : > { %v7665_v39 = vpop.eup %6003  ;;  %v3592_v17 = vmul.f32 1.442695, %v3544_v53  ;;  %v3545_v13 = vsub.f32 %v3417_v31, %v3485_v33  ;;  %3664 = vadd.xlane.f32.xlu1 %v3663_v43 }
 0x886   : > { %v3488_v45 = vpop.xlane.xlu0 %3487  ;;  %v3666_v51 = vsel %vm2153_vm2, %v7665_v39, 0.0 }
 0x887   : > { %v7671_v52 = vpop.eup %6005  ;;  %6007 = vpow2.f32 %v3592_v17  ;;  %v3594_v57 = vmul.f32 1.442695, %v3545_v13  ;;  %v3546_v28 = vsub.f32 %v3418_v35, %v3488_v45  ;;  %3667 = vadd.xlane.f32.xlu0 %v3666_v51  ;;  %v8145_v13 = vmax.f32 %v7523_v11, 0.0 }
 0x888   : > { %v3491_v21 = vpop.xlane.xlu1 %3490  ;;  %v3669_v55 = vsel %vm2153_vm2, %v7671_v52, 0.0 }
 0x889   : > { %6009 = vpow2.f32 %v3594_v57  ;;  %v3596_v10 = vmul.f32 1.442695, %v3546_v28  ;;  %v3547_v31 = vsub.f32 %v3419_v38, %v3491_v21  ;;  %3670 = vadd.xlane.f32.xlu1 %v3669_v55  ;;  %v8146_v21 = vmax.f32 %v7530_v37, 0.0 }
 0x88b   : > { %6011 = vpow2.f32 %v3596_v10  ;;  %v3598_v3 = vmul.f32 1.442695, %v3547_v31 }
 0x88d   : > { %6013 = vpow2.f32 %v3598_v3 }
 0x891   : > { %v7679_v14 = vpop.eup %6007 }
 0x892   : > { %v3494_v63 = vpop.xlane.xlu0 %3493  ;;  %v3672_v4 = vsel %vm2153_vm2, %v7679_v14, 0.0 }
 0x893   : > { %v7683_v35 = vpop.eup %6009  ;;  %v3548_v8 = vsub.f32 %v8141_v56, %v3494_v63  ;;  %3673 = vadd.xlane.f32.xlu0 %v3672_v4  ;;  %v8147_v63 = vmax.f32 %v7520_v61, 0.0 }
 0x894   : > { %v3497_v49 = vpop.xlane.xlu1 %3496  ;;  %v3675_v18 = vsel %vm2153_vm2, %v7683_v35, 0.0 }
 0x895   : > { %v7689_v38 = vpop.eup %6011  ;;  %v3600_v42 = vmul.f32 1.442695, %v3548_v8  ;;  %v3549_v54 = vsub.f32 %v8142_v5, %v3497_v49  ;;  %3676 = vadd.xlane.f32.xlu1 %v3675_v18  ;;  %v8148_v49 = vmax.f32 %v7527_v6, 0.0 }
 0x896   : > { %v3500_v30 = vpop.xlane.xlu0 %3499  ;;  %v3678_v44 = vsel %vm2153_vm2, %v7689_v38, 0.0 }
 0x897   : > { %v7695_v47 = vpop.eup %6013  ;;  %6015 = vpow2.f32 %v3600_v42  ;;  %v3602_v27 = vmul.f32 1.442695, %v3549_v54  ;;  %v3550_v0 = vsub.f32 %v8143_v46, %v3500_v30  ;;  %3679 = vadd.xlane.f32.xlu0 %v3678_v44  ;;  %v8149_v44 = vmax.f32 %v7551_v34, 0.0 }
 0x898   : > { %v3503_v48 = vpop.xlane.xlu1 %3502  ;;  %v3681_v40 = vsel %vm2153_vm2, %v7695_v47, 0.0 }
 0x899   : > { %6017 = vpow2.f32 %v3602_v27  ;;  %v3604_v60 = vmul.f32 1.442695, %v3550_v0  ;;  %v3551_v50 = vsub.f32 %v8144_v29, %v3503_v48  ;;  %3682 = vadd.xlane.f32.xlu1 %v3681_v40  ;;  %v8150_v40 = vmax.f32 %v7558_v19, 0.0 }
 0x89b   : > { %6019 = vpow2.f32 %v3604_v60  ;;  %v3606_v53 = vmul.f32 1.442695, %v3551_v50 }
 0x89d   : > { %6021 = vpow2.f32 %v3606_v53 }
 0x8a1   : > { %v7703_v33 = vpop.eup %6015 }
 0x8a2   : > { %v3506_v43 = vpop.xlane.xlu0 %3505  ;;  %v3684_v2 = vsel %vm2153_vm2, %v7703_v33, 0.0 }
 0x8a3   : > { %v7707_v17 = vpop.eup %6017  ;;  %v3552_v45 = vsub.f32 %v8145_v13, %v3506_v43  ;;  %3685 = vadd.xlane.f32.xlu0 %v3684_v2  ;;  %v8151_v43 = vmax.f32 %v7548_v12, 0.0 }
 0x8a4   : > { %v3509_v51 = vpop.xlane.xlu1 %3508  ;;  %v3687_v20 = vsel %vm2153_vm2, %v7707_v17, 0.0 }
 0x8a5   : > { %v7713_v57 = vpop.eup %6019  ;;  %v3608_v28 = vmul.f32 1.442695, %v3552_v45  ;;  %v3553_v55 = vsub.f32 %v8146_v21, %v3509_v51  ;;  %3688 = vadd.xlane.f32.xlu1 %v3687_v20 }
 0x8a6   : > { %v3512_v10 = vpop.xlane.xlu0 %3511  ;;  %v3690_v31 = vsel %vm2153_vm2, %v7713_v57, 0.0 }
 0x8a7   : > { %v7719_v3 = vpop.eup %6021  ;;  %6023 = vpow2.f32 %v3608_v28  ;;  %v3610_v11 = vmul.f32 1.442695, %v3553_v55  ;;  %v3554_v4 = vsub.f32 %v8147_v63, %v3512_v10  ;;  %3691 = vadd.xlane.f32.xlu0 %v3690_v31 }
 0x8a8   : > { %v3515_v56 = vpop.xlane.xlu1 %3514  ;;  %v3693_v8 = vsel %vm2153_vm2, %v7719_v3, 0.0 }
 0x8a9   : > { %6025 = vpow2.f32 %v3610_v11  ;;  %v3612_v37 = vmul.f32 1.442695, %v3554_v4  ;;  %v3555_v18 = vsub.f32 %v8148_v49, %v3515_v56  ;;  %3694 = vadd.xlane.f32.xlu1 %v3693_v8  ;;  %v5844_v4 = vld [vmem:[%s8080_s13] sm:$0xff]  }
 0x8aa   : > { %5688 = vmatprep.subr.bf16.mxu1 %v5844_v4 }
 0x8ab   : > { %6027 = vpow2.f32 %v3612_v37  ;;  %v3614_v42 = vmul.f32 1.442695, %v3555_v18  ;;  %5689 = vmatpush3.bf16.msra.mxu1 %v5844_v4 }
 0x8ad   : > { %6029 = vpow2.f32 %v3614_v42 }
 0x8b1   : > { %v7727_v5 = vpop.eup %6023 }
 0x8b2   : > { %v3518_v54 = vpop.xlane.xlu0 %3517  ;;  %v3696_v61 = vsel %vm2153_vm2, %v7727_v5, 0.0 }
 0x8b3   : > { %v7731_v30 = vpop.eup %6025  ;;  %v3556_v27 = vsub.f32 %v8149_v44, %v3518_v54  ;;  %3697 = vadd.xlane.f32.xlu0 %v3696_v61 }
 0x8b4   : > { %v3521_v46 = vpop.xlane.xlu1 %3520  ;;  %v3699_v6 = vsel %vm2153_vm2, %v7731_v30, 0.0 }
 0x8b5   : > { %v7737_v0 = vpop.eup %6027  ;;  %v3616_v48 = vmul.f32 1.442695, %v3556_v27  ;;  %v3557_v60 = vsub.f32 %v8150_v40, %v3521_v46  ;;  %3700 = vadd.xlane.f32.xlu1 %v3699_v6 }
 0x8b6   : > { %v3524_v29 = vpop.xlane.xlu0 %3523  ;;  %v3702_v50 = vsel %vm2153_vm2, %v7737_v0, 0.0 }
 0x8b7   : > { %v7743_v53 = vpop.eup %6029  ;;  %6031 = vpow2.f32 %v3616_v48  ;;  %v3618_v34 = vmul.f32 1.442695, %v3557_v60  ;;  %v3558_v2 = vsub.f32 %v8151_v43, %v3524_v29  ;;  %3703 = vadd.xlane.f32.xlu0 %v3702_v50 }
 0x8b8   : > { %v3527_v13 = vpop.xlane.xlu1 %3526  ;;  %v3705_v45 = vsel %vm2153_vm2, %v7743_v53, 0.0 }
 0x8b9   : > { %6033 = vpow2.f32 %v3618_v34  ;;  %v3620_v19 = vmul.f32 1.442695, %v3558_v2  ;;  %v3559_v51 = vsub.f32 %v3431_v24, %v3527_v13  ;;  %3706 = vadd.xlane.f32.xlu1 %v3705_v45 }
 0x8bb   : > { %6035 = vpow2.f32 %v3620_v19  ;;  %v3622_v20 = vmul.f32 1.442695, %v3559_v51 }
 0x8bd   : > { %6037 = vpow2.f32 %v3622_v20 }
 0x8c1   : > { %v7751_v28 = vpop.eup %6031 }
 0x8c2   : > { %v3708_v12 = vsel %vm2153_vm2, %v7751_v28, 0.0 }
 0x8c3   : > { %v7755_v21 = vpop.eup %6033  ;;  %3709 = vadd.xlane.f32.xlu0 %v3708_v12 }
 0x8c4   : > { %v3711_v55 = vsel %vm2153_vm2, %v7755_v21, 0.0 }
 0x8c5   : > { %v7759_v10 = vpop.eup %6035  ;;  %3712 = vadd.xlane.f32.xlu1 %v3711_v55 }
 0x8c6   : > { %v3714_v23 = vsel %vm2153_vm2, %v7759_v10, 0.0 }
 0x8c7   : > { %v7763_v24 = vpop.eup %6037  ;;  %3715 = vadd.xlane.f32.xlu0 %v3714_v23 }
 0x8c8   : > { %v3717_v31 = vsel %vm2153_vm2, %v7763_v24, 0.0 }
 0x8c9   : > { %3718 = vadd.xlane.f32.xlu1 %v3717_v31 }
 0x8e2   : > { %v3626_v11 = vpop.xlane.xlu0 %3625 }
 0x8e3   : > { %6039 = vrcp.f32 %v3626_v11 }
 0x8e4   : > { %v3629_v63 = vpop.xlane.xlu1 %3628 }
 0x8e5   : > { %6041 = vrcp.f32 %v3629_v63 }
 0x8e6   : > { %v3632_v56 = vpop.xlane.xlu0 %3631 }
 0x8e7   : > { %6043 = vrcp.f32 %v3632_v56 }
 0x8e8   : > { %v3635_v8 = vpop.xlane.xlu1 %3634 }
 0x8e9   : > { %6045 = vrcp.f32 %v3635_v8 }
 0x8ed   : > { %v6040_v37 = vpop.eup %6039 }
 0x8ee   : > { %v3752_v49 = vmul.f32 %v6040_v37, %v7583_v26 }
 0x8ef   : > { %v6042_v18 = vpop.eup %6041 }
 0x8f0   : > { %v3753_v42 = vmul.f32 %v6042_v18, %v7589_v32  ;;  %5640 = vmatprep.mubr.msk.f32.mxu0 %vm2153_vm2, %v3752_v49  ;;  %v3638_v54 = vpop.xlane.xlu0 %3637 }
 0x8f1   : > { %v6044_v61 = vpop.eup %6043  ;;  %6047 = vrcp.f32 %v3638_v54 }
 0x8f2   : > { %v3641_v44 = vpop.xlane.xlu1 %3640  ;;  %5641 = vmatmul.mubr.msk.f32.vlgmr.msra.gmra.mrb[144].mxu0 %vm2153_vm2, %v3753_v42  ;;  %v3754_v27 = vmul.f32 %v6044_v61, %v7595_v41 }
 0x8f3   : > { %v6046_v46 = vpop.eup %6045  ;;  %6049 = vrcp.f32 %v3641_v44 }
 0x8f4   : > { %5643 = vmatprep.mubr.msk.f32.mxu0 %vm2153_vm2, %v3754_v27  ;;  %v3644_v6 = vpop.xlane.xlu0 %3643  ;;  %v3755_v26 = vmul.f32 %v6046_v46, %v7601_v62 }
 0x8f5   : > { %6051 = vrcp.f32 %v3644_v6 }
 0x8f6   : > { %v3647_v48 = vpop.xlane.xlu1 %3646  ;;  %5644 = vmatmul.mubr.msk.f32.gmra.mrb[146].mxu0 %vm2153_vm2, %v3755_v26 }
 0x8f7   : > { %6053 = vrcp.f32 %v3647_v48 }
 0x8fb   : > { %v6048_v32 = vpop.eup %6047 }
 0x8fc   : > { %v3756_v40 = vmul.f32 %v6048_v32, %v7607_v7 }
 0x8fd   : > { %v6050_v60 = vpop.eup %6049 }
 0x8fe   : > { %5646 = vmatprep.mubr.msk.f32.mxu0 %vm2153_vm2, %v3756_v40  ;;  %v3757_v41 = vmul.f32 %v6050_v60, %v7611_v22 }
 0x8ff   : > { %v6052_v29 = vpop.eup %6051 }
 0x900   : > { %5647 = vmatmul.mubr.msk.f32.gmra.mrb[148].mxu0 %vm2153_vm2, %v3757_v41  ;;  %v3650_v50 = vpop.xlane.xlu0 %3649  ;;  %v3758_v34 = vmul.f32 %v6052_v29, %v7617_v15 }
 0x901   : > { %v6054_v62 = vpop.eup %6053  ;;  %6055 = vrcp.f32 %v3650_v50 }
 0x902   : > { %v3653_v43 = vpop.xlane.xlu1 %3652  ;;  %5649 = vmatprep.mubr.msk.f32.mxu0 %vm2153_vm2, %v3758_v34  ;;  %v3759_v2 = vmul.f32 %v6054_v62, %v7623_v9 }
 0x903   : > { %6057 = vrcp.f32 %v3653_v43 }
 0x904   : > { %5650 = vmatmul.mubr.msk.f32.gmra.mrb[150].mxu0 %vm2153_vm2, %v3759_v2  ;;  %v3656_v7 = vpop.xlane.xlu0 %3655 }
 0x905   : > { %6059 = vrcp.f32 %v3656_v7 }
 0x906   : > { %v3659_v13 = vpop.xlane.xlu1 %3658 }
 0x907   : > { %6061 = vrcp.f32 %v3659_v13 }
 0x90b   : > { %v6056_v22 = vpop.eup %6055 }
 0x90c   : > { %v3760_v45 = vmul.f32 %v6056_v22, %v7631_v16 }
 0x90d   : > { %v6058_v19 = vpop.eup %6057 }
 0x90e   : > { %5652 = vmatprep.mubr.msk.f32.mxu0 %vm2153_vm2, %v3760_v45  ;;  %v3761_v15 = vmul.f32 %v6058_v19, %v7635_v59 }
 0x90f   : > { %v6060_v51 = vpop.eup %6059 }
 0x910   : > { %5653 = vmatmul.mubr.msk.f32.gmra.mrb[152].mxu0 %vm2153_vm2, %v3761_v15  ;;  %v3662_v20 = vpop.xlane.xlu0 %3661  ;;  %v3762_v9 = vmul.f32 %v6060_v51, %v7641_v25 }
 0x911   : > { %v6062_v12 = vpop.eup %6061  ;;  %6063 = vrcp.f32 %v3662_v20 }
 0x912   : > { %v3665_v55 = vpop.xlane.xlu1 %3664  ;;  %5655 = vmatprep.mubr.msk.f32.mxu0 %vm2153_vm2, %v3762_v9  ;;  %v3763_v23 = vmul.f32 %v6062_v12, %v7647_v36 }
 0x913   : > { %6065 = vrcp.f32 %v3665_v55 }
 0x914   : > { %5656 = vmatmul.mubr.msk.f32.gmra.mrb[154].mxu0 %vm2153_vm2, %v3763_v23  ;;  %v3668_v16 = vpop.xlane.xlu0 %3667  ;;  %v6135_v23 = vld [vmem:[%s6396_s21 + $0x8] sm:$0xff] }
 0x915   : > { %6067 = vrcp.f32 %v3668_v16 }
 0x916   : > { %v3671_v31 = vpop.xlane.xlu1 %3670 }
 0x917   : > { %6069 = vrcp.f32 %v3671_v31 }
 0x91b   : > { %v6064_v59 = vpop.eup %6063 }
 0x91c   : > { %v3764_v11 = vmul.f32 %v6064_v59, %v7655_v58 }
 0x91d   : > { %v6066_v63 = vpop.eup %6065 }
 0x91e   : > { %5658 = vmatprep.mubr.msk.f32.mxu0 %vm2153_vm2, %v3764_v11  ;;  %v3765_v25 = vmul.f32 %v6066_v63, %v7659_v1 }
 0x91f   : > { %v6068_v4 = vpop.eup %6067 }
 0x920   : > { %5659 = vmatmul.mubr.msk.f32.gmra.mrb[156].mxu0 %vm2153_vm2, %v3765_v25  ;;  %v3674_v56 = vpop.xlane.xlu0 %3673  ;;  %v3766_v36 = vmul.f32 %v6068_v4, %v7665_v39  ;;  %v6137_v25 = vld [vmem:[%s6396_s21 + $0x18] sm:$0xff] }
 0x921   : > { %v6070_v8 = vpop.eup %6069  ;;  %6071 = vrcp.f32 %v3674_v56  ;;  %v6138_v56 = vld [vmem:[%s6396_s21 + $0x10] sm:$0xff] }
 0x922   : > { %v3677_v37 = vpop.xlane.xlu1 %3676  ;;  %5661 = vmatprep.mubr.msk.f32.mxu0 %vm2153_vm2, %v3766_v36  ;;  %v3767_v49 = vmul.f32 %v6070_v8, %v7671_v52 }
 0x923   : > { %6073 = vrcp.f32 %v3677_v37  ;;  %v6139_v37 = vld [vmem:[%s6396_s21 + $0x28] sm:$0xff] }
 0x924   : > { %5662 = vmatmul.mubr.msk.f32.gmra.mrb[158].mxu0 %vm2153_vm2, %v3767_v49  ;;  %v3680_v58 = vpop.xlane.xlu0 %3679 }
 0x925   : > { %6075 = vrcp.f32 %v3680_v58 }
 0x926   : > { %v3683_v18 = vpop.xlane.xlu1 %3682 }
 0x927   : > { %6077 = vrcp.f32 %v3683_v18  ;;  %v6140_v18 = vld [vmem:[%s6396_s21 + $0x20] sm:$0xff] }
 0x92b   : > { %v6072_v1 = vpop.eup %6071 }
 0x92c   : > { %v3768_v42 = vmul.f32 %v6072_v1, %v7679_v14 }
 0x92d   : > { %v6074_v54 = vpop.eup %6073 }
 0x92e   : > { %5664 = vmatprep.mubr.msk.f32.mxu0 %vm2153_vm2, %v3768_v42  ;;  %v3769_v39 = vmul.f32 %v6074_v54, %v7683_v35 }
 0x92f   : > { %v6076_v61 = vpop.eup %6075 }
 0x930   : > { %5665 = vmatmul.mubr.msk.f32.gmra.mrb[160].mxu0 %vm2153_vm2, %v3769_v39  ;;  %v3686_v44 = vpop.xlane.xlu0 %3685  ;;  %v3770_v52 = vmul.f32 %v6076_v61, %v7689_v38  ;;  %v6141_v39 = vld [vmem:[%s6396_s21 + $0x38] sm:$0xff] }
 0x931   : > { %v6078_v27 = vpop.eup %6077  ;;  %6079 = vrcp.f32 %v3686_v44 }
 0x932   : > { %v3689_v46 = vpop.xlane.xlu1 %3688  ;;  %5667 = vmatprep.mubr.msk.f32.mxu0 %vm2153_vm2, %v3770_v52  ;;  %v3771_v6 = vmul.f32 %v6078_v27, %v7695_v47  ;;  %v6142_v52 = vld [vmem:[%s6396_s21 + $0x30] sm:$0xff] }
 0x933   : > { %6081 = vrcp.f32 %v3689_v46 }
 0x934   : > { %5668 = vmatmul.mubr.msk.f32.gmra.mrb[162].mxu0 %vm2153_vm2, %v3771_v6  ;;  %v3692_v14 = vpop.xlane.xlu0 %3691 }
 0x935   : > { %6083 = vrcp.f32 %v3692_v14  ;;  %v6143_v14 = vld [vmem:[%s6396_s21 + $0x48] sm:$0xff] }
 0x936   : > { %v3695_v26 = vpop.xlane.xlu1 %3694 }
 0x937   : > { %6085 = vrcp.f32 %v3695_v26 }
 0x93b   : > { %v6080_v35 = vpop.eup %6079 }
 0x93c   : > { %v3772_v48 = vmul.f32 %v6080_v35, %v7703_v33 }
 0x93d   : > { %v6082_v32 = vpop.eup %6081 }
 0x93e   : > { %5670 = vmatprep.mubr.msk.f32.mxu0 %vm2153_vm2, %v3772_v48  ;;  %v3773_v38 = vmul.f32 %v6082_v32, %v7707_v17  ;;  %v5845_v17 = vld [vmem:[%s8080_s13 + $0x8] sm:$0xff]   ;;  %v6144_v48 = vld [vmem:[%s6396_s21 + $0x40] sm:$0xff] }
 0x93f   : > { %v6084_v40 = vpop.eup %6083  ;;  %5690 = vmatprep.subr.bf16.mxu1 %v5845_v17 }
 0x940   : > { %5671 = vmatmul.mubr.msk.f32.gmra.mrb[164].mxu0 %vm2153_vm2, %v3773_v38  ;;  %v3698_v60 = vpop.xlane.xlu0 %3697  ;;  %v3774_v47 = vmul.f32 %v6084_v40, %v7713_v57  ;;  %5691 = vmatpush3.bf16.msra.mxu1 %v5845_v17  ;;  %v6147_v17 = vld [vmem:[%s6396_s21 + $0x68] sm:$0xff] }
 0x941   : > { %v6086_v41 = vpop.eup %6085  ;;  %6087 = vrcp.f32 %v3698_v60  ;;  %v6145_v60 = vld [vmem:[%s6396_s21 + $0x58] sm:$0xff] }
 0x942   : > { %v3701_v29 = vpop.xlane.xlu1 %3700  ;;  %5673 = vmatprep.mubr.msk.f32.mxu0 %vm2153_vm2, %v3774_v47  ;;  %v3775_v50 = vmul.f32 %v6086_v41, %v7719_v3 }
 0x943   : > { %6089 = vrcp.f32 %v3701_v29  ;;  %v6146_v29 = vld [vmem:[%s6396_s21 + $0x50] sm:$0xff] }
 0x944   : > { %5674 = vmatmul.mubr.msk.f32.gmra.mrb[166].mxu0 %vm2153_vm2, %v3775_v50  ;;  %v3704_v33 = vpop.xlane.xlu0 %3703 }
 0x945   : > { %6091 = vrcp.f32 %v3704_v33 }
 0x946   : > { %v3707_v34 = vpop.xlane.xlu1 %3706 }
 0x947   : > { %6093 = vrcp.f32 %v3707_v34 }
 0x94b   : > { %v6088_v62 = vpop.eup %6087 }
 0x94c   : > { %v3776_v57 = vmul.f32 %v6088_v62, %v7727_v5 }
 0x94d   : > { %v6090_v43 = vpop.eup %6089 }
 0x94e   : > { %5676 = vmatprep.mubr.msk.f32.mxu0 %vm2153_vm2, %v3776_v57  ;;  %v3777_v3 = vmul.f32 %v6090_v43, %v7731_v30  ;;  %v6148_v43 = vld [vmem:[%s6396_s21 + $0x60] sm:$0xff] }
 0x94f   : > { %v6092_v2 = vpop.eup %6091 }
 0x950   : > { %5677 = vmatmul.mubr.msk.f32.gmra.mrb[168].mxu0 %vm2153_vm2, %v3777_v3  ;;  %v3710_v7 = vpop.xlane.xlu0 %3709  ;;  %v3778_v13 = vmul.f32 %v6092_v2, %v7737_v0 }
 0x951   : > { %v6094_v22 = vpop.eup %6093  ;;  %6095 = vrcp.f32 %v3710_v7 }
 0x952   : > { %v3713_v45 = vpop.xlane.xlu1 %3712  ;;  %5679 = vmatprep.mubr.msk.f32.mxu0 %vm2153_vm2, %v3778_v13  ;;  %v3779_v19 = vmul.f32 %v6094_v22, %v7743_v53  ;;  %v6149_v13 = vld [vmem:[%s6396_s21 + $0x78] sm:$0xff] }
 0x953   : > { %6097 = vrcp.f32 %v3713_v45 }
 0x954   : > { %5680 = vmatmul.mubr.msk.f32.gmra.mrb[170].mxu0 %vm2153_vm2, %v3779_v19  ;;  %v3716_v5 = vpop.xlane.xlu0 %3715  ;;  %v6150_v19 = vld [vmem:[%s6396_s21 + $0x70] sm:$0xff] }
 0x955   : > { %6099 = vrcp.f32 %v3716_v5 }
 0x956   : > { %v3719_v30 = vpop.xlane.xlu1 %3718 }
 0x957   : > { %6101 = vrcp.f32 %v3719_v30 }
 0x95b   : > { %v6096_v15 = vpop.eup %6095 }
 0x95c   : > { %v3780_v51 = vmul.f32 %v6096_v15, %v7751_v28 }
 0x95d   : > { %v6098_v0 = vpop.eup %6097 }
 0x95e   : > { %5682 = vmatprep.mubr.msk.f32.mxu0 %vm2153_vm2, %v3780_v51  ;;  %v3781_v20 = vmul.f32 %v6098_v0, %v7755_v21  ;;  %v6136_v21 = vld [vmem:[%s6396_s21] sm:$0xff]  ;;  %v6151_v51 = vld [vmem:[%s6396_s21 + $0x88] sm:$0xff] }
 0x95f   : > { %v6100_v9 = vpop.eup %6099 }
 0x960   : > { %5683 = vmatmul.mubr.msk.f32.gmra.mrb[172].mxu0 %vm2153_vm2, %v3781_v20  ;;  %v3782_v53 = vmul.f32 %v6100_v9, %v7759_v10  ;;  %v6152_v9 = vld [vmem:[%s6396_s21 + $0x80] sm:$0xff] }
 0x961   : > { %v6102_v12 = vpop.eup %6101 }
 0x962   : > { %5685 = vmatprep.mubr.msk.f32.mxu0 %vm2153_vm2, %v3782_v53  ;;  %v3783_v55 = vmul.f32 %v6102_v12, %v7763_v24 }
 0x964   : > { %5686 = vmatmul.mubr.msk.f32.gmra.mrb[174].mxu0 %vm2153_vm2, %v3783_v55 }
 0x9c5   : > { %v5642_v28 = vpop.f32.mrb[144].mxu0 }
 0x9c6   : > { %v4106_v16 = vmul.f32 %v6135_v23, %v5642_v28  ;;  %v3946_v31 = vpop.f32.mrb[145].mxu0  ;;  %v6153_v28 = vld [vmem:[%s6396_s21 + $0x98] sm:$0xff] }
 0x9c7   : > { %v4105_v59 = vmul.f32 %v6136_v21, %v3946_v31  ;;  %v6154_v31 = vld [vmem:[%s6396_s21 + $0x90] sm:$0xff] }
 0x9c9   : > { %v4137_v11 = vpack.c.bf16 %v4106_v16, %v4105_v59  ;;  %v5645_v63 = vpop.f32.mrb[146].mxu0 }
 0x9ca   : > { %v4108_v10 = vmul.f32 %v6137_v25, %v5645_v63  ;;  %v3956_v4 = vpop.f32.mrb[147].mxu0  ;;  %v6155_v63 = vld [vmem:[%s6396_s21 + $0xa8] sm:$0xff] }
 0x9cb   : > { %v4107_v36 = vmul.f32 %v6138_v56, %v3956_v4  ;;  %5692 = vmatprep.mubr.msk.bf16.mxu1 %vm676_vm0, %v4137_v11  ;;  %v6156_v4 = vld [vmem:[%s6396_s21 + $0xa0] sm:$0xff] }
 0x9cd   : > { %v4138_v24 = vpack.c.bf16 %v4108_v10, %v4107_v36 }
 0x9cf   : > { %5693 = vmatmul.mubr.msk.bf16.vlgmr.msra.gmra.mrb[176].mxu1 %vm676_vm0, %v4138_v24 }
 0x9d3   : > { %v5648_v8 = vpop.f32.mrb[148].mxu0 }
 0x9d4   : > { %v4110_v49 = vmul.f32 %v6139_v37, %v5648_v8  ;;  %v3966_v58 = vpop.f32.mrb[149].mxu0  ;;  %v6157_v8 = vld [vmem:[%s6396_s21 + $0xb8] sm:$0xff] }
 0x9d5   : > { %v4109_v1 = vmul.f32 %v6140_v18, %v3966_v58  ;;  %v6158_v58 = vld [vmem:[%s6396_s21 + $0xb0] sm:$0xff] }
 0x9d7   : > { %v4139_v42 = vpack.c.bf16 %v4110_v49, %v4109_v1  ;;  %v5651_v54 = vpop.f32.mrb[150].mxu0 }
 0x9d8   : > { %v4112_v61 = vmul.f32 %v6141_v39, %v5651_v54  ;;  %v3976_v44 = vpop.f32.mrb[151].mxu0  ;;  %v6159_v54 = vld [vmem:[%s6396_s21 + $0xc8] sm:$0xff] }
 0x9d9   : > { %v4111_v27 = vmul.f32 %v6142_v52, %v3976_v44  ;;  %5696 = vmatprep.mubr.msk.bf16.mxu1 %vm676_vm0, %v4139_v42  ;;  %v6160_v44 = vld [vmem:[%s6396_s21 + $0xc0] sm:$0xff] }
 0x9db   : > { %v4140_v46 = vpack.c.bf16 %v4112_v61, %v4111_v27  ;;  %v5846_v27 = vld [vmem:[%s8082_s15] sm:$0xff]  }
 0x9dc   : > { %5724 = vmatprep.subr.bf16.mxu0 %v5846_v27 }
 0x9dd   : > { %5697 = vmatmul.mubr.msk.bf16.gmra.mrb[180].mxu1 %vm676_vm0, %v4140_v46  ;;  %5725 = vmatpush3.bf16.msra.mxu0 %v5846_v27 }
 0x9e3   : > { %v5654_v6 = vpop.f32.mrb[152].mxu0 }
 0x9e4   : > { %v4114_v26 = vmul.f32 %v6143_v14, %v5654_v6  ;;  %v3986_v35 = vpop.f32.mrb[153].mxu0  ;;  %v6161_v14 = vld [vmem:[%s6396_s21 + $0xd8] sm:$0xff] }
 0x9e5   : > { %v4113_v32 = vmul.f32 %v6144_v48, %v3986_v35  ;;  %v6162_v48 = vld [vmem:[%s6396_s21 + $0xd0] sm:$0xff] }
 0x9e7   : > { %v4141_v38 = vpack.c.bf16 %v4114_v26, %v4113_v32  ;;  %v5657_v40 = vpop.f32.mrb[154].mxu0 }
 0x9e8   : > { %v4116_v47 = vmul.f32 %v6145_v60, %v5657_v40  ;;  %v3996_v41 = vpop.f32.mrb[155].mxu0  ;;  %v6163_v60 = vld [vmem:[%s6396_s21 + $0xe8] sm:$0xff] }
 0x9e9   : > { %v4115_v50 = vmul.f32 %v6146_v29, %v3996_v41  ;;  %5700 = vmatprep.mubr.msk.bf16.mxu1 %vm676_vm0, %v4141_v38  ;;  %v6164_v29 = vld [vmem:[%s6396_s21 + $0xe0] sm:$0xff] }
 0x9eb   : > { %v4142_v33 = vpack.c.bf16 %v4116_v47, %v4115_v50 }
 0x9ed   : > { %5701 = vmatmul.mubr.msk.bf16.gmra.mrb[184].mxu1 %vm676_vm0, %v4142_v33 }
 0x9f3   : > { %v5660_v34 = vpop.f32.mrb[156].mxu0 }
 0x9f4   : > { %v4118_v62 = vmul.f32 %v6147_v17, %v5660_v34  ;;  %v4006_v57 = vpop.f32.mrb[157].mxu0  ;;  %v6165_v17 = vld [vmem:[%s6396_s21 + $0xf8] sm:$0xff] }
 0x9f5   : > { %v4117_v3 = vmul.f32 %v6148_v43, %v4006_v57  ;;  %v6166_v43 = vld [vmem:[%s6396_s21 + $0xf0] sm:$0xff]  ;;  %s594_s21 = sand.u32 1, %s6221_s30  }
 0x9f6   : > { %s4802_s24 = sshll.u32 %s594_s21, 8  ;;  %s8026_s1 = scalar_lea.sflag [#allocation3], %s594_s21 }
 0x9f7   : > { %v4143_v2 = vpack.c.bf16 %v4118_v62, %v4117_v3  ;;  %v5663_v7 = vpop.f32.mrb[158].mxu0  ;;  %s7953_s27 = scalar_lea.vmem [#allocation2], %s4802_s24  ;;  %s6171_s24 = sshll.u32 %s6232_s23, 4  ;;  %s6172_s24 = int_to_ptr.vmem [resolvable:$false] %s6171_s24 }
 0x9f8   : > { %v4120_v22 = vmul.f32 %v6149_v13, %v5663_v7  ;;  %v4016_v45 = vpop.f32.mrb[159].mxu0  ;;  %v7891_v7 = vld [vmem:[%s8081_s14] ss:$0 sm:$0xff]  ;;  %s4736_s0 = sshll.u32 %s7953_s27, 4  ;;  %s6173_s28 = scalar_lea.vmem %s6172_s24, 8192  ;;  %s8019_s0 = int_to_ptr.vmem [resolvable:$true] %s4736_s0 }
 0x9f9   : > { %v4119_v5 = vmul.f32 %v6150_v19, %v4016_v45  ;;  %5704 = vmatprep.mubr.msk.bf16.mxu1 %vm676_vm0, %v4143_v2  ;;  %s6167_s22 = scalar_lea.vmem %s8019_s0, 4096  ;;  %p6174_p0 = scmp.lt.s32.totalorder %s8019_s0, %s6172_s24 }
 0x9fa   : > { %p6168_p11 = scmp.ne.s32.totalorder %s8019_s0, %s6167_s22  ;;  %p6175_p1 = scmp.lt.s32.totalorder %s6173_s28, %s6167_s22 }
 0x9fb   : > { %v4144_v30 = vpack.c.bf16 %v4120_v22, %v4119_v5 }
 0x9fc   : > { %p6169_p12 = pnand %p6168_p11, %p6373_p5  ;;  %p6176_p2 = por %p6175_p1, %p6174_p0 }
 0x9fd   : > { %5705 = vmatmul.mubr.msk.bf16.gmra.mrb[188].mxu1 %vm676_vm0, %v4144_v30 }
 0x9fe   : > { %p6170_p13 = pneg %p6169_p12 }
 0xa00   : > { %p6177_p3 = pnand %p6176_p2, %p6170_p13 }
 0xa03   : > { %v5666_v15 = vpop.f32.mrb[160].mxu0 }
 0xa04   : > { %v4122_v0 = vmul.f32 %v6151_v51, %v5666_v15  ;;  %v4026_v20 = vpop.f32.mrb[161].mxu0 }
 0xa05   : > { %v4121_v53 = vmul.f32 %v6152_v9, %v4026_v20 }
 0xa07   : > { %v4145_v12 = vpack.c.bf16 %v4122_v0, %v4121_v53  ;;  %v5669_v55 = vpop.f32.mrb[162].mxu0 }
 0xa08   : > { %v4124_v23 = vmul.f32 %v6153_v28, %v5669_v55  ;;  %v4036_v16 = vpop.f32.mrb[163].mxu0 }
 0xa09   : > { %v4123_v21 = vmul.f32 %v6154_v31, %v4036_v16  ;;  %5708 = vmatprep.mubr.msk.bf16.mxu1 %vm676_vm0, %v4145_v12 }
 0xa0b   : > { %v4146_v59 = vpack.c.bf16 %v4124_v23, %v4123_v21 }
 0xa0d   : > { %5709 = vmatmul.mubr.msk.bf16.gmra.mrb[192].mxu1 %vm676_vm0, %v4146_v59 }
 0xa13   : > { %v5672_v11 = vpop.f32.mrb[164].mxu0 }
 0xa14   : > { %v4126_v25 = vmul.f32 %v6155_v63, %v5672_v11  ;;  %v4046_v10 = vpop.f32.mrb[165].mxu0 }
 0xa15   : > { %v4125_v56 = vmul.f32 %v6156_v4, %v4046_v10 }
 0xa17   : > { %v4147_v36 = vpack.c.bf16 %v4126_v25, %v4125_v56  ;;  %v5675_v24 = vpop.f32.mrb[166].mxu0 }
 0xa18   : > { %v4128_v37 = vmul.f32 %v6157_v8, %v5675_v24  ;;  %v4056_v49 = vpop.f32.mrb[167].mxu0 }
 0xa19   : > { %v4127_v18 = vmul.f32 %v6158_v58, %v4056_v49  ;;  %5712 = vmatprep.mubr.msk.bf16.mxu1 %vm676_vm0, %v4147_v36 }
 0xa1b   : > { %v4148_v1 = vpack.c.bf16 %v4128_v37, %v4127_v18 }
 0xa1d   : > { %5713 = vmatmul.mubr.msk.bf16.gmra.mrb[196].mxu1 %vm676_vm0, %v4148_v1 }
 0xa23   : > { %v5678_v42 = vpop.f32.mrb[168].mxu0 }
 0xa24   : > { %v4130_v39 = vmul.f32 %v6159_v54, %v5678_v42  ;;  %v4066_v61 = vpop.f32.mrb[169].mxu0 }
 0xa25   : > { %v4129_v52 = vmul.f32 %v6160_v44, %v4066_v61 }
 0xa27   : > { %v4149_v46 = vpack.c.bf16 %v4130_v39, %v4129_v52  ;;  %v5681_v6 = vpop.f32.mrb[170].mxu0 }
 0xa28   : > { %v4132_v26 = vmul.f32 %v6161_v14, %v5681_v6  ;;  %v4076_v35 = vpop.f32.mrb[171].mxu0 }
 0xa29   : > { %v4131_v32 = vmul.f32 %v6162_v48, %v4076_v35  ;;  %5716 = vmatprep.mubr.msk.bf16.mxu1 %vm676_vm0, %v4149_v46 }
 0xa2b   : > { %v4150_v38 = vpack.c.bf16 %v4132_v26, %v4131_v32 }
 0xa2d   : > { %5717 = vmatmul.mubr.msk.bf16.gmra.mrb[200].mxu1 %vm676_vm0, %v4150_v38 }
 0xa33   : > { %v5684_v40 = vpop.f32.mrb[172].mxu0 }
 0xa34   : > { %v4134_v47 = vmul.f32 %v6163_v60, %v5684_v40  ;;  %v4086_v41 = vpop.f32.mrb[173].mxu0 }
 0xa35   : > { %v4133_v50 = vmul.f32 %v6164_v29, %v4086_v41 }
 0xa37   : > { %v4151_v33 = vpack.c.bf16 %v4134_v47, %v4133_v50  ;;  %v5687_v34 = vpop.f32.mrb[174].mxu0 }
 0xa38   : > { %v4136_v62 = vmul.f32 %v6165_v17, %v5687_v34  ;;  %v4096_v57 = vpop.f32.mrb[175].mxu0 }
 0xa39   : > { %v4135_v3 = vmul.f32 %v6166_v43, %v4096_v57  ;;  %5720 = vmatprep.mubr.msk.bf16.mxu1 %vm676_vm0, %v4151_v33 }
 0xa3b   : > { %v4152_v2 = vpack.c.bf16 %v4136_v62, %v4135_v3 }
 0xa3d   : > { %5721 = vmatmul.mubr.msk.bf16.gmra.mrb[204].mxu1 %vm676_vm0, %v4152_v2 }
 0xaa2   : > { %v5694_v13 = vpop.f32.mrb[176].mxu1 }
 0xaa3   : > { %v4267_v22 = vadd.f32 %v5694_v13, %v7891_v7  ;;  %v4258_v45 = vpop.f32.mrb[177].mxu1 }
 0xaa4   : > { %v4259_v19 = vadd.f32 %v7891_v7, %v4258_v45  ;;  %v5695_v5 = vpop.f32.mrb[178].mxu1 }
 0xaa5   : > { %v4270_v30 = vadd.f32 %v5695_v5, %v7891_v7  ;;  %v4261_v15 = vpop.f32.mrb[179].mxu1  ;;  %v4387_v0 = vmax.f32 %v4267_v22, 0.0 }
 0xaa6   : > { %v4262_v51 = vadd.f32 %v7891_v7, %v4261_v15  ;;  %v4385_v9 = vmax.f32 %v4259_v19, 0.0 }
 0xaa7   : > { %v4388_v20 = vmax.f32 %v4270_v30, 0.0 }
 0xaa8   : > { %v4386_v53 = vmax.f32 %v4262_v51, 0.0 }
 0xaa9   : > { %v4418_v12 = vpack.c.bf16 %v4388_v20, %v4387_v0 }
 0xaaa   : > { %v4417_v55 = vpack.c.bf16 %v4386_v53, %v4385_v9 }
 0xaac   : > { %5726 = vmatprep.mubr.msk.bf16.mxu0 %vm4448_vm4, %v4417_v55 }
 0xaad   : > { %5727 = vmatmul.mubr.msk.bf16.vlgmr.msra.gmra.mrb[176].mxu0 %vm4448_vm4, %v4418_v12 }
 0xab0   : > { %v5698_v28 = vpop.f32.mrb[180].mxu1 }
 0xab1   : > { %v4283_v23 = vadd.f32 %v5698_v28, %v7891_v7  ;;  %v4274_v16 = vpop.f32.mrb[181].mxu1 }
 0xab2   : > { %v4275_v31 = vadd.f32 %v7891_v7, %v4274_v16  ;;  %v5699_v21 = vpop.f32.mrb[182].mxu1 }
 0xab3   : > { %v4286_v59 = vadd.f32 %v5699_v21, %v7891_v7  ;;  %v4277_v11 = vpop.f32.mrb[183].mxu1  ;;  %v4391_v25 = vmax.f32 %v4283_v23, 0.0 }
 0xab4   : > { %v4278_v63 = vadd.f32 %v7891_v7, %v4277_v11  ;;  %v4389_v4 = vmax.f32 %v4275_v31, 0.0 }
 0xab5   : > { %v4392_v10 = vmax.f32 %v4286_v59, 0.0 }
 0xab6   : > { %v4390_v56 = vmax.f32 %v4278_v63, 0.0 }
 0xab7   : > { %v4420_v36 = vpack.c.bf16 %v4392_v10, %v4391_v25 }
 0xab8   : > { %v4419_v24 = vpack.c.bf16 %v4390_v56, %v4389_v4 }
 0xaba   : > { %5730 = vmatprep.mubr.msk.bf16.mxu0 %vm4448_vm4, %v4419_v24 }
 0xabb   : > { %5731 = vmatmul.mubr.msk.bf16.gmra.mrb[180].mxu0 %vm4448_vm4, %v4420_v36 }
 0xac0   : > { %v5702_v8 = vpop.f32.mrb[184].mxu1 }
 0xac1   : > { %v4299_v37 = vadd.f32 %v5702_v8, %v7891_v7  ;;  %v4290_v49 = vpop.f32.mrb[185].mxu1 }
 0xac2   : > { %v4291_v58 = vadd.f32 %v7891_v7, %v4290_v49  ;;  %v5703_v18 = vpop.f32.mrb[186].mxu1 }
 0xac3   : > { %v4302_v1 = vadd.f32 %v5703_v18, %v7891_v7  ;;  %v4293_v42 = vpop.f32.mrb[187].mxu1  ;;  %v4395_v39 = vmax.f32 %v4299_v37, 0.0 }
 0xac4   : > { %v4294_v54 = vadd.f32 %v7891_v7, %v4293_v42  ;;  %v4393_v44 = vmax.f32 %v4291_v58, 0.0 }
 0xac5   : > { %v4396_v61 = vmax.f32 %v4302_v1, 0.0 }
 0xac6   : > { %v4394_v52 = vmax.f32 %v4294_v54, 0.0 }
 0xac7   : > { %v4422_v27 = vpack.c.bf16 %v4396_v61, %v4395_v39 }
 0xac8   : > { %v4421_v46 = vpack.c.bf16 %v4394_v52, %v4393_v44 }
 0xaca   : > { %5734 = vmatprep.mubr.msk.bf16.mxu0 %vm4448_vm4, %v4421_v46 }
 0xacb   : > { %5735 = vmatmul.mubr.msk.bf16.gmra.mrb[184].mxu0 %vm4448_vm4, %v4422_v27 }
 0xad0   : > { %v5706_v6 = vpop.f32.mrb[188].mxu1 }
 0xad1   : > { %v4315_v14 = vadd.f32 %v5706_v6, %v7891_v7  ;;  %v4306_v26 = vpop.f32.mrb[189].mxu1 }
 0xad2   : > { %v4307_v35 = vadd.f32 %v7891_v7, %v4306_v26  ;;  %v5707_v48 = vpop.f32.mrb[190].mxu1 }
 0xad3   : > { %v4318_v32 = vadd.f32 %v5707_v48, %v7891_v7  ;;  %v4309_v38 = vpop.f32.mrb[191].mxu1  ;;  %v4399_v60 = vmax.f32 %v4315_v14, 0.0 }
 0xad4   : > { %v4310_v40 = vadd.f32 %v7891_v7, %v4309_v38  ;;  %v4397_v41 = vmax.f32 %v4307_v35, 0.0 }
 0xad5   : > { %v4400_v47 = vmax.f32 %v4318_v32, 0.0 }
 0xad6   : > { %v4398_v29 = vmax.f32 %v4310_v40, 0.0  ;;  %v7945_v40 = vld [vmem:[%s8083_s16] ss:$0 sm:$0xff] }
 0xad7   : > { %v4424_v50 = vpack.c.bf16 %v4400_v47, %v4399_v60 }
 0xad8   : > { %v4423_v33 = vpack.c.bf16 %v4398_v29, %v4397_v41 }
 0xada   : > { %5738 = vmatprep.mubr.msk.bf16.mxu0 %vm4448_vm4, %v4423_v33 }
 0xadb   : > { %5739 = vmatmul.mubr.msk.bf16.gmra.mrb[188].mxu0 %vm4448_vm4, %v4424_v50 }
 0xae0   : > { %v5710_v34 = vpop.f32.mrb[192].mxu1 }
 0xae1   : > { %v4331_v17 = vadd.f32 %v5710_v34, %v7891_v7  ;;  %v4322_v62 = vpop.f32.mrb[193].mxu1 }
 0xae2   : > { %v4323_v57 = vadd.f32 %v7891_v7, %v4322_v62  ;;  %v5711_v43 = vpop.f32.mrb[194].mxu1 }
 0xae3   : > { %v4334_v3 = vadd.f32 %v5711_v43, %v7891_v7  ;;  %v4325_v2 = vpop.f32.mrb[195].mxu1  ;;  %v4403_v22 = vmax.f32 %v4331_v17, 0.0 }
 0xae4   : > { %v4326_v13 = vadd.f32 %v7891_v7, %v4325_v2  ;;  %v4401_v19 = vmax.f32 %v4323_v57, 0.0 }
 0xae5   : > { %v4404_v45 = vmax.f32 %v4334_v3, 0.0 }
 0xae6   : > { %v4402_v5 = vmax.f32 %v4326_v13, 0.0 }
 0xae7   : > { %v4426_v30 = vpack.c.bf16 %v4404_v45, %v4403_v22 }
 0xae8   : > { %v4425_v15 = vpack.c.bf16 %v4402_v5, %v4401_v19 }
 0xaea   : > { %5742 = vmatprep.mubr.msk.bf16.mxu0 %vm4448_vm4, %v4425_v15 }
 0xaeb   : > { %5743 = vmatmul.mubr.msk.bf16.gmra.mrb[192].mxu0 %vm4448_vm4, %v4426_v30 }
 0xaf0   : > { %v5714_v51 = vpop.f32.mrb[196].mxu1 }
 0xaf1   : > { %v4347_v0 = vadd.f32 %v5714_v51, %v7891_v7  ;;  %v4338_v20 = vpop.f32.mrb[197].mxu1 }
 0xaf2   : > { %v4339_v9 = vadd.f32 %v7891_v7, %v4338_v20  ;;  %v5715_v53 = vpop.f32.mrb[198].mxu1 }
 0xaf3   : > { %v4350_v12 = vadd.f32 %v5715_v53, %v7891_v7  ;;  %v4341_v55 = vpop.f32.mrb[199].mxu1  ;;  %v4407_v23 = vmax.f32 %v4347_v0, 0.0 }
 0xaf4   : > { %v4342_v28 = vadd.f32 %v7891_v7, %v4341_v55  ;;  %v4405_v31 = vmax.f32 %v4339_v9, 0.0 }
 0xaf5   : > { %v4408_v16 = vmax.f32 %v4350_v12, 0.0 }
 0xaf6   : > { %v4406_v21 = vmax.f32 %v4342_v28, 0.0 }
 0xaf7   : > { %v4428_v59 = vpack.c.bf16 %v4408_v16, %v4407_v23 }
 0xaf8   : > { %v4427_v11 = vpack.c.bf16 %v4406_v21, %v4405_v31 }
 0xafa   : > { %5746 = vmatprep.mubr.msk.bf16.mxu0 %vm4448_vm4, %v4427_v11 }
 0xafb   : > { %5747 = vmatmul.mubr.msk.bf16.gmra.mrb[196].mxu0 %vm4448_vm4, %v4428_v59 }
 0xb00   : > { %v5718_v63 = vpop.f32.mrb[200].mxu1 }
 0xb01   : > { %v4363_v25 = vadd.f32 %v5718_v63, %v7891_v7  ;;  %v4354_v10 = vpop.f32.mrb[201].mxu1 }
 0xb02   : > { %v4355_v4 = vadd.f32 %v7891_v7, %v4354_v10  ;;  %v5719_v56 = vpop.f32.mrb[202].mxu1 }
 0xb03   : > { %v4366_v36 = vadd.f32 %v5719_v56, %v7891_v7  ;;  %v4357_v24 = vpop.f32.mrb[203].mxu1  ;;  %v4411_v37 = vmax.f32 %v4363_v25, 0.0 }
 0xb04   : > { %v4358_v8 = vadd.f32 %v7891_v7, %v4357_v24  ;;  %v4409_v58 = vmax.f32 %v4355_v4, 0.0 }
 0xb05   : > { %v4412_v49 = vmax.f32 %v4366_v36, 0.0 }
 0xb06   : > { %v4410_v18 = vmax.f32 %v4358_v8, 0.0 }
 0xb07   : > { %v4430_v1 = vpack.c.bf16 %v4412_v49, %v4411_v37 }
 0xb08   : > { %v4429_v42 = vpack.c.bf16 %v4410_v18, %v4409_v58 }
 0xb0a   : > { %5750 = vmatprep.mubr.msk.bf16.mxu0 %vm4448_vm4, %v4429_v42 }
 0xb0b   : > { %5751 = vmatmul.mubr.msk.bf16.gmra.mrb[200].mxu0 %vm4448_vm4, %v4430_v1 }
 0xb10   : > { %v5722_v54 = vpop.f32.mrb[204].mxu1 }
 0xb11   : > { %v4379_v39 = vadd.f32 %v5722_v54, %v7891_v7  ;;  %v4370_v61 = vpop.f32.mrb[205].mxu1 }
 0xb12   : > { %v4371_v44 = vadd.f32 %v7891_v7, %v4370_v61  ;;  %v5723_v52 = vpop.f32.mrb[206].mxu1 }
 0xb13   : > { %v4382_v27 = vadd.f32 %v5723_v52, %v7891_v7  ;;  %v4373_v46 = vpop.f32.mrb[207].mxu1  ;;  %v4415_v14 = vmax.f32 %v4379_v39, 0.0 }
 0xb14   : > { %v4374_v6 = vadd.f32 %v7891_v7, %v4373_v46  ;;  %v4413_v35 = vmax.f32 %v4371_v44, 0.0 }
 0xb15   : > { %v4416_v26 = vmax.f32 %v4382_v27, 0.0 }
 0xb16   : > { %v4414_v48 = vmax.f32 %v4374_v6, 0.0 }
 0xb17   : > { %v4432_v32 = vpack.c.bf16 %v4416_v26, %v4415_v14 }
 0xb18   : > { %v4431_v38 = vpack.c.bf16 %v4414_v48, %v4413_v35 }
 0xb1a   : > { %5754 = vmatprep.mubr.msk.bf16.mxu0 %vm4448_vm4, %v4431_v38 }
 0xb1b   : > { %5755 = vmatmul.mubr.msk.bf16.gmra.mrb[204].mxu0 %vm4448_vm4, %v4432_v32 }
 0xb80   : > { %v5728_v60 = vpop.f32.mrb[176].mxu0 }
 0xb81   : > { %v4540_v7 = vadd.f32 %v5728_v60, %v7945_v40  ;;  %v4531_v47 = vpop.f32.mrb[177].mxu0 }
 0xb82   : > { %v4532_v41 = vadd.f32 %v7945_v40, %v4531_v47  ;;  %v5729_v29 = vpop.f32.mrb[178].mxu0 }
 0xb83   : > { %v4660_v50 = vmax.f32 %v4540_v7, 0.0  ;;  %v4543_v33 = vadd.f32 %v5729_v29, %v7945_v40  ;;  %v4534_v34 = vpop.f32.mrb[179].mxu0 }
 0xb84   : > { %v4658_v17 = vmax.f32 %v4532_v41, 0.0  ;;  %v4535_v62 = vadd.f32 %v7945_v40, %v4534_v34 }
 0xb85   : > { %4692 = vst [vmem:[%s7953_s27 + $0x10] sm:$0xff] %v4660_v50  ;;  %v4661_v57 = vmax.f32 %v4543_v33, 0.0 }
 0xb86   : > { %4690 = vst [vmem:[%s7953_s27] sm:$0xff] %v4658_v17  ;;  %v4659_v43 = vmax.f32 %v4535_v62, 0.0 }
 0xb87   : > { %4693 = vst [vmem:[%s7953_s27 + $0x18] sm:$0xff] %v4661_v57 }
 0xb88   : > { %4691 = vst [vmem:[%s7953_s27 + $0x8] sm:$0xff] %v4659_v43 }
 0xb8e   : > { %v5732_v3 = vpop.f32.mrb[180].mxu0 }
 0xb8f   : > { %v4556_v2 = vadd.f32 %v5732_v3, %v7945_v40  ;;  %v4547_v13 = vpop.f32.mrb[181].mxu0 }
 0xb90   : > { %v4548_v22 = vadd.f32 %v7945_v40, %v4547_v13  ;;  %v5733_v45 = vpop.f32.mrb[182].mxu0 }
 0xb91   : > { %v4664_v19 = vmax.f32 %v4556_v2, 0.0  ;;  %v4559_v5 = vadd.f32 %v5733_v45, %v7945_v40  ;;  %v4550_v30 = vpop.f32.mrb[183].mxu0 }
 0xb92   : > { %v4662_v15 = vmax.f32 %v4548_v22, 0.0  ;;  %v4551_v51 = vadd.f32 %v7945_v40, %v4550_v30 }
 0xb93   : > { %4696 = vst [vmem:[%s7953_s27 + $0x30] sm:$0xff] %v4664_v19  ;;  %v4665_v0 = vmax.f32 %v4559_v5, 0.0 }
 0xb94   : > { %4694 = vst [vmem:[%s7953_s27 + $0x20] sm:$0xff] %v4662_v15  ;;  %v4663_v20 = vmax.f32 %v4551_v51, 0.0 }
 0xb95   : > { %4697 = vst [vmem:[%s7953_s27 + $0x38] sm:$0xff] %v4665_v0 }
 0xb96   : > { %4695 = vst [vmem:[%s7953_s27 + $0x28] sm:$0xff] %v4663_v20 }
 0xb9e   : > { %v5736_v9 = vpop.f32.mrb[184].mxu0 }
 0xb9f   : > { %v4572_v53 = vadd.f32 %v5736_v9, %v7945_v40  ;;  %v4563_v12 = vpop.f32.mrb[185].mxu0 }
 0xba0   : > { %v4564_v55 = vadd.f32 %v7945_v40, %v4563_v12  ;;  %v5737_v28 = vpop.f32.mrb[186].mxu0 }
 0xba1   : > { %v4668_v23 = vmax.f32 %v4572_v53, 0.0  ;;  %v4575_v16 = vadd.f32 %v5737_v28, %v7945_v40  ;;  %v4566_v31 = vpop.f32.mrb[187].mxu0 }
 0xba2   : > { %v4666_v21 = vmax.f32 %v4564_v55, 0.0  ;;  %v4567_v59 = vadd.f32 %v7945_v40, %v4566_v31 }
 0xba3   : > { %4700 = vst [vmem:[%s7953_s27 + $0x50] sm:$0xff] %v4668_v23  ;;  %v4669_v11 = vmax.f32 %v4575_v16, 0.0 }
 0xba4   : > { %4698 = vst [vmem:[%s7953_s27 + $0x40] sm:$0xff] %v4666_v21  ;;  %v4667_v63 = vmax.f32 %v4567_v59, 0.0 }
 0xba5   : > { %4701 = vst [vmem:[%s7953_s27 + $0x58] sm:$0xff] %v4669_v11 }
 0xba6   : > { %4699 = vst [vmem:[%s7953_s27 + $0x48] sm:$0xff] %v4667_v63 }
 0xbae   : > { %v5740_v25 = vpop.f32.mrb[188].mxu0 }
 0xbaf   : > { %v4588_v10 = vadd.f32 %v5740_v25, %v7945_v40  ;;  %v4579_v4 = vpop.f32.mrb[189].mxu0 }
 0xbb0   : > { %v4580_v56 = vadd.f32 %v7945_v40, %v4579_v4  ;;  %v5741_v36 = vpop.f32.mrb[190].mxu0 }
 0xbb1   : > { %v4672_v24 = vmax.f32 %v4588_v10, 0.0  ;;  %v4591_v8 = vadd.f32 %v5741_v36, %v7945_v40  ;;  %v4582_v37 = vpop.f32.mrb[191].mxu0 }
 0xbb2   : > { %v4670_v49 = vmax.f32 %v4580_v56, 0.0  ;;  %v4583_v58 = vadd.f32 %v7945_v40, %v4582_v37 }
 0xbb3   : > { %4704 = vst [vmem:[%s7953_s27 + $0x70] sm:$0xff] %v4672_v24  ;;  %v4673_v18 = vmax.f32 %v4591_v8, 0.0 }
 0xbb4   : > { %4702 = vst [vmem:[%s7953_s27 + $0x60] sm:$0xff] %v4670_v49  ;;  %v4671_v1 = vmax.f32 %v4583_v58, 0.0 }
 0xbb5   : > { %4705 = vst [vmem:[%s7953_s27 + $0x78] sm:$0xff] %v4673_v18 }
 0xbb6   : > { %4703 = vst [vmem:[%s7953_s27 + $0x68] sm:$0xff] %v4671_v1 }
 0xbbe   : > { %v5744_v42 = vpop.f32.mrb[192].mxu0 }
 0xbbf   : > { %v4604_v54 = vadd.f32 %v5744_v42, %v7945_v40  ;;  %v4595_v39 = vpop.f32.mrb[193].mxu0 }
 0xbc0   : > { %v4596_v61 = vadd.f32 %v7945_v40, %v4595_v39  ;;  %v5745_v44 = vpop.f32.mrb[194].mxu0 }
 0xbc1   : > { %v4676_v52 = vmax.f32 %v4604_v54, 0.0  ;;  %v4607_v27 = vadd.f32 %v5745_v44, %v7945_v40  ;;  %v4598_v46 = vpop.f32.mrb[195].mxu0 }
 0xbc2   : > { %v4674_v6 = vmax.f32 %v4596_v61, 0.0  ;;  %v4599_v14 = vadd.f32 %v7945_v40, %v4598_v46 }
 0xbc3   : > { %4708 = vst [vmem:[%s7953_s27 + $0x90] sm:$0xff] %v4676_v52  ;;  %v4677_v26 = vmax.f32 %v4607_v27, 0.0 }
 0xbc4   : > { %4706 = vst [vmem:[%s7953_s27 + $0x80] sm:$0xff] %v4674_v6  ;;  %v4675_v35 = vmax.f32 %v4599_v14, 0.0 }
 0xbc5   : > { %4709 = vst [vmem:[%s7953_s27 + $0x98] sm:$0xff] %v4677_v26 }
 0xbc6   : > { %4707 = vst [vmem:[%s7953_s27 + $0x88] sm:$0xff] %v4675_v35 }
 0xbce   : > { %v5748_v48 = vpop.f32.mrb[196].mxu0 }
 0xbcf   : > { %v4620_v32 = vadd.f32 %v5748_v48, %v7945_v40  ;;  %v4611_v38 = vpop.f32.mrb[197].mxu0 }
 0xbd0   : > { %v4612_v60 = vadd.f32 %v7945_v40, %v4611_v38  ;;  %v5749_v7 = vpop.f32.mrb[198].mxu0 }
 0xbd1   : > { %v4680_v47 = vmax.f32 %v4620_v32, 0.0  ;;  %v4623_v41 = vadd.f32 %v5749_v7, %v7945_v40  ;;  %v4614_v29 = vpop.f32.mrb[199].mxu0 }
 0xbd2   : > { %v4678_v50 = vmax.f32 %v4612_v60, 0.0  ;;  %v4615_v33 = vadd.f32 %v7945_v40, %v4614_v29 }
 0xbd3   : > { %4712 = vst [vmem:[%s7953_s27 + $0xb0] sm:$0xff] %v4680_v47  ;;  %v4681_v34 = vmax.f32 %v4623_v41, 0.0 }
 0xbd4   : > { %4710 = vst [vmem:[%s7953_s27 + $0xa0] sm:$0xff] %v4678_v50  ;;  %v4679_v17 = vmax.f32 %v4615_v33, 0.0 }
 0xbd5   : > { %4713 = vst [vmem:[%s7953_s27 + $0xb8] sm:$0xff] %v4681_v34 }
 0xbd6   : > { %4711 = vst [vmem:[%s7953_s27 + $0xa8] sm:$0xff] %v4679_v17 }
 0xbde   : > { %v5752_v62 = vpop.f32.mrb[200].mxu0 }
 0xbdf   : > { %v4636_v57 = vadd.f32 %v5752_v62, %v7945_v40  ;;  %v4627_v43 = vpop.f32.mrb[201].mxu0 }
 0xbe0   : > { %v4628_v3 = vadd.f32 %v7945_v40, %v4627_v43  ;;  %v5753_v2 = vpop.f32.mrb[202].mxu0 }
 0xbe1   : > { %v4684_v13 = vmax.f32 %v4636_v57, 0.0  ;;  %v4639_v22 = vadd.f32 %v5753_v2, %v7945_v40  ;;  %v4630_v45 = vpop.f32.mrb[203].mxu0 }
 0xbe2   : > { %v4682_v19 = vmax.f32 %v4628_v3, 0.0  ;;  %v4631_v5 = vadd.f32 %v7945_v40, %v4630_v45 }
 0xbe3   : > { %4716 = vst [vmem:[%s7953_s27 + $0xd0] sm:$0xff] %v4684_v13  ;;  %v4685_v30 = vmax.f32 %v4639_v22, 0.0 }
 0xbe4   : > { %4714 = vst [vmem:[%s7953_s27 + $0xc0] sm:$0xff] %v4682_v19  ;;  %v4683_v15 = vmax.f32 %v4631_v5, 0.0 }
 0xbe5   : > { %4717 = vst [vmem:[%s7953_s27 + $0xd8] sm:$0xff] %v4685_v30 }
 0xbe6   : > { %4715 = vst [vmem:[%s7953_s27 + $0xc8] sm:$0xff] %v4683_v15 }
 0xbee   : > { %v5756_v51 = vpop.f32.mrb[204].mxu0 }
 0xbef   : > { %v4652_v0 = vadd.f32 %v5756_v51, %v7945_v40  ;;  %v4643_v20 = vpop.f32.mrb[205].mxu0 }
 0xbf0   : > { %v4644_v9 = vadd.f32 %v7945_v40, %v4643_v20  ;;  %v5757_v53 = vpop.f32.mrb[206].mxu0 }
 0xbf1   : > { %v4688_v12 = vmax.f32 %v4652_v0, 0.0  ;;  %v4655_v55 = vadd.f32 %v5757_v53, %v7945_v40  ;;  %v4646_v28 = vpop.f32.mrb[207].mxu0 }
 0xbf2   : > { %v4686_v23 = vmax.f32 %v4644_v9, 0.0  ;;  %v4647_v16 = vadd.f32 %v7945_v40, %v4646_v28 }
 0xbf3   : > { %4720 = vst [vmem:[%s7953_s27 + $0xf0] sm:$0xff] %v4688_v12  ;;  %v4689_v31 = vmax.f32 %v4655_v55, 0.0 }
 0xbf4   : > { %4718 = vst [vmem:[%s7953_s27 + $0xe0] sm:$0xff] %v4686_v23  ;;  %v4687_v21 = vmax.f32 %v4647_v16, 0.0 }
 0xbf5   : > { %4721 = vst [vmem:[%s7953_s27 + $0xf8] sm:$0xff] %v4689_v31 }
 0xbf6   : > { %4719 = vst [vmem:[%s7953_s27 + $0xe8] sm:$0xff] %v4687_v21 }
 0xbf7   : > { %6180 = shalt.err (!%p6177_p3)
}
 0xbf8   : > { %s6181_s21 = scalar_lea.hbm %s8017_s26, 4096  ;;  %s6185_s25 = scalar_lea.hbm %s8086_s19, 8192 }
 0xbf9   : > { %p6182_p4 = scmp.ne.s32.totalorder %s8017_s26, %s6181_s21  ;;  %p6186_p9 = scmp.lt.u32.totalorder %s8017_s26, %s8086_s19 }
 0xbfa   : > { %p6187_p10 = scmp.lt.u32.totalorder %s6185_s25, %s6181_s21  ;;  %p6189_p12 = scmp.lt.u32.totalorder %s6181_s21, %s8017_s26 }
 0xbfb   : > { %p6183_p7 = pnand %p6182_p4, %p6373_p5 }
 0xbfc   : > { %p6188_p11 = por %p6187_p10, %p6186_p9 }
 0xbfd   : > { %p6184_p8 = pneg %p6183_p7 }
 0xbfe   : > { %p6190_p13 = por %p6189_p12, %p6188_p11 }
 0xc00   : > { %p6191_p0 = pnand %p6190_p13, %p6184_p8 }
 0xc02   : > { %6194 = shalt.err (!%p6191_p0)
}
 0xc03   : > { %s6233_s22 = smov 128   ;;  %s6234_s28 = smov 8  }
 0xc04   : > { %5770 = dma.vmem_to_hbm [thread:$0]  (%p6373_p5), %s8019_s0, 4096, %s8017_s26, %s8026_s1, %s6233_s22, %s6233_s22, %s6234_s28  }
 0xc05 PF: > { %s8152_s27 = sld [smem:[#allocation7_spill]]  ;;  %s8153_s20 = sld [smem:[#allocation5_spill]] }
 0xc0b   : > { %p5776_p1 = scmp.ge.s32.totalorder %s8152_s27, 2  ;;  %s4751_s23 = sand.u32 1, %s8153_s20  }
 0xc0c   : > { %s4752_s21 = scalar_lea.sflag [#allocation3], %s4751_s23 }
 0xc0d   : > { %p5773_p2 = pnand %p5776_p1, %p6377_p6 }
 0xc0f   : > { %6212 = dma.done.wait (!%p5773_p2), %s4752_s21, 4096  }
 0xc10   : > { %6214 = vsyncadd (!%p5773_p2), %s4752_s21, 4294963200  ;;  %s8155_s21 = sld [smem:[#allocation8_spill]]  ;;  %s8156_s25 = sld [smem:[#allocation6_spill]] }
 0xc11   : > { %s8157_s20 = sld [smem:[#allocation9_spill]]  ;;  %s8158_s0 = smov %s6221_s30 }
 0xc16   : > { %p29_p3 = scmp.ge.s32.totalorder %s8155_s21, 4   ;;  %s8159_s30 = smov %s8156_s25 }
 0xc18   :  { %31 = sbr.rel (!%p29_p3) target bundleno = 8 (0x8), region = 131 }
 0xc1f   :  { %4757 = vsyncpa [#allocation3], 1 }
 0xc20   :  { %4759 = vsyncpa [#allocation3 + $0x1], 1 }

</bundles_post_ra>
